<compile_context>
chip_gen: v6e
topology: v6e:2x2x1
jax: 0.10.0
libtpu: 0.0.40
codegen_flags: <defaults>
</compile_context>

<pallas_src>
import functools

import jax
import jax.numpy as jnp
from jax import lax
from jax.experimental import pallas as pl
from jax.experimental.pallas import tpu as pltpu

EPS = 1e-5
LANE = 128


def _round_up(x, m):
    return ((x + m - 1) // m) * m


def _pad_last(a, target, value=0.0):
    pad = target - a.shape[-1]
    if pad == 0:
        return a
    widths = [(0, 0)] * (a.ndim - 1) + [(0, pad)]
    return jnp.pad(a, widths, constant_values=value)


def _pad_w(w, cin_p, cout_p):
    # (3, 3, Cin, Cout) -> (3, 3, cin_p, cout_p), zero padded
    _, _, ci, co = w.shape
    return jnp.pad(w, ((0, 0), (0, 0), (0, cin_p - ci), (0, cout_p - co)))


# ---------------------------------------------------------------------------
# Fused kernel: [optional BN+ReLU on input] -> 3x3 conv (im2col, one matmul)
#               -> conv output + per-channel sum / sum-of-squares
# ---------------------------------------------------------------------------
def fused_conv_kernel(x_ref, scale_ref, shift_ref, w_ref,
                      y_ref, sum_ref, sq_ref,
                      xp, col, *, apply_act):
    # x_ref : (1, H, W, Cin)      raw previous-layer conv output / module input
    # w_ref : (9*Cin, Cout)       HWIO weights flattened to im2col row order
    # y_ref : (1, H, W, Cout)     pre-BN conv output
    # sum/sq: (1, Cout)           resident per-channel accumulators
    # xp    : VMEM (H+2, W+2, Cin)   zero-halo activated input
    # col   : VMEM (H*W, 9*Cin)      im2col matrix
    _, H, W, Cout = y_ref.shape
    Cin = x_ref.shape[-1]

    @pl.when(pl.program_id(0) == 0)
    def _():
        sum_ref[...] = jnp.zeros_like(sum_ref)
        sq_ref[...] = jnp.zeros_like(sq_ref)
        xp[...] = jnp.zeros_like(xp)   # halo border zeroed once; interior is
                                       # overwritten every grid step below.

    x = x_ref[...]                                        # (1, H, W, Cin)
    if apply_act:
        # Previous layer's BN + ReLU fused into the load path.  The halo
        # region stays exactly 0 because only the interior is written.
        x = jnp.maximum(
            x * scale_ref[...][None, None] + shift_ref[...][None, None], 0.0)
    xp[1:H + 1, 1:W + 1, :] = x[0]

    # im2col: columns ordered (kh, kw, ci) to match the flattened HWIO weights.
    for kh in range(3):
        for kw in range(3):
            k = (kh * 3 + kw) * Cin
            col[:, k:k + Cin] = xp[kh:kh + H, kw:kw + W, :].reshape(H * W, Cin)

    # Single MXU matmul, K = 9*Cin, f32 accumulation.
    acc = jnp.dot(col[...], w_ref[...], preferred_element_type=jnp.float32)

    y_ref[0] = acc.reshape(H, W, Cout)
    # Fused BatchNorm statistics (removes a full read of the feature map).
    sum_ref[...] += jnp.sum(acc, axis=0)[None, :]
    sq_ref[...] += jnp.sum(acc * acc, axis=0)[None, :]


def fused_conv(x, scale, shift, w_flat, *, apply_act):
    # x: (N, H, W, Cin) f32, Cin a multiple of 128; w_flat: (9*Cin, Cout)
    N, H, W, Cin = x.shape
    Cout = w_flat.shape[-1]
    kernel = functools.partial(fused_conv_kernel, apply_act=apply_act)
    return pl.pallas_call(
        kernel,
        out_shape=(jax.ShapeDtypeStruct((N, H, W, Cout), jnp.float32),
                   jax.ShapeDtypeStruct((1, Cout), jnp.float32),
                   jax.ShapeDtypeStruct((1, Cout), jnp.float32)),
        grid=(N,),
        in_specs=[
            pl.BlockSpec((1, H, W, Cin), lambda n: (n, 0, 0, 0)),
            pl.BlockSpec((1, Cin), lambda n: (0, 0)),
            pl.BlockSpec((1, Cin), lambda n: (0, 0)),
            pl.BlockSpec((9 * Cin, Cout), lambda n: (0, 0)),
        ],
        out_specs=(
            pl.BlockSpec((1, H, W, Cout), lambda n: (n, 0, 0, 0)),
            pl.BlockSpec((1, Cout), lambda n: (0, 0)),   # resident accumulator
            pl.BlockSpec((1, Cout), lambda n: (0, 0)),   # resident accumulator
        ),
        scratch_shapes=[
            pltpu.VMEM((H + 2, W + 2, Cin), jnp.float32),
            pltpu.VMEM((H * W, 9 * Cin), jnp.float32),
        ],
        compiler_params=pltpu.CompilerParams(
            dimension_semantics=("arbitrary",)),   # resident outputs over N
    )(x, scale, shift, w_flat)


# ---------------------------------------------------------------------------
# Final fused (x * scale + shift) -> ReLU (lane-dense, batch-parallel)
# ---------------------------------------------------------------------------
def bn_relu_kernel(x_ref, scale_ref, shift_ref, o_ref):
    x = x_ref[...]                                        # (1, H, W, C)
    o_ref[...] = jnp.maximum(
        x * scale_ref[...][None, None] + shift_ref[...][None, None], 0.0)


def bn_relu(x, scale, shift):
    N, H, W, C = x.shape
    return pl.pallas_call(
        bn_relu_kernel,
        out_shape=jax.ShapeDtypeStruct((N, H, W, C), jnp.float32),
        grid=(N,),
        in_specs=[
            pl.BlockSpec((1, H, W, C), lambda n: (n, 0, 0, 0)),
            pl.BlockSpec((1, C), lambda n: (0, 0)),
            pl.BlockSpec((1, C), lambda n: (0, 0)),
        ],
        out_specs=pl.BlockSpec((1, H, W, C), lambda n: (n, 0, 0, 0)),
        compiler_params=pltpu.CompilerParams(
            dimension_semantics=("parallel",)),
    )(x, scale, shift)


# ---------------------------------------------------------------------------
# BN affine from accumulated stats (tiny (1, C) math, outside the kernels)
# ---------------------------------------------------------------------------
def _bn_affine(s, sq, count, gamma, beta):
    mean = s / count
    var = jnp.maximum(sq / count - mean * mean, 0.0)   # biased var (BN train)
    scale = gamma / jnp.sqrt(var + EPS)
    shift = beta - mean * scale
    return scale, shift


# ---------------------------------------------------------------------------
# Module wrapper: Conv -> BN(train stats) -> ReLU, twice
# ---------------------------------------------------------------------------
@jax.jit
def unet_down(x_nchw, params):
    (w1, _b1, g1, bt1), (w2, _b2, g2, bt2) = params
    cin = w1.shape[2]
    cout = w1.shape[3]
    cin_p = _round_up(cin, LANE)
    cout_p = _round_up(cout, LANE)

    # NCHW -> NHWC, channels padded to the 128-lane width (lane-dense tiles).
    x = _pad_last(jnp.transpose(x_nchw, (0, 2, 3, 1)), cin_p)
    N, H, W, _ = x.shape
    count = N * H * W

    # Weights: pad channels, flatten HWIO -> (9*Cin, Cout) im2col row order.
    # Conv biases are dropped: batch-stat BatchNorm cancels them exactly.
    w1p = _pad_w(w1, cin_p, cout_p).reshape(9 * cin_p, cout_p)
    w2p = _pad_w(w2, cout_p, cout_p).reshape(9 * cout_p, cout_p)
    g1p, bt1p = _pad_last(g1, cout_p, 1.0), _pad_last(bt1, cout_p, 0.0)
    g2p, bt2p = _pad_last(g2, cout_p, 1.0), _pad_last(bt2, cout_p, 0.0)

    ones = jnp.ones((1, cin_p), jnp.float32)
    zeros = jnp.zeros((1, cin_p), jnp.float32)

    # Layer 1: conv + fused per-channel stats.
    y1, s1, sq1 = fused_conv(x, ones, zeros, w1p, apply_act=False)
    scale1, shift1 = _bn_affine(s1, sq1, count, g1p, bt1p)

    # Layer 2: layer-1's BN+ReLU fused into the conv input path, + stats.
    y2, s2, sq2 = fused_conv(y1, scale1, shift1, w2p, apply_act=True)
    scale2, shift2 = _bn_affine(s2, sq2, count, g2p, bt2p)

    # Final BN + ReLU (lane-dense padded store), then drop channel padding.
    out = bn_relu(y2, scale2, shift2)[..., :cout]
    return jnp.transpose(out, (0, 3, 1, 2))               # NHWC -> NCHW


# ---------------------------------------------------------------------------
# Pure-JAX reference (PyTorch semantics incl. conv bias) for correctness check
# ---------------------------------------------------------------------------
def unet_down_ref(x_nchw, params):
    x = jnp.transpose(x_nchw, (0, 2, 3, 1))
    for (w, b, gamma, beta) in params:
        y = lax.conv_general_dilated(
            x, w, window_strides=(1, 1), padding="SAME",
            dimension_numbers=("NHWC", "HWIO", "NHWC")) + b[0]
        mean = jnp.mean(y, axis=(0, 1, 2))
        var = jnp.mean((y - mean) ** 2, axis=(0, 1, 2))
        y = (y - mean) / jnp.sqrt(var + EPS) * gamma[0] + beta[0]
        x = jnp.maximum(y, 0.0)
    return jnp.transpose(x, (0, 3, 1, 2))


if __name__ == "__main__":
    N, Cin, Cout, H, W = 2, 4, 8, 16, 16

    key = jax.random.PRNGKey(0)
    kx, kw1, kb1, kw2, kb2 = jax.random.split(key, 5)

    x = jax.random.normal(kx, (N, Cin, H, W), jnp.float32)

    # Parameter shapes per nn.Conv2d (HWIO here) / nn.BatchNorm2d.
    w1 = jax.random.normal(kw1, (3, 3, Cin, Cout), jnp.float32) * 0.1
    b1 = jax.random.normal(kb1, (1, Cout), jnp.float32) * 0.1
    w2 = jax.random.normal(kw2, (3, 3, Cout, Cout), jnp.float32) * 0.1
    b2 = jax.random.normal(kb2, (1, Cout), jnp.float32) * 0.1
    gamma1 = jnp.ones((1, Cout), jnp.float32)   # BN weight init = 1
    beta1 = jnp.zeros((1, Cout), jnp.float32)   # BN bias   init = 0
    gamma2 = jnp.ones((1, Cout), jnp.float32)
    beta2 = jnp.zeros((1, Cout), jnp.float32)

    params = ((w1, b1, gamma1, beta1), (w2, b2, gamma2, beta2))

    out = unet_down(x, params)
    out = jax.block_until_ready(out)

    ref = unet_down_ref(x, params)
    assert out.shape == (N, Cout, H, W), out.shape
    assert jnp.allclose(out, ref, atol=1e-3, rtol=1e-3), \
        float(jnp.max(jnp.abs(out - ref)))

    print("KERNEL_OK")
</pallas_src>

<mosaic_0001>
module attributes {stable_mosaic.version = 11 : i64} {
  func.func @fused_conv_kernel(%arg0: i32, %arg1: memref<1x16x16x128xf32, #tpu.memory_space<vmem>>, %arg2: memref<1x128xf32, #tpu.memory_space<vmem>>, %arg3: memref<1x128xf32, #tpu.memory_space<vmem>>, %arg4: memref<1152x128xf32, #tpu.memory_space<vmem>>, %arg5: memref<1x16x16x128xf32, #tpu.memory_space<vmem>>, %arg6: memref<1x128xf32, #tpu.memory_space<vmem>>, %arg7: memref<1x128xf32, #tpu.memory_space<vmem>>, %arg8: memref<18x18x128xf32, #tpu.memory_space<vmem>>, %arg9: memref<256x1152xf32, #tpu.memory_space<vmem>>) attributes {dimension_semantics = [#tpu.dimension_semantics<arbitrary>], iteration_bounds = array<i64: 2>, scalar_prefetch = 0 : i64, scratch_operands = 2 : i64, tpu.core_type = #tpu.core_type<tc>, window_params = [{transform_indices = @transform_0, window_bounds = array<i64: 1, 16, 16, 128>}, {pipeline_mode = #tpu.pipeline_mode<synchronous>, transform_indices = @transform_1, window_bounds = array<i64: 1, 128>}, {pipeline_mode = #tpu.pipeline_mode<synchronous>, transform_indices = @transform_2, window_bounds = array<i64: 1, 128>}, {pipeline_mode = #tpu.pipeline_mode<synchronous>, transform_indices = @transform_3, window_bounds = array<i64: 1152, 128>}, {transform_indices = @transform_4, window_bounds = array<i64: 1, 16, 16, 128>}, {pipeline_mode = #tpu.pipeline_mode<synchronous>, transform_indices = @transform_5, window_bounds = array<i64: 1, 128>}, {pipeline_mode = #tpu.pipeline_mode<synchronous>, transform_indices = @transform_6, window_bounds = array<i64: 1, 128>}]} {
    %c0_i32 = arith.constant 0 : i32
    %0 = arith.cmpi eq, %arg0, %c0_i32 : i32
    %1 = arith.extui %0 : i1 to i32
    %c0_i32_0 = arith.constant 0 : i32
    %2 = arith.cmpi ne, %1, %c0_i32_0 : i32
    scf.if %2 {
      %cst_65 = arith.constant 0.000000e+00 : f32
      %61 = vector.broadcast %cst_65 : f32 to vector<1x128xf32>
      %c0_66 = arith.constant 0 : index
      %c0_67 = arith.constant 0 : index
      %62 = vector.load %arg6[%c0_66, %c0_67] : memref<1x128xf32, #tpu.memory_space<vmem>>, vector<1x128xf32>
      tpu.vector_store %arg6[%c0_66, %c0_67], %61 {strides = array<i32>} : memref<1x128xf32, #tpu.memory_space<vmem>>, vector<1x128xf32>,
      %cst_68 = arith.constant 0.000000e+00 : f32
      %63 = vector.broadcast %cst_68 : f32 to vector<1x128xf32>
      %c0_69 = arith.constant 0 : index
      %c0_70 = arith.constant 0 : index
      %64 = vector.load %arg7[%c0_69, %c0_70] : memref<1x128xf32, #tpu.memory_space<vmem>>, vector<1x128xf32>
      tpu.vector_store %arg7[%c0_69, %c0_70], %63 {strides = array<i32>} : memref<1x128xf32, #tpu.memory_space<vmem>>, vector<1x128xf32>,
      %cst_71 = arith.constant 0.000000e+00 : f32
      %65 = vector.broadcast %cst_71 : f32 to vector<18x18x128xf32>
      %c0_72 = arith.constant 0 : index
      %c0_73 = arith.constant 0 : index
      %c0_74 = arith.constant 0 : index
      %66 = vector.load %arg8[%c0_72, %c0_73, %c0_74] : memref<18x18x128xf32, #tpu.memory_space<vmem>>, vector<18x18x128xf32>
      tpu.vector_store %arg8[%c0_72, %c0_73, %c0_74], %65 {strides = array<i32>} : memref<18x18x128xf32, #tpu.memory_space<vmem>>, vector<18x18x128xf32>,
    } else {
    }
    %c0 = arith.constant 0 : index
    %c0_1 = arith.constant 0 : index
    %c0_2 = arith.constant 0 : index
    %c0_3 = arith.constant 0 : index
    %3 = vector.load %arg1[%c0, %c0_1, %c0_2, %c0_3] : memref<1x16x16x128xf32, #tpu.memory_space<vmem>>, vector<1x16x16x128xf32>
    %c0_4 = arith.constant 0 : index
    %c0_5 = arith.constant 0 : index
    %4 = vector.load %arg2[%c0_4, %c0_5] : memref<1x128xf32, #tpu.memory_space<vmem>>, vector<1x128xf32>
    %5 = vector.shape_cast %4 : vector<1x128xf32> to vector<1x1x1x128xf32>
    %6 = vector.broadcast %5 : vector<1x1x1x128xf32> to vector<1x16x16x128xf32>
    %7 = arith.mulf %3, %6 : vector<1x16x16x128xf32>
    %c0_6 = arith.constant 0 : index
    %c0_7 = arith.constant 0 : index
    %8 = vector.load %arg3[%c0_6, %c0_7] : memref<1x128xf32, #tpu.memory_space<vmem>>, vector<1x128xf32>
    %9 = vector.shape_cast %8 : vector<1x128xf32> to vector<1x1x1x128xf32>
    %10 = vector.broadcast %9 : vector<1x1x1x128xf32> to vector<1x16x16x128xf32>
    %11 = arith.addf %7, %10 : vector<1x16x16x128xf32>
    %cst = arith.constant 0.000000e+00 : f32
    %12 = vector.broadcast %cst : f32 to vector<1x16x16x128xf32>
    %13 = arith.maximumf %11, %12 : vector<1x16x16x128xf32>
    %14 = vector.shape_cast %13 : vector<1x16x16x128xf32> to vector<16x16x128xf32>
    %c1 = arith.constant 1 : index
    %c1_8 = arith.constant 1 : index
    %c0_9 = arith.constant 0 : index
    %15 = vector.load %arg8[%c1, %c1_8, %c0_9] : memref<18x18x128xf32, #tpu.memory_space<vmem>>, vector<16x16x128xf32>
    tpu.vector_store %arg8[%c1, %c1_8, %c0_9], %14 {strides = array<i32>} : memref<18x18x128xf32, #tpu.memory_space<vmem>>, vector<16x16x128xf32>,
    %c0_10 = arith.constant 0 : index
    %c0_11 = arith.constant 0 : index
    %c0_12 = arith.constant 0 : index
    %16 = vector.load %arg8[%c0_10, %c0_11, %c0_12] : memref<18x18x128xf32, #tpu.memory_space<vmem>>, vector<16x16x128xf32>
    %17 = vector.shape_cast %16 : vector<16x16x128xf32> to vector<256x128xf32>
    %c0_13 = arith.constant 0 : index
    %c0_14 = arith.constant 0 : index
    %18 = vector.load %arg9[%c0_13, %c0_14] : memref<256x1152xf32, #tpu.memory_space<vmem>>, vector<256x128xf32>
    tpu.vector_store %arg9[%c0_13, %c0_14], %17 {strides = array<i32>} : memref<256x1152xf32, #tpu.memory_space<vmem>>, vector<256x128xf32>,
    %c0_15 = arith.constant 0 : index
    %c1_16 = arith.constant 1 : index
    %c0_17 = arith.constant 0 : index
    %19 = vector.load %arg8[%c0_15, %c1_16, %c0_17] : memref<18x18x128xf32, #tpu.memory_space<vmem>>, vector<16x16x128xf32>
    %20 = vector.shape_cast %19 : vector<16x16x128xf32> to vector<256x128xf32>
    %c0_18 = arith.constant 0 : index
    %c128 = arith.constant 128 : index
    %21 = vector.load %arg9[%c0_18, %c128] : memref<256x1152xf32, #tpu.memory_space<vmem>>, vector<256x128xf32>
    tpu.vector_store %arg9[%c0_18, %c128], %20 {strides = array<i32>} : memref<256x1152xf32, #tpu.memory_space<vmem>>, vector<256x128xf32>,
    %c0_19 = arith.constant 0 : index
    %c2 = arith.constant 2 : index
    %c0_20 = arith.constant 0 : index
    %22 = vector.load %arg8[%c0_19, %c2, %c0_20] : memref<18x18x128xf32, #tpu.memory_space<vmem>>, vector<16x16x128xf32>
    %23 = vector.shape_cast %22 : vector<16x16x128xf32> to vector<256x128xf32>
    %c0_21 = arith.constant 0 : index
    %c256 = arith.constant 256 : index
    %24 = vector.load %arg9[%c0_21, %c256] : memref<256x1152xf32, #tpu.memory_space<vmem>>, vector<256x128xf32>
    tpu.vector_store %arg9[%c0_21, %c256], %23 {strides = array<i32>} : memref<256x1152xf32, #tpu.memory_space<vmem>>, vector<256x128xf32>,
    %c1_22 = arith.constant 1 : index
    %c0_23 = arith.constant 0 : index
    %c0_24 = arith.constant 0 : index
    %25 = vector.load %arg8[%c1_22, %c0_23, %c0_24] : memref<18x18x128xf32, #tpu.memory_space<vmem>>, vector<16x16x128xf32>
    %26 = vector.shape_cast %25 : vector<16x16x128xf32> to vector<256x128xf32>
    %c0_25 = arith.constant 0 : index
    %c384 = arith.constant 384 : index
    %27 = vector.load %arg9[%c0_25, %c384] : memref<256x1152xf32, #tpu.memory_space<vmem>>, vector<256x128xf32>
    tpu.vector_store %arg9[%c0_25, %c384], %26 {strides = array<i32>} : memref<256x1152xf32, #tpu.memory_space<vmem>>, vector<256x128xf32>,
    %c1_26 = arith.constant 1 : index
    %c1_27 = arith.constant 1 : index
    %c0_28 = arith.constant 0 : index
    %28 = vector.load %arg8[%c1_26, %c1_27, %c0_28] : memref<18x18x128xf32, #tpu.memory_space<vmem>>, vector<16x16x128xf32>
    %29 = vector.shape_cast %28 : vector<16x16x128xf32> to vector<256x128xf32>
    %c0_29 = arith.constant 0 : index
    %c512 = arith.constant 512 : index
    %30 = vector.load %arg9[%c0_29, %c512] : memref<256x1152xf32, #tpu.memory_space<vmem>>, vector<256x128xf32>
    tpu.vector_store %arg9[%c0_29, %c512], %29 {strides = array<i32>} : memref<256x1152xf32, #tpu.memory_space<vmem>>, vector<256x128xf32>,
    %c1_30 = arith.constant 1 : index
    %c2_31 = arith.constant 2 : index
    %c0_32 = arith.constant 0 : index
    %31 = vector.load %arg8[%c1_30, %c2_31, %c0_32] : memref<18x18x128xf32, #tpu.memory_space<vmem>>, vector<16x16x128xf32>
    %32 = vector.shape_cast %31 : vector<16x16x128xf32> to vector<256x128xf32>
    %c0_33 = arith.constant 0 : index
    %c640 = arith.constant 640 : index
    %33 = vector.load %arg9[%c0_33, %c640] : memref<256x1152xf32, #tpu.memory_space<vmem>>, vector<256x128xf32>
    tpu.vector_store %arg9[%c0_33, %c640], %32 {strides = array<i32>} : memref<256x1152xf32, #tpu.memory_space<vmem>>, vector<256x128xf32>,
    %c2_34 = arith.constant 2 : index
    %c0_35 = arith.constant 0 : index
    %c0_36 = arith.constant 0 : index
    %34 = vector.load %arg8[%c2_34, %c0_35, %c0_36] : memref<18x18x128xf32, #tpu.memory_space<vmem>>, vector<16x16x128xf32>
    %35 = vector.shape_cast %34 : vector<16x16x128xf32> to vector<256x128xf32>
    %c0_37 = arith.constant 0 : index
    %c768 = arith.constant 768 : index
    %36 = vector.load %arg9[%c0_37, %c768] : memref<256x1152xf32, #tpu.memory_space<vmem>>, vector<256x128xf32>
    tpu.vector_store %arg9[%c0_37, %c768], %35 {strides = array<i32>} : memref<256x1152xf32, #tpu.memory_space<vmem>>, vector<256x128xf32>,
    %c2_38 = arith.constant 2 : index
    %c1_39 = arith.constant 1 : index
    %c0_40 = arith.constant 0 : index
    %37 = vector.load %arg8[%c2_38, %c1_39, %c0_40] : memref<18x18x128xf32, #tpu.memory_space<vmem>>, vector<16x16x128xf32>
    %38 = vector.shape_cast %37 : vector<16x16x128xf32> to vector<256x128xf32>
    %c0_41 = arith.constant 0 : index
    %c896 = arith.constant 896 : index
    %39 = vector.load %arg9[%c0_41, %c896] : memref<256x1152xf32, #tpu.memory_space<vmem>>, vector<256x128xf32>
    tpu.vector_store %arg9[%c0_41, %c896], %38 {strides = array<i32>} : memref<256x1152xf32, #tpu.memory_space<vmem>>, vector<256x128xf32>,
    %c2_42 = arith.constant 2 : index
    %c2_43 = arith.constant 2 : index
    %c0_44 = arith.constant 0 : index
    %40 = vector.load %arg8[%c2_42, %c2_43, %c0_44] : memref<18x18x128xf32, #tpu.memory_space<vmem>>, vector<16x16x128xf32>
    %41 = vector.shape_cast %40 : vector<16x16x128xf32> to vector<256x128xf32>
    %c0_45 = arith.constant 0 : index
    %c1024 = arith.constant 1024 : index
    %42 = vector.load %arg9[%c0_45, %c1024] : memref<256x1152xf32, #tpu.memory_space<vmem>>, vector<256x128xf32>
    tpu.vector_store %arg9[%c0_45, %c1024], %41 {strides = array<i32>} : memref<256x1152xf32, #tpu.memory_space<vmem>>, vector<256x128xf32>,
    %c0_46 = arith.constant 0 : index
    %c0_47 = arith.constant 0 : index
    %43 = vector.load %arg9[%c0_46, %c0_47] : memref<256x1152xf32, #tpu.memory_space<vmem>>, vector<256x1152xf32>
    %c0_48 = arith.constant 0 : index
    %c0_49 = arith.constant 0 : index
    %44 = vector.load %arg4[%c0_48, %c0_49] : memref<1152x128xf32, #tpu.memory_space<vmem>>, vector<1152x128xf32>
    %cst_50 = arith.constant dense<0.000000e+00> : vector<256x128xf32>
    %45 = tpu.matmul %43, %44, %cst_50 {dimension_numbers = #tpu.dot_dimension_numbers<[1], [0], [0], [1], [0, 0, 1, 1], [], []>} : vector<256x1152xf32>, vector<1152x128xf32>, vector<256x128xf32> -> vector<256x128xf32>
    %46 = vector.shape_cast %45 : vector<256x128xf32> to vector<16x16x128xf32>
    %c0_51 = arith.constant 0 : index
    %c0_52 = arith.constant 0 : index
    %c0_53 = arith.constant 0 : index
    %c0_54 = arith.constant 0 : index
    %47 = vector.load %arg5[%c0_51, %c0_52, %c0_53, %c0_54] : memref<1x16x16x128xf32, #tpu.memory_space<vmem>>, vector<1x16x16x128xf32>
    %48 = vector.shape_cast %47 : vector<1x16x16x128xf32> to vector<16x16x128xf32>
    %49 = vector.shape_cast %46 : vector<16x16x128xf32> to vector<1x16x16x128xf32>
    tpu.vector_store %arg5[%c0_51, %c0_52, %c0_53, %c0_54], %49 {strides = array<i32>} : memref<1x16x16x128xf32, #tpu.memory_space<vmem>>, vector<1x16x16x128xf32>,
    %c0_55 = arith.constant 0 : index
    %c0_56 = arith.constant 0 : index
    %50 = vector.load %arg6[%c0_55, %c0_56] : memref<1x128xf32, #tpu.memory_space<vmem>>, vector<1x128xf32>
    %cst_57 = arith.constant dense<0.000000e+00> : vector<128xf32>
    %51 = vector.multi_reduction <add>, %45, %cst_57 [0] : vector<256x128xf32> to vector<128xf32>
    %52 = vector.shape_cast %51 : vector<128xf32> to vector<1x128xf32>
    %53 = arith.addf %50, %52 : vector<1x128xf32>
    %c0_58 = arith.constant 0 : index
    %c0_59 = arith.constant 0 : index
    %54 = vector.load %arg6[%c0_58, %c0_59] : memref<1x128xf32, #tpu.memory_space<vmem>>, vector<1x128xf32>
    tpu.vector_store %arg6[%c0_58, %c0_59], %53 {strides = array<i32>} : memref<1x128xf32, #tpu.memory_space<vmem>>, vector<1x128xf32>,
    %c0_60 = arith.constant 0 : index
    %c0_61 = arith.constant 0 : index
    %55 = vector.load %arg7[%c0_60, %c0_61] : memref<1x128xf32, #tpu.memory_space<vmem>>, vector<1x128xf32>
    %56 = arith.mulf %45, %45 : vector<256x128xf32>
    %cst_62 = arith.constant dense<0.000000e+00> : vector<128xf32>
    %57 = vector.multi_reduction <add>, %56, %cst_62 [0] : vector<256x128xf32> to vector<128xf32>
    %58 = vector.shape_cast %57 : vector<128xf32> to vector<1x128xf32>
    %59 = arith.addf %55, %58 : vector<1x128xf32>
    %c0_63 = arith.constant 0 : index
    %c0_64 = arith.constant 0 : index
    %60 = vector.load %arg7[%c0_63, %c0_64] : memref<1x128xf32, #tpu.memory_space<vmem>>, vector<1x128xf32>
    tpu.vector_store %arg7[%c0_63, %c0_64], %59 {strides = array<i32>} : memref<1x128xf32, #tpu.memory_space<vmem>>, vector<1x128xf32>,
    return
  }
  func.func @transform_0(%arg0: i32) -> (i32, i32, i32, i32) {
    %c0_i32 = arith.constant 0 : i32
    %c0_i32_0 = arith.constant 0 : i32
    %c0_i32_1 = arith.constant 0 : i32
    %c0_i32_2 = arith.constant 0 : i32
    return %arg0, %c0_i32, %c0_i32_0, %c0_i32_1 : i32, i32, i32, i32
  }
  func.func @transform_1(%arg0: i32) -> (i32, i32) {
    %c0_i32 = arith.constant 0 : i32
    %c0_i32_0 = arith.constant 0 : i32
    %c0_i32_1 = arith.constant 0 : i32
    return %c0_i32, %c0_i32_0 : i32, i32
  }
  func.func @transform_2(%arg0: i32) -> (i32, i32) {
    %c0_i32 = arith.constant 0 : i32
    %c0_i32_0 = arith.constant 0 : i32
    %c0_i32_1 = arith.constant 0 : i32
    return %c0_i32, %c0_i32_0 : i32, i32
  }
  func.func @transform_3(%arg0: i32) -> (i32, i32) {
    %c0_i32 = arith.constant 0 : i32
    %c0_i32_0 = arith.constant 0 : i32
    %c0_i32_1 = arith.constant 0 : i32
    return %c0_i32, %c0_i32_0 : i32, i32
  }
  func.func @transform_4(%arg0: i32) -> (i32, i32, i32, i32) {
    %c0_i32 = arith.constant 0 : i32
    %c0_i32_0 = arith.constant 0 : i32
    %c0_i32_1 = arith.constant 0 : i32
    %c0_i32_2 = arith.constant 0 : i32
    return %arg0, %c0_i32, %c0_i32_0, %c0_i32_1 : i32, i32, i32, i32
  }
  func.func @transform_5(%arg0: i32) -> (i32, i32) {
    %c0_i32 = arith.constant 0 : i32
    %c0_i32_0 = arith.constant 0 : i32
    %c0_i32_1 = arith.constant 0 : i32
    return %c0_i32, %c0_i32_0 : i32, i32
  }
  func.func @transform_6(%arg0: i32) -> (i32, i32) {
    %c0_i32 = arith.constant 0 : i32
    %c0_i32_0 = arith.constant 0 : i32
    %c0_i32_1 = arith.constant 0 : i32
    return %c0_i32, %c0_i32_0 : i32, i32
  }
}

module attributes {stable_mosaic.version = 11 : i64} {
  func.func @fused_conv_kernel(%arg0: i32, %arg1: memref<1x16x16x128xf32, #tpu.memory_space<vmem>>, %arg2: memref<1x128xf32, #tpu.memory_space<vmem>>, %arg3: memref<1x128xf32, #tpu.memory_space<vmem>>, %arg4: memref<1152x128xf32, #tpu.memory_space<vmem>>, %arg5: memref<1x16x16x128xf32, #tpu.memory_space<vmem>>, %arg6: memref<1x128xf32, #tpu.memory_space<vmem>>, %arg7: memref<1x128xf32, #tpu.memory_space<vmem>>, %arg8: memref<18x18x128xf32, #tpu.memory_space<vmem>>, %arg9: memref<256x1152xf32, #tpu.memory_space<vmem>>) attributes {dimension_semantics = [#tpu.dimension_semantics<arbitrary>], iteration_bounds = array<i64: 2>, scalar_prefetch = 0 : i64, scratch_operands = 2 : i64, tpu.core_type = #tpu.core_type<tc>, window_params = [{transform_indices = @transform_0, window_bounds = array<i64: 1, 16, 16, 128>}, {pipeline_mode = #tpu.pipeline_mode<synchronous>, transform_indices = @transform_1, window_bounds = array<i64: 1, 128>}, {pipeline_mode = #tpu.pipeline_mode<synchronous>, transform_indices = @transform_2, window_bounds = array<i64: 1, 128>}, {pipeline_mode = #tpu.pipeline_mode<synchronous>, transform_indices = @transform_3, window_bounds = array<i64: 1152, 128>}, {transform_indices = @transform_4, window_bounds = array<i64: 1, 16, 16, 128>}, {pipeline_mode = #tpu.pipeline_mode<synchronous>, transform_indices = @transform_5, window_bounds = array<i64: 1, 128>}, {pipeline_mode = #tpu.pipeline_mode<synchronous>, transform_indices = @transform_6, window_bounds = array<i64: 1, 128>}]} {
    %c0_i32 = arith.constant 0 : i32
    %0 = arith.cmpi eq, %arg0, %c0_i32 : i32
    %1 = arith.extui %0 : i1 to i32
    %c0_i32_0 = arith.constant 0 : i32
    %2 = arith.cmpi ne, %1, %c0_i32_0 : i32
    scf.if %2 {
      %cst_60 = arith.constant 0.000000e+00 : f32
      %51 = vector.broadcast %cst_60 : f32 to vector<1x128xf32>
      %c0_61 = arith.constant 0 : index
      %c0_62 = arith.constant 0 : index
      %52 = vector.load %arg6[%c0_61, %c0_62] : memref<1x128xf32, #tpu.memory_space<vmem>>, vector<1x128xf32>
      tpu.vector_store %arg6[%c0_61, %c0_62], %51 {strides = array<i32>} : memref<1x128xf32, #tpu.memory_space<vmem>>, vector<1x128xf32>,
      %cst_63 = arith.constant 0.000000e+00 : f32
      %53 = vector.broadcast %cst_63 : f32 to vector<1x128xf32>
      %c0_64 = arith.constant 0 : index
      %c0_65 = arith.constant 0 : index
      %54 = vector.load %arg7[%c0_64, %c0_65] : memref<1x128xf32, #tpu.memory_space<vmem>>, vector<1x128xf32>
      tpu.vector_store %arg7[%c0_64, %c0_65], %53 {strides = array<i32>} : memref<1x128xf32, #tpu.memory_space<vmem>>, vector<1x128xf32>,
      %cst_66 = arith.constant 0.000000e+00 : f32
      %55 = vector.broadcast %cst_66 : f32 to vector<18x18x128xf32>
      %c0_67 = arith.constant 0 : index
      %c0_68 = arith.constant 0 : index
      %c0_69 = arith.constant 0 : index
      %56 = vector.load %arg8[%c0_67, %c0_68, %c0_69] : memref<18x18x128xf32, #tpu.memory_space<vmem>>, vector<18x18x128xf32>
      tpu.vector_store %arg8[%c0_67, %c0_68, %c0_69], %55 {strides = array<i32>} : memref<18x18x128xf32, #tpu.memory_space<vmem>>, vector<18x18x128xf32>,
    } else {
    }
    %c0 = arith.constant 0 : index
    %c0_1 = arith.constant 0 : index
    %c0_2 = arith.constant 0 : index
    %c0_3 = arith.constant 0 : index
    %3 = vector.load %arg1[%c0, %c0_1, %c0_2, %c0_3] : memref<1x16x16x128xf32, #tpu.memory_space<vmem>>, vector<1x16x16x128xf32>
    %4 = vector.shape_cast %3 : vector<1x16x16x128xf32> to vector<16x16x128xf32>
    %c1 = arith.constant 1 : index
    %c1_4 = arith.constant 1 : index
    %c0_5 = arith.constant 0 : index
    %5 = vector.load %arg8[%c1, %c1_4, %c0_5] : memref<18x18x128xf32, #tpu.memory_space<vmem>>, vector<16x16x128xf32>
    tpu.vector_store %arg8[%c1, %c1_4, %c0_5], %4 {strides = array<i32>} : memref<18x18x128xf32, #tpu.memory_space<vmem>>, vector<16x16x128xf32>,
    %c0_6 = arith.constant 0 : index
    %c0_7 = arith.constant 0 : index
    %c0_8 = arith.constant 0 : index
    %6 = vector.load %arg8[%c0_6, %c0_7, %c0_8] : memref<18x18x128xf32, #tpu.memory_space<vmem>>, vector<16x16x128xf32>
    %7 = vector.shape_cast %6 : vector<16x16x128xf32> to vector<256x128xf32>
    %c0_9 = arith.constant 0 : index
    %c0_10 = arith.constant 0 : index
    %8 = vector.load %arg9[%c0_9, %c0_10] : memref<256x1152xf32, #tpu.memory_space<vmem>>, vector<256x128xf32>
    tpu.vector_store %arg9[%c0_9, %c0_10], %7 {strides = array<i32>} : memref<256x1152xf32, #tpu.memory_space<vmem>>, vector<256x128xf32>,
    %c0_11 = arith.constant 0 : index
    %c1_12 = arith.constant 1 : index
    %c0_13 = arith.constant 0 : index
    %9 = vector.load %arg8[%c0_11, %c1_12, %c0_13] : memref<18x18x128xf32, #tpu.memory_space<vmem>>, vector<16x16x128xf32>
    %10 = vector.shape_cast %9 : vector<16x16x128xf32> to vector<256x128xf32>
    %c0_14 = arith.constant 0 : index
    %c128 = arith.constant 128 : index
    %11 = vector.load %arg9[%c0_14, %c128] : memref<256x1152xf32, #tpu.memory_space<vmem>>, vector<256x128xf32>
    tpu.vector_store %arg9[%c0_14, %c128], %10 {strides = array<i32>} : memref<256x1152xf32, #tpu.memory_space<vmem>>, vector<256x128xf32>,
    %c0_15 = arith.constant 0 : index
    %c2 = arith.constant 2 : index
    %c0_16 = arith.constant 0 : index
    %12 = vector.load %arg8[%c0_15, %c2, %c0_16] : memref<18x18x128xf32, #tpu.memory_space<vmem>>, vector<16x16x128xf32>
    %13 = vector.shape_cast %12 : vector<16x16x128xf32> to vector<256x128xf32>
    %c0_17 = arith.constant 0 : index
    %c256 = arith.constant 256 : index
    %14 = vector.load %arg9[%c0_17, %c256] : memref<256x1152xf32, #tpu.memory_space<vmem>>, vector<256x128xf32>
    tpu.vector_store %arg9[%c0_17, %c256], %13 {strides = array<i32>} : memref<256x1152xf32, #tpu.memory_space<vmem>>, vector<256x128xf32>,
    %c1_18 = arith.constant 1 : index
    %c0_19 = arith.constant 0 : index
    %c0_20 = arith.constant 0 : index
    %15 = vector.load %arg8[%c1_18, %c0_19, %c0_20] : memref<18x18x128xf32, #tpu.memory_space<vmem>>, vector<16x16x128xf32>
    %16 = vector.shape_cast %15 : vector<16x16x128xf32> to vector<256x128xf32>
    %c0_21 = arith.constant 0 : index
    %c384 = arith.constant 384 : index
    %17 = vector.load %arg9[%c0_21, %c384] : memref<256x1152xf32, #tpu.memory_space<vmem>>, vector<256x128xf32>
    tpu.vector_store %arg9[%c0_21, %c384], %16 {strides = array<i32>} : memref<256x1152xf32, #tpu.memory_space<vmem>>, vector<256x128xf32>,
    %c1_22 = arith.constant 1 : index
    %c1_23 = arith.constant 1 : index
    %c0_24 = arith.constant 0 : index
    %18 = vector.load %arg8[%c1_22, %c1_23, %c0_24] : memref<18x18x128xf32, #tpu.memory_space<vmem>>, vector<16x16x128xf32>
    %19 = vector.shape_cast %18 : vector<16x16x128xf32> to vector<256x128xf32>
    %c0_25 = arith.constant 0 : index
    %c512 = arith.constant 512 : index
    %20 = vector.load %arg9[%c0_25, %c512] : memref<256x1152xf32, #tpu.memory_space<vmem>>, vector<256x128xf32>
    tpu.vector_store %arg9[%c0_25, %c512], %19 {strides = array<i32>} : memref<256x1152xf32, #tpu.memory_space<vmem>>, vector<256x128xf32>,
    %c1_26 = arith.constant 1 : index
    %c2_27 = arith.constant 2 : index
    %c0_28 = arith.constant 0 : index
    %21 = vector.load %arg8[%c1_26, %c2_27, %c0_28] : memref<18x18x128xf32, #tpu.memory_space<vmem>>, vector<16x16x128xf32>
    %22 = vector.shape_cast %21 : vector<16x16x128xf32> to vector<256x128xf32>
    %c0_29 = arith.constant 0 : index
    %c640 = arith.constant 640 : index
    %23 = vector.load %arg9[%c0_29, %c640] : memref<256x1152xf32, #tpu.memory_space<vmem>>, vector<256x128xf32>
    tpu.vector_store %arg9[%c0_29, %c640], %22 {strides = array<i32>} : memref<256x1152xf32, #tpu.memory_space<vmem>>, vector<256x128xf32>,
    %c2_30 = arith.constant 2 : index
    %c0_31 = arith.constant 0 : index
    %c0_32 = arith.constant 0 : index
    %24 = vector.load %arg8[%c2_30, %c0_31, %c0_32] : memref<18x18x128xf32, #tpu.memory_space<vmem>>, vector<16x16x128xf32>
    %25 = vector.shape_cast %24 : vector<16x16x128xf32> to vector<256x128xf32>
    %c0_33 = arith.constant 0 : index
    %c768 = arith.constant 768 : index
    %26 = vector.load %arg9[%c0_33, %c768] : memref<256x1152xf32, #tpu.memory_space<vmem>>, vector<256x128xf32>
    tpu.vector_store %arg9[%c0_33, %c768], %25 {strides = array<i32>} : memref<256x1152xf32, #tpu.memory_space<vmem>>, vector<256x128xf32>,
    %c2_34 = arith.constant 2 : index
    %c1_35 = arith.constant 1 : index
    %c0_36 = arith.constant 0 : index
    %27 = vector.load %arg8[%c2_34, %c1_35, %c0_36] : memref<18x18x128xf32, #tpu.memory_space<vmem>>, vector<16x16x128xf32>
    %28 = vector.shape_cast %27 : vector<16x16x128xf32> to vector<256x128xf32>
    %c0_37 = arith.constant 0 : index
    %c896 = arith.constant 896 : index
    %29 = vector.load %arg9[%c0_37, %c896] : memref<256x1152xf32, #tpu.memory_space<vmem>>, vector<256x128xf32>
    tpu.vector_store %arg9[%c0_37, %c896], %28 {strides = array<i32>} : memref<256x1152xf32, #tpu.memory_space<vmem>>, vector<256x128xf32>,
    %c2_38 = arith.constant 2 : index
    %c2_39 = arith.constant 2 : index
    %c0_40 = arith.constant 0 : index
    %30 = vector.load %arg8[%c2_38, %c2_39, %c0_40] : memref<18x18x128xf32, #tpu.memory_space<vmem>>, vector<16x16x128xf32>
    %31 = vector.shape_cast %30 : vector<16x16x128xf32> to vector<256x128xf32>
    %c0_41 = arith.constant 0 : index
    %c1024 = arith.constant 1024 : index
    %32 = vector.load %arg9[%c0_41, %c1024] : memref<256x1152xf32, #tpu.memory_space<vmem>>, vector<256x128xf32>
    tpu.vector_store %arg9[%c0_41, %c1024], %31 {strides = array<i32>} : memref<256x1152xf32, #tpu.memory_space<vmem>>, vector<256x128xf32>,
    %c0_42 = arith.constant 0 : index
    %c0_43 = arith.constant 0 : index
    %33 = vector.load %arg9[%c0_42, %c0_43] : memref<256x1152xf32, #tpu.memory_space<vmem>>, vector<256x1152xf32>
    %c0_44 = arith.constant 0 : index
    %c0_45 = arith.constant 0 : index
    %34 = vector.load %arg4[%c0_44, %c0_45] : memref<1152x128xf32, #tpu.memory_space<vmem>>, vector<1152x128xf32>
    %cst = arith.constant dense<0.000000e+00> : vector<256x128xf32>
    %35 = tpu.matmul %33, %34, %cst {dimension_numbers = #tpu.dot_dimension_numbers<[1], [0], [0], [1], [0, 0, 1, 1], [], []>} : vector<256x1152xf32>, vector<1152x128xf32>, vector<256x128xf32> -> vector<256x128xf32>
    %36 = vector.shape_cast %35 : vector<256x128xf32> to vector<16x16x128xf32>
    %c0_46 = arith.constant 0 : index
    %c0_47 = arith.constant 0 : index
    %c0_48 = arith.constant 0 : index
    %c0_49 = arith.constant 0 : index
    %37 = vector.load %arg5[%c0_46, %c0_47, %c0_48, %c0_49] : memref<1x16x16x128xf32, #tpu.memory_space<vmem>>, vector<1x16x16x128xf32>
    %38 = vector.shape_cast %37 : vector<1x16x16x128xf32> to vector<16x16x128xf32>
    %39 = vector.shape_cast %36 : vector<16x16x128xf32> to vector<1x16x16x128xf32>
    tpu.vector_store %arg5[%c0_46, %c0_47, %c0_48, %c0_49], %39 {strides = array<i32>} : memref<1x16x16x128xf32, #tpu.memory_space<vmem>>, vector<1x16x16x128xf32>,
    %c0_50 = arith.constant 0 : index
    %c0_51 = arith.constant 0 : index
    %40 = vector.load %arg6[%c0_50, %c0_51] : memref<1x128xf32, #tpu.memory_space<vmem>>, vector<1x128xf32>
    %cst_52 = arith.constant dense<0.000000e+00> : vector<128xf32>
    %41 = vector.multi_reduction <add>, %35, %cst_52 [0] : vector<256x128xf32> to vector<128xf32>
    %42 = vector.shape_cast %41 : vector<128xf32> to vector<1x128xf32>
    %43 = arith.addf %40, %42 : vector<1x128xf32>
    %c0_53 = arith.constant 0 : index
    %c0_54 = arith.constant 0 : index
    %44 = vector.load %arg6[%c0_53, %c0_54] : memref<1x128xf32, #tpu.memory_space<vmem>>, vector<1x128xf32>
    tpu.vector_store %arg6[%c0_53, %c0_54], %43 {strides = array<i32>} : memref<1x128xf32, #tpu.memory_space<vmem>>, vector<1x128xf32>,
    %c0_55 = arith.constant 0 : index
    %c0_56 = arith.constant 0 : index
    %45 = vector.load %arg7[%c0_55, %c0_56] : memref<1x128xf32, #tpu.memory_space<vmem>>, vector<1x128xf32>
    %46 = arith.mulf %35, %35 : vector<256x128xf32>
    %cst_57 = arith.constant dense<0.000000e+00> : vector<128xf32>
    %47 = vector.multi_reduction <add>, %46, %cst_57 [0] : vector<256x128xf32> to vector<128xf32>
    %48 = vector.shape_cast %47 : vector<128xf32> to vector<1x128xf32>
    %49 = arith.addf %45, %48 : vector<1x128xf32>
    %c0_58 = arith.constant 0 : index
    %c0_59 = arith.constant 0 : index
    %50 = vector.load %arg7[%c0_58, %c0_59] : memref<1x128xf32, #tpu.memory_space<vmem>>, vector<1x128xf32>
    tpu.vector_store %arg7[%c0_58, %c0_59], %49 {strides = array<i32>} : memref<1x128xf32, #tpu.memory_space<vmem>>, vector<1x128xf32>,
    return
  }
  func.func @transform_0(%arg0: i32) -> (i32, i32, i32, i32) {
    %c0_i32 = arith.constant 0 : i32
    %c0_i32_0 = arith.constant 0 : i32
    %c0_i32_1 = arith.constant 0 : i32
    %c0_i32_2 = arith.constant 0 : i32
    return %arg0, %c0_i32, %c0_i32_0, %c0_i32_1 : i32, i32, i32, i32
  }
  func.func @transform_1(%arg0: i32) -> (i32, i32) {
    %c0_i32 = arith.constant 0 : i32
    %c0_i32_0 = arith.constant 0 : i32
    %c0_i32_1 = arith.constant 0 : i32
    return %c0_i32, %c0_i32_0 : i32, i32
  }
  func.func @transform_2(%arg0: i32) -> (i32, i32) {
    %c0_i32 = arith.constant 0 : i32
    %c0_i32_0 = arith.constant 0 : i32
    %c0_i32_1 = arith.constant 0 : i32
    return %c0_i32, %c0_i32_0 : i32, i32
  }
  func.func @transform_3(%arg0: i32) -> (i32, i32) {
    %c0_i32 = arith.constant 0 : i32
    %c0_i32_0 = arith.constant 0 : i32
    %c0_i32_1 = arith.constant 0 : i32
    return %c0_i32, %c0_i32_0 : i32, i32
  }
  func.func @transform_4(%arg0: i32) -> (i32, i32, i32, i32) {
    %c0_i32 = arith.constant 0 : i32
    %c0_i32_0 = arith.constant 0 : i32
    %c0_i32_1 = arith.constant 0 : i32
    %c0_i32_2 = arith.constant 0 : i32
    return %arg0, %c0_i32, %c0_i32_0, %c0_i32_1 : i32, i32, i32, i32
  }
  func.func @transform_5(%arg0: i32) -> (i32, i32) {
    %c0_i32 = arith.constant 0 : i32
    %c0_i32_0 = arith.constant 0 : i32
    %c0_i32_1 = arith.constant 0 : i32
    return %c0_i32, %c0_i32_0 : i32, i32
  }
  func.func @transform_6(%arg0: i32) -> (i32, i32) {
    %c0_i32 = arith.constant 0 : i32
    %c0_i32_0 = arith.constant 0 : i32
    %c0_i32_1 = arith.constant 0 : i32
    return %c0_i32, %c0_i32_0 : i32, i32
  }
}

module attributes {stable_mosaic.version = 11 : i64} {
  func.func @bn_relu_kernel(%arg0: i32, %arg1: memref<1x16x16x128xf32, #tpu.memory_space<vmem>>, %arg2: memref<1x128xf32, #tpu.memory_space<vmem>>, %arg3: memref<1x128xf32, #tpu.memory_space<vmem>>, %arg4: memref<1x16x16x128xf32, #tpu.memory_space<vmem>>) attributes {dimension_semantics = [#tpu.dimension_semantics<parallel>], iteration_bounds = array<i64: 2>, scalar_prefetch = 0 : i64, scratch_operands = 0 : i64, tpu.core_type = #tpu.core_type<tc>, window_params = [{transform_indices = @transform_0, window_bounds = array<i64: 1, 16, 16, 128>}, {pipeline_mode = #tpu.pipeline_mode<synchronous>, transform_indices = @transform_1, window_bounds = array<i64: 1, 128>}, {pipeline_mode = #tpu.pipeline_mode<synchronous>, transform_indices = @transform_2, window_bounds = array<i64: 1, 128>}, {transform_indices = @transform_3, window_bounds = array<i64: 1, 16, 16, 128>}]} {
    %c0 = arith.constant 0 : index
    %c0_0 = arith.constant 0 : index
    %c0_1 = arith.constant 0 : index
    %c0_2 = arith.constant 0 : index
    %0 = vector.load %arg1[%c0, %c0_0, %c0_1, %c0_2] : memref<1x16x16x128xf32, #tpu.memory_space<vmem>>, vector<1x16x16x128xf32>
    %c0_3 = arith.constant 0 : index
    %c0_4 = arith.constant 0 : index
    %1 = vector.load %arg2[%c0_3, %c0_4] : memref<1x128xf32, #tpu.memory_space<vmem>>, vector<1x128xf32>
    %2 = vector.shape_cast %1 : vector<1x128xf32> to vector<1x1x1x128xf32>
    %3 = vector.broadcast %2 : vector<1x1x1x128xf32> to vector<1x16x16x128xf32>
    %4 = arith.mulf %0, %3 : vector<1x16x16x128xf32>
    %c0_5 = arith.constant 0 : index
    %c0_6 = arith.constant 0 : index
    %5 = vector.load %arg3[%c0_5, %c0_6] : memref<1x128xf32, #tpu.memory_space<vmem>>, vector<1x128xf32>
    %6 = vector.shape_cast %5 : vector<1x128xf32> to vector<1x1x1x128xf32>
    %7 = vector.broadcast %6 : vector<1x1x1x128xf32> to vector<1x16x16x128xf32>
    %8 = arith.addf %4, %7 : vector<1x16x16x128xf32>
    %cst = arith.constant 0.000000e+00 : f32
    %9 = vector.broadcast %cst : f32 to vector<1x16x16x128xf32>
    %10 = arith.maximumf %8, %9 : vector<1x16x16x128xf32>
    %c0_7 = arith.constant 0 : index
    %c0_8 = arith.constant 0 : index
    %c0_9 = arith.constant 0 : index
    %c0_10 = arith.constant 0 : index
    %11 = vector.load %arg4[%c0_7, %c0_8, %c0_9, %c0_10] : memref<1x16x16x128xf32, #tpu.memory_space<vmem>>, vector<1x16x16x128xf32>
    tpu.vector_store %arg4[%c0_7, %c0_8, %c0_9, %c0_10], %10 {strides = array<i32>} : memref<1x16x16x128xf32, #tpu.memory_space<vmem>>, vector<1x16x16x128xf32>,
    return
  }
  func.func @transform_0(%arg0: i32) -> (i32, i32, i32, i32) {
    %c0_i32 = arith.constant 0 : i32
    %c0_i32_0 = arith.constant 0 : i32
    %c0_i32_1 = arith.constant 0 : i32
    %c0_i32_2 = arith.constant 0 : i32
    return %arg0, %c0_i32, %c0_i32_0, %c0_i32_1 : i32, i32, i32, i32
  }
  func.func @transform_1(%arg0: i32) -> (i32, i32) {
    %c0_i32 = arith.constant 0 : i32
    %c0_i32_0 = arith.constant 0 : i32
    %c0_i32_1 = arith.constant 0 : i32
    return %c0_i32, %c0_i32_0 : i32, i32
  }
  func.func @transform_2(%arg0: i32) -> (i32, i32) {
    %c0_i32 = arith.constant 0 : i32
    %c0_i32_0 = arith.constant 0 : i32
    %c0_i32_1 = arith.constant 0 : i32
    return %c0_i32, %c0_i32_0 : i32, i32
  }
  func.func @transform_3(%arg0: i32) -> (i32, i32, i32, i32) {
    %c0_i32 = arith.constant 0 : i32
    %c0_i32_0 = arith.constant 0 : i32
    %c0_i32_1 = arith.constant 0 : i32
    %c0_i32_2 = arith.constant 0 : i32
    return %arg0, %c0_i32, %c0_i32_0, %c0_i32_1 : i32, i32, i32, i32
  }
}

</mosaic_0001>

<bundles_post_ra>
// kernel: unet_down.5
= control target key start
LH: loop header
LB: loop body
LE: loop exit
PB: predicated region body
PF: predicated region fallthrough
CT: control target
= control target key end

     0   :  { %s451_s12 = smov 0   ;;  %s610_s0 = inlined_call_operand.vmem [shape: f32[2,16,16,128], index: 0, kind: input, shape index: {}]   ;;  %s611_s1 = inlined_call_operand.vmem [shape: f32[1,128], index: 1, kind: input, shape index: {}]   ;;  %s612_s2 = inlined_call_operand.vmem [shape: f32[1,128], index: 2, kind: input, shape index: {}]   ;;  %s613_s3 = inlined_call_operand.vmem [shape: f32[2,16,16,128], index: 3, kind: output, shape index: {}]  }
   0x1 LB: > { %s400_s13 = sadd.s32 4294967295, %s429_s12   ;;  %p404_p0 = scmp.ge.s32.totalorder %s429_s12, 1  ;;  %s429_s12 = sphi %s451_s12, %s13_s12  }
   0x2   : > { %p137_p1 = scmp.lt.s32.totalorder %s429_s12, 3 }
   0x4   : > { %p138_p2 = pnand %p404_p0, %p137_p1 }
   0x5   : > { %p161_p3 = scmp.lt.s32.totalorder (!%p138_p2), %s400_s13, 1 }
   0x6   : > { %141 = sbr.rel (%p138_p2) target bundleno = 44 (0x2c), region = 32 }
   0xb   : > { %s615_s13 = smov (!%p161_p3, %s400_s13), 1  ;;  %v462_v0 = vld [vmem:[%s611_s1] ss:$0 sm:$0xff] }
   0xc   : > { %s413_s14 = sshll.u32 %s615_s13, 8  ;;  %v472_v1 = vld [vmem:[%s612_s2] ss:$0 sm:$0xff] }
   0xd   : > { %s467_s19 = scalar_lea.vmem %s610_s0, %s413_s14  ;;  %s495_s24 = scalar_lea.vmem %s613_s3, %s413_s14 }
   0xe   : > { %v171_v2 = vld [vmem:[%s467_s19] sm:$0xff]  ;;  %v172_v3 = vld [vmem:[%s467_s19 + $0x8] sm:$0xff]  ;;  %v173_v4 = vld [vmem:[%s467_s19 + $0x10] sm:$0xff] }
   0xf   : > { %v210_v5 = vmul.f32 %v462_v0, %v171_v2  ;;  %v211_v6 = vmul.f32 %v462_v0, %v172_v3  ;;  %v212_v7 = vmul.f32 %v462_v0, %v173_v4  ;;  %v174_v8 = vld [vmem:[%s467_s19 + $0x18] sm:$0xff]  ;;  %v175_v9 = vld [vmem:[%s467_s19 + $0x20] sm:$0xff]  ;;  %v176_v10 = vld [vmem:[%s467_s19 + $0x28] sm:$0xff] }
  0x10   : > { %v213_v11 = vmul.f32 %v462_v0, %v174_v8  ;;  %v214_v12 = vmul.f32 %v462_v0, %v175_v9  ;;  %v215_v13 = vmul.f32 %v462_v0, %v176_v10  ;;  %v177_v14 = vld [vmem:[%s467_s19 + $0x30] sm:$0xff]  ;;  %v178_v15 = vld [vmem:[%s467_s19 + $0x38] sm:$0xff]  ;;  %v179_v24 = vld [vmem:[%s467_s19 + $0x40] sm:$0xff] }
  0x11   : > { %v249_v16 = vadd.f32 %v472_v1, %v210_v5  ;;  %v250_v17 = vadd.f32 %v472_v1, %v211_v6  ;;  %v251_v18 = vadd.f32 %v472_v1, %v212_v7  ;;  %v216_v19 = vmul.f32 %v462_v0, %v177_v14  ;;  %v180_v25 = vld [vmem:[%s467_s19 + $0x48] sm:$0xff]  ;;  %v181_v26 = vld [vmem:[%s467_s19 + $0x50] sm:$0xff]  ;;  %v182_v31 = vld [vmem:[%s467_s19 + $0x58] sm:$0xff] }
  0x12   : > { %v252_v20 = vadd.f32 %v472_v1, %v213_v11  ;;  %v253_v21 = vadd.f32 %v472_v1, %v214_v12  ;;  %v254_v22 = vadd.f32 %v472_v1, %v215_v13  ;;  %v217_v23 = vmul.f32 %v462_v0, %v178_v15  ;;  %v183_v32 = vld [vmem:[%s467_s19 + $0x60] sm:$0xff]  ;;  %v184_v33 = vld [vmem:[%s467_s19 + $0x68] sm:$0xff]  ;;  %v185_v38 = vld [vmem:[%s467_s19 + $0x70] sm:$0xff] }
  0x13   : > { %v281_v27 = vmax.f32 %v249_v16, 0.0  ;;  %v282_v28 = vmax.f32 %v250_v17, 0.0  ;;  %v283_v29 = vmax.f32 %v251_v18, 0.0  ;;  %v255_v30 = vadd.f32 %v472_v1, %v216_v19  ;;  %v186_v43 = vld [vmem:[%s467_s19 + $0x78] sm:$0xff]  ;;  %v187_v56 = vld [vmem:[%s467_s19 + $0x80] sm:$0xff]  ;;  %v188_v57 = vld [vmem:[%s467_s19 + $0x88] sm:$0xff] }
  0x14   : > { %v284_v34 = vmax.f32 %v252_v20, 0.0  ;;  %v285_v35 = vmax.f32 %v253_v21, 0.0  ;;  %v286_v36 = vmax.f32 %v254_v22, 0.0  ;;  %v256_v37 = vadd.f32 %v472_v1, %v217_v23  ;;  %v189_v58 = vld [vmem:[%s467_s19 + $0x90] sm:$0xff]  ;;  %v190_v63 = vld [vmem:[%s467_s19 + $0x98] sm:$0xff]  ;;  %v191_v2 = vld [vmem:[%s467_s19 + $0xa0] sm:$0xff] }
  0x15   : > { %313 = vst [vmem:[%s495_s24] sm:$0xff] %v281_v27  ;;  %314 = vst [vmem:[%s495_s24 + $0x8] sm:$0xff] %v282_v28  ;;  %v287_v39 = vmax.f32 %v255_v30, 0.0  ;;  %v218_v40 = vmul.f32 %v462_v0, %v179_v24  ;;  %v219_v41 = vmul.f32 %v462_v0, %v180_v25  ;;  %v220_v42 = vmul.f32 %v462_v0, %v181_v26  ;;  %v192_v3 = vld [vmem:[%s467_s19 + $0xa8] sm:$0xff]  ;;  %v193_v8 = vld [vmem:[%s467_s19 + $0xb0] sm:$0xff] }
  0x16   : > { %315 = vst [vmem:[%s495_s24 + $0x10] sm:$0xff] %v283_v29  ;;  %316 = vst [vmem:[%s495_s24 + $0x18] sm:$0xff] %v284_v34  ;;  %v288_v44 = vmax.f32 %v256_v37, 0.0  ;;  %v221_v45 = vmul.f32 %v462_v0, %v182_v31  ;;  %v222_v46 = vmul.f32 %v462_v0, %v183_v32  ;;  %v223_v47 = vmul.f32 %v462_v0, %v184_v33  ;;  %v194_v13 = vld [vmem:[%s467_s19 + $0xb8] sm:$0xff]  ;;  %v195_v26 = vld [vmem:[%s467_s19 + $0xc0] sm:$0xff] }
  0x17   : > { %317 = vst [vmem:[%s495_s24 + $0x20] sm:$0xff] %v285_v35  ;;  %318 = vst [vmem:[%s495_s24 + $0x28] sm:$0xff] %v286_v36  ;;  %v257_v48 = vadd.f32 %v472_v1, %v218_v40  ;;  %v258_v49 = vadd.f32 %v472_v1, %v219_v41  ;;  %v259_v50 = vadd.f32 %v472_v1, %v220_v42  ;;  %v196_v27 = vld [vmem:[%s467_s19 + $0xc8] sm:$0xff]  ;;  %v197_v28 = vld [vmem:[%s467_s19 + $0xd0] sm:$0xff] }
  0x18   : > { %319 = vst [vmem:[%s495_s24 + $0x30] sm:$0xff] %v287_v39  ;;  %v224_v51 = vmul.f32 %v462_v0, %v185_v38  ;;  %320 = vst [vmem:[%s495_s24 + $0x38] sm:$0xff] %v288_v44  ;;  %v260_v52 = vadd.f32 %v472_v1, %v221_v45  ;;  %v261_v53 = vadd.f32 %v472_v1, %v222_v46  ;;  %v198_v33 = vld [vmem:[%s467_s19 + $0xd8] sm:$0xff]  ;;  %v199_v34 = vld [vmem:[%s467_s19 + $0xe0] sm:$0xff] }
  0x19   : > { %v262_v54 = vadd.f32 %v472_v1, %v223_v47  ;;  %v225_v55 = vmul.f32 %v462_v0, %v186_v43  ;;  %v289_v59 = vmax.f32 %v257_v48, 0.0  ;;  %v290_v60 = vmax.f32 %v258_v49, 0.0  ;;  %v200_v35 = vld [vmem:[%s467_s19 + $0xe8] sm:$0xff]  ;;  %v201_v40 = vld [vmem:[%s467_s19 + $0xf0] sm:$0xff]  ;;  %v202_v45 = vld [vmem:[%s467_s19 + $0xf8] sm:$0xff] }
  0x1a   : > { %v291_v61 = vmax.f32 %v259_v50, 0.0  ;;  %v263_v62 = vadd.f32 %v472_v1, %v224_v51  ;;  %v292_v4 = vmax.f32 %v260_v52, 0.0  ;;  %v293_v5 = vmax.f32 %v261_v53, 0.0 }
  0x1b   : > { %v294_v6 = vmax.f32 %v262_v54, 0.0  ;;  %v264_v7 = vadd.f32 %v472_v1, %v225_v55  ;;  %321 = vst [vmem:[%s495_s24 + $0x40] sm:$0xff] %v289_v59  ;;  %322 = vst [vmem:[%s495_s24 + $0x48] sm:$0xff] %v290_v60  ;;  %v226_v10 = vmul.f32 %v462_v0, %v187_v56  ;;  %v227_v11 = vmul.f32 %v462_v0, %v188_v57 }
  0x1c   : > { %323 = vst [vmem:[%s495_s24 + $0x50] sm:$0xff] %v291_v61  ;;  %v295_v9 = vmax.f32 %v263_v62, 0.0  ;;  %v228_v12 = vmul.f32 %v462_v0, %v189_v58  ;;  %324 = vst [vmem:[%s495_s24 + $0x58] sm:$0xff] %v292_v4  ;;  %v229_v15 = vmul.f32 %v462_v0, %v190_v63  ;;  %v230_v16 = vmul.f32 %v462_v0, %v191_v2 }
  0x1d   : > { %325 = vst [vmem:[%s495_s24 + $0x60] sm:$0xff] %v293_v5  ;;  %326 = vst [vmem:[%s495_s24 + $0x68] sm:$0xff] %v294_v6  ;;  %v296_v14 = vmax.f32 %v264_v7, 0.0  ;;  %v231_v17 = vmul.f32 %v462_v0, %v192_v3  ;;  %v265_v18 = vadd.f32 %v472_v1, %v226_v10  ;;  %v266_v19 = vadd.f32 %v472_v1, %v227_v11 }
  0x1e   : > { %327 = vst [vmem:[%s495_s24 + $0x70] sm:$0xff] %v295_v9  ;;  %v267_v20 = vadd.f32 %v472_v1, %v228_v12  ;;  %v232_v21 = vmul.f32 %v462_v0, %v193_v8  ;;  %v268_v22 = vadd.f32 %v472_v1, %v229_v15  ;;  %v269_v23 = vadd.f32 %v472_v1, %v230_v16 }
  0x1f   : > { %328 = vst [vmem:[%s495_s24 + $0x78] sm:$0xff] %v296_v14  ;;  %v270_v24 = vadd.f32 %v472_v1, %v231_v17  ;;  %v233_v25 = vmul.f32 %v462_v0, %v194_v13  ;;  %v297_v29 = vmax.f32 %v265_v18, 0.0  ;;  %v298_v30 = vmax.f32 %v266_v19, 0.0 }
  0x20   : > { %v299_v31 = vmax.f32 %v267_v20, 0.0  ;;  %v271_v32 = vadd.f32 %v472_v1, %v232_v21  ;;  %v300_v36 = vmax.f32 %v268_v22, 0.0  ;;  %v301_v37 = vmax.f32 %v269_v23, 0.0 }
  0x21   : > { %v302_v38 = vmax.f32 %v270_v24, 0.0  ;;  %v272_v39 = vadd.f32 %v472_v1, %v233_v25  ;;  %329 = vst [vmem:[%s495_s24 + $0x80] sm:$0xff] %v297_v29  ;;  %330 = vst [vmem:[%s495_s24 + $0x88] sm:$0xff] %v298_v30  ;;  %v234_v42 = vmul.f32 %v462_v0, %v195_v26  ;;  %v235_v43 = vmul.f32 %v462_v0, %v196_v27 }
  0x22   : > { %331 = vst [vmem:[%s495_s24 + $0x90] sm:$0xff] %v299_v31  ;;  %v303_v41 = vmax.f32 %v271_v32, 0.0  ;;  %v236_v44 = vmul.f32 %v462_v0, %v197_v28  ;;  %332 = vst [vmem:[%s495_s24 + $0x98] sm:$0xff] %v300_v36  ;;  %v237_v47 = vmul.f32 %v462_v0, %v198_v33  ;;  %v238_v48 = vmul.f32 %v462_v0, %v199_v34 }
  0x23   : > { %333 = vst [vmem:[%s495_s24 + $0xa0] sm:$0xff] %v301_v37  ;;  %334 = vst [vmem:[%s495_s24 + $0xa8] sm:$0xff] %v302_v38  ;;  %v304_v46 = vmax.f32 %v272_v39, 0.0  ;;  %v239_v49 = vmul.f32 %v462_v0, %v200_v35  ;;  %v273_v50 = vadd.f32 %v472_v1, %v234_v42  ;;  %v274_v51 = vadd.f32 %v472_v1, %v235_v43 }
  0x24   : > { %335 = vst [vmem:[%s495_s24 + $0xb0] sm:$0xff] %v303_v41  ;;  %v275_v52 = vadd.f32 %v472_v1, %v236_v44  ;;  %v240_v53 = vmul.f32 %v462_v0, %v201_v40  ;;  %v276_v54 = vadd.f32 %v472_v1, %v237_v47  ;;  %v277_v55 = vadd.f32 %v472_v1, %v238_v48 }
  0x25   : > { %336 = vst [vmem:[%s495_s24 + $0xb8] sm:$0xff] %v304_v46  ;;  %v278_v56 = vadd.f32 %v472_v1, %v239_v49  ;;  %v241_v57 = vmul.f32 %v462_v0, %v202_v45  ;;  %v305_v58 = vmax.f32 %v273_v50, 0.0  ;;  %v306_v59 = vmax.f32 %v274_v51, 0.0 }
  0x26   : > { %v307_v60 = vmax.f32 %v275_v52, 0.0  ;;  %v279_v61 = vadd.f32 %v472_v1, %v240_v53  ;;  %v308_v62 = vmax.f32 %v276_v54, 0.0  ;;  %v309_v63 = vmax.f32 %v277_v55, 0.0 }
  0x27   : > { %v310_v2 = vmax.f32 %v278_v56, 0.0  ;;  %v280_v3 = vadd.f32 %v472_v1, %v241_v57  ;;  %337 = vst [vmem:[%s495_s24 + $0xc0] sm:$0xff] %v305_v58  ;;  %338 = vst [vmem:[%s495_s24 + $0xc8] sm:$0xff] %v306_v59 }
  0x28   : > { %339 = vst [vmem:[%s495_s24 + $0xd0] sm:$0xff] %v307_v60  ;;  %v311_v4 = vmax.f32 %v279_v61, 0.0  ;;  %340 = vst [vmem:[%s495_s24 + $0xd8] sm:$0xff] %v308_v62 }
  0x29   : > { %341 = vst [vmem:[%s495_s24 + $0xe0] sm:$0xff] %v309_v63  ;;  %342 = vst [vmem:[%s495_s24 + $0xe8] sm:$0xff] %v310_v2  ;;  %v312_v0 = vmax.f32 %v280_v3, 0.0 }
  0x2a   : > { %343 = vst [vmem:[%s495_s24 + $0xf0] sm:$0xff] %v311_v4 }
  0x2b   : > { %344 = vst [vmem:[%s495_s24 + $0xf8] sm:$0xff] %v312_v0 }
  0x2c PF: > { %s13_s12 = sadd.s32 1, %s429_s12  }
  0x2d   : > { %p10_p4 = scmp.ge.s32.totalorder %s13_s12, 4  }
  0x2f   :  { %12 = sbr.rel (!%p10_p4) target bundleno = 1 (0x1), region = 62 }

// kernel: unet_down.4
= control target key start
LH: loop header
LB: loop body
LE: loop exit
PB: predicated region body
PF: predicated region fallthrough
CT: control target
= control target key end

     0   :  { %s3079_s21 = smov 0   ;;  %s4566_s0 = inlined_call_operand.vmem [shape: f32[2,16,16,128], index: 0, kind: input, shape index: {}]   ;;  %s4567_s1 = inlined_call_operand.vmem [shape: f32[1,128], index: 1, kind: input, shape index: {}]   ;;  %s4568_s2 = inlined_call_operand.vmem [shape: f32[1,128], index: 2, kind: input, shape index: {}]   ;;  %s4569_s3 = inlined_call_operand.vmem [shape: f32[1152,128], index: 3, kind: input, shape index: {}]   ;;  %s4570_s4 = inlined_call_operand.vmem [shape: f32[2,16,16,128], index: 4, kind: output, shape index: {0}]   ;;  %s4571_s5 = inlined_call_operand.vmem [shape: f32[1,128], index: 5, kind: output, shape index: {1}]   ;;  %s4572_s6 = inlined_call_operand.vmem [shape: f32[1,128], index: 6, kind: output, shape index: {2}]  }
   0x1 LB: > { %s2827_s22 = sadd.s32 4294967295, %s3040_s21   ;;  %p2831_p0 = scmp.ge.s32.totalorder %s3040_s21, 1  ;;  %s3040_s21 = sphi %s3079_s21, %s17_s21  }
   0x2   : > { %p207_p1 = scmp.lt.s32.totalorder %s3040_s21, 3 }
   0x4   : > { %p208_p2 = pnand %p2831_p0, %p207_p1 }
   0x6   : > { %211 = sbr.rel (%p208_p2) target bundleno = 648 (0x288), region = 36 }
   0xb   : > { %p237_p3 = scmp.lt.s32.totalorder %s2827_s22, 1  ;;  %p2836_p4 = scmp.ne.s32.totalorder %s2827_s22, 0 }
   0xd   : > { %s238_s23 = scalar_select %p237_p3, %s2827_s22, 1 }
   0xe   : > { %250 = sbr.rel (%p2836_p4) target bundleno = 48 (0x30), region = 40 }
   0xf   : > { %s2841_s24 = sshll.u32 %s238_s23, 8 }
  0x10   : > { %s3090_s27 = scalar_lea.vmem %s4566_s0, %s2841_s24  ;;  %s3095_s30 = scalar_lea.vmem %s4570_s4, %s2841_s24 }
  0x13   : > { %v3042_v0 = vmov 0.0  }
  0x14   : > { %251 = vst [vmem:[%s4571_s5] sm:$0x1] %v3042_v0  ;;  %252 = vst [vmem:[%s4572_s6] sm:$0x1] %v3042_v0 }
  0x15   : > { %253 = vst [vmem:[#allocation2] sm:$0xff] %v3042_v0  ;;  %254 = vst [vmem:[#allocation2 + $0x8] sm:$0xff] %v3042_v0 }
  0x16   : > { %255 = vst [vmem:[#allocation2 + $0x10] sm:$0x3] %v3042_v0  ;;  %256 = vst [vmem:[#allocation2 + $0x18] sm:$0xff] %v3042_v0 }
  0x17   : > { %257 = vst [vmem:[#allocation2 + $0x20] sm:$0xff] %v3042_v0  ;;  %258 = vst [vmem:[#allocation2 + $0x28] sm:$0x3] %v3042_v0 }
  0x18   : > { %259 = vst [vmem:[#allocation2 + $0x30] sm:$0xff] %v3042_v0  ;;  %260 = vst [vmem:[#allocation2 + $0x38] sm:$0xff] %v3042_v0 }
  0x19   : > { %261 = vst [vmem:[#allocation2 + $0x40] sm:$0x3] %v3042_v0  ;;  %262 = vst [vmem:[#allocation2 + $0x48] sm:$0xff] %v3042_v0 }
  0x1a   : > { %263 = vst [vmem:[#allocation2 + $0x50] sm:$0xff] %v3042_v0  ;;  %264 = vst [vmem:[#allocation2 + $0x58] sm:$0x3] %v3042_v0 }
  0x1b   : > { %265 = vst [vmem:[#allocation2 + $0x60] sm:$0xff] %v3042_v0  ;;  %266 = vst [vmem:[#allocation2 + $0x68] sm:$0xff] %v3042_v0 }
  0x1c   : > { %267 = vst [vmem:[#allocation2 + $0x70] sm:$0x3] %v3042_v0  ;;  %268 = vst [vmem:[#allocation2 + $0x78] sm:$0xff] %v3042_v0 }
  0x1d   : > { %269 = vst [vmem:[#allocation2 + $0x80] sm:$0xff] %v3042_v0  ;;  %270 = vst [vmem:[#allocation2 + $0x88] sm:$0x3] %v3042_v0 }
  0x1e   : > { %271 = vst [vmem:[#allocation2 + $0x90] sm:$0xff] %v3042_v0  ;;  %272 = vst [vmem:[#allocation2 + $0x98] sm:$0xff] %v3042_v0 }
  0x1f   : > { %273 = vst [vmem:[#allocation2 + $0xa0] sm:$0x3] %v3042_v0  ;;  %274 = vst [vmem:[#allocation2 + $0xa8] sm:$0xff] %v3042_v0 }
  0x20   : > { %275 = vst [vmem:[#allocation2 + $0xb0] sm:$0xff] %v3042_v0  ;;  %276 = vst [vmem:[#allocation2 + $0xb8] sm:$0x3] %v3042_v0 }
  0x21   : > { %277 = vst [vmem:[#allocation2 + $0xc0] sm:$0xff] %v3042_v0  ;;  %278 = vst [vmem:[#allocation2 + $0xc8] sm:$0xff] %v3042_v0 }
  0x22   : > { %279 = vst [vmem:[#allocation2 + $0xd0] sm:$0x3] %v3042_v0  ;;  %280 = vst [vmem:[#allocation2 + $0xd8] sm:$0xff] %v3042_v0 }
  0x23   : > { %281 = vst [vmem:[#allocation2 + $0xe0] sm:$0xff] %v3042_v0  ;;  %282 = vst [vmem:[#allocation2 + $0xe8] sm:$0x3] %v3042_v0 }
  0x24   : > { %283 = vst [vmem:[#allocation2 + $0xf0] sm:$0xff] %v3042_v0  ;;  %284 = vst [vmem:[#allocation2 + $0xf8] sm:$0xff] %v3042_v0 }
  0x25   : > { %285 = vst [vmem:[#allocation2 + $0x100] sm:$0x3] %v3042_v0  ;;  %286 = vst [vmem:[#allocation2 + $0x108] sm:$0xff] %v3042_v0 }
  0x26   : > { %287 = vst [vmem:[#allocation2 + $0x110] sm:$0xff] %v3042_v0  ;;  %288 = vst [vmem:[#allocation2 + $0x118] sm:$0x3] %v3042_v0 }
  0x27   : > { %289 = vst [vmem:[#allocation2 + $0x120] sm:$0xff] %v3042_v0  ;;  %290 = vst [vmem:[#allocation2 + $0x128] sm:$0xff] %v3042_v0 }
  0x28   : > { %291 = vst [vmem:[#allocation2 + $0x130] sm:$0x3] %v3042_v0  ;;  %292 = vst [vmem:[#allocation2 + $0x138] sm:$0xff] %v3042_v0 }
  0x29   : > { %293 = vst [vmem:[#allocation2 + $0x140] sm:$0xff] %v3042_v0  ;;  %294 = vst [vmem:[#allocation2 + $0x148] sm:$0x3] %v3042_v0 }
  0x2a   : > { %295 = vst [vmem:[#allocation2 + $0x150] sm:$0xff] %v3042_v0  ;;  %296 = vst [vmem:[#allocation2 + $0x158] sm:$0xff] %v3042_v0 }
  0x2b   : > { %297 = vst [vmem:[#allocation2 + $0x160] sm:$0x3] %v3042_v0  ;;  %298 = vst [vmem:[#allocation2 + $0x168] sm:$0xff] %v3042_v0 }
  0x2c   : > { %299 = vst [vmem:[#allocation2 + $0x170] sm:$0xff] %v3042_v0  ;;  %300 = vst [vmem:[#allocation2 + $0x178] sm:$0x3] %v3042_v0 }
  0x2d   : > { %301 = vst [vmem:[#allocation2 + $0x180] sm:$0xff] %v3042_v0  ;;  %302 = vst [vmem:[#allocation2 + $0x188] sm:$0xff] %v3042_v0 }
  0x2e   : > { %303 = vst [vmem:[#allocation2 + $0x190] sm:$0x3] %v3042_v0  ;;  %304 = vst [vmem:[#allocation2 + $0x198] sm:$0xff] %v3042_v0 }
  0x2f   : > { %305 = vst [vmem:[#allocation2 + $0x1a0] sm:$0xff] %v3042_v0  ;;  %306 = vst [vmem:[#allocation2 + $0x1a8] sm:$0x3] %v3042_v0 }
  0x30 PF: > { %v1362_v1 = vld [vmem:[%s4569_s3 + $0x78] sm:$0xff]  ;;  %v3043_v3 = vmov 0.0   ;;  %v1361_v4 = vld [vmem:[%s4569_s3 + $0x70] sm:$0xff]  ;;  %v1360_v6 = vld [vmem:[%s4569_s3 + $0x68] sm:$0xff] }
  0x31   : > { %v1394_v2 = vld [vmem:[%s4569_s3 + $0x178] sm:$0xff]  ;;  %1491 = vmatprep.subr.mxu0 %v3043_v3  ;;  %1716 = vmatprep.subr.mxu1 %v3043_v3  ;;  %v1393_v5 = vld [vmem:[%s4569_s3 + $0x170] sm:$0xff]  ;;  %v1392_v7 = vld [vmem:[%s4569_s3 + $0x168] sm:$0xff] }
  0x32   : > { %1492 = vmatpush1.msra.mxu0 %v1362_v1  ;;  %1717 = vmatpush1.msra.mxu1 %v1394_v2  ;;  %v1359_v8 = vld [vmem:[%s4569_s3 + $0x60] sm:$0xff]  ;;  %v1358_v10 = vld [vmem:[%s4569_s3 + $0x58] sm:$0xff]  ;;  %v1357_v12 = vld [vmem:[%s4569_s3 + $0x50] sm:$0xff] }
  0x33   : > { %1493 = vmatprep.subr.mxu0 %v3043_v3  ;;  %1718 = vmatprep.subr.mxu1 %v3043_v3  ;;  %v1391_v9 = vld [vmem:[%s4569_s3 + $0x160] sm:$0xff]  ;;  %v1390_v11 = vld [vmem:[%s4569_s3 + $0x158] sm:$0xff]  ;;  %v1389_v13 = vld [vmem:[%s4569_s3 + $0x150] sm:$0xff] }
  0x34   : > { %1494 = vmatpush1.msra.mxu0 %v1361_v4  ;;  %1719 = vmatpush1.msra.mxu1 %v1393_v5  ;;  %v1356_v14 = vld [vmem:[%s4569_s3 + $0x48] sm:$0xff]  ;;  %v1355_v16 = vld [vmem:[%s4569_s3 + $0x40] sm:$0xff]  ;;  %v1354_v18 = vld [vmem:[%s4569_s3 + $0x38] sm:$0xff] }
  0x35   : > { %1495 = vmatprep.subr.mxu0 %v3043_v3  ;;  %1720 = vmatprep.subr.mxu1 %v3043_v3  ;;  %v1388_v15 = vld [vmem:[%s4569_s3 + $0x148] sm:$0xff]  ;;  %v1387_v17 = vld [vmem:[%s4569_s3 + $0x140] sm:$0xff]  ;;  %v1386_v19 = vld [vmem:[%s4569_s3 + $0x138] sm:$0xff] }
  0x36   : > { %1496 = vmatpush1.msra.mxu0 %v1360_v6  ;;  %1721 = vmatpush1.msra.mxu1 %v1392_v7  ;;  %v1353_v20 = vld [vmem:[%s4569_s3 + $0x30] sm:$0xff]  ;;  %v1352_v22 = vld [vmem:[%s4569_s3 + $0x28] sm:$0xff]  ;;  %v1351_v24 = vld [vmem:[%s4569_s3 + $0x20] sm:$0xff] }
  0x37   : > { %1497 = vmatprep.subr.mxu0 %v3043_v3  ;;  %1722 = vmatprep.subr.mxu1 %v3043_v3  ;;  %v1385_v21 = vld [vmem:[%s4569_s3 + $0x130] sm:$0xff]  ;;  %v1384_v23 = vld [vmem:[%s4569_s3 + $0x128] sm:$0xff]  ;;  %v1383_v25 = vld [vmem:[%s4569_s3 + $0x120] sm:$0xff] }
  0x38   : > { %1498 = vmatpush1.msra.mxu0 %v1359_v8  ;;  %1723 = vmatpush1.msra.mxu1 %v1391_v9  ;;  %v307_v26 = vld [vmem:[%s3090_s27] sm:$0xff]  ;;  %v1350_v29 = vld [vmem:[%s4569_s3 + $0x18] sm:$0xff]  ;;  %v308_v32 = vld [vmem:[%s3090_s27 + $0x8] sm:$0xff] }
  0x39   : > { %1499 = vmatprep.subr.mxu0 %v3043_v3  ;;  %1724 = vmatprep.subr.mxu1 %v3043_v3  ;;  %v3201_v27 = vld [vmem:[%s4567_s1] ss:$0 sm:$0xff]  ;;  %v1382_v30 = vld [vmem:[%s4569_s3 + $0x118] sm:$0xff]  ;;  %v1349_v33 = vld [vmem:[%s4569_s3 + $0x10] sm:$0xff] }
  0x3a   : > { %1500 = vmatpush1.msra.mxu0 %v1358_v10  ;;  %1725 = vmatpush1.msra.mxu1 %v1390_v11  ;;  %v3206_v28 = vld [vmem:[%s4568_s2] ss:$0 sm:$0xff]  ;;  %v346_v31 = vmul.f32 %v3201_v27, %v307_v26  ;;  %v1381_v34 = vld [vmem:[%s4569_s3 + $0x110] sm:$0xff]  ;;  %v347_v36 = vmul.f32 %v3201_v27, %v308_v32  ;;  %v310_v39 = vld [vmem:[%s3090_s27 + $0x18] sm:$0xff] }
  0x3b   : > { %1501 = vmatprep.subr.mxu0 %v3043_v3  ;;  %1726 = vmatprep.subr.mxu1 %v3043_v3  ;;  %v309_v37 = vld [vmem:[%s3090_s27 + $0x10] sm:$0xff]  ;;  %v311_v40 = vld [vmem:[%s3090_s27 + $0x20] sm:$0xff]  ;;  %v1348_v41 = vld [vmem:[%s4569_s3 + $0x8] sm:$0xff]  ;;  %v349_v45 = vmul.f32 %v3201_v27, %v310_v39 }
  0x3c   : > { %1502 = vmatpush1.msra.mxu0 %v1357_v12  ;;  %1727 = vmatpush1.msra.mxu1 %v1389_v13  ;;  %v3227_v35 = vadd.f32 %v3206_v28, %v346_v31  ;;  %v348_v38 = vmul.f32 %v3201_v27, %v309_v37  ;;  %v1380_v42 = vld [vmem:[%s4569_s3 + $0x108] sm:$0xff]  ;;  %v3244_v44 = vadd.f32 %v3206_v28, %v347_v36  ;;  %v313_v50 = vld [vmem:[%s3090_s27 + $0x30] sm:$0xff]  ;;  %v314_v51 = vld [vmem:[%s3090_s27 + $0x38] sm:$0xff] }
  0x3d   : > { %1503 = vmatprep.subr.mxu0 %v3043_v3  ;;  %1728 = vmatprep.subr.mxu1 %v3043_v3  ;;  %v350_v46 = vmul.f32 %v3201_v27, %v311_v40  ;;  %v312_v47 = vld [vmem:[%s3090_s27 + $0x28] sm:$0xff]  ;;  %v1347_v52 = vld [vmem:[%s4569_s3] sm:$0xff]  ;;  %v3267_v55 = vadd.f32 %v3206_v28, %v349_v45  ;;  %v352_v57 = vmul.f32 %v3201_v27, %v313_v50  ;;  %v1378_v0 = vld [vmem:[%s4569_s3 + $0xf8] sm:$0xff] }
  0x3e   : > { %1504 = vmatpush1.msra.mxu0 %v1356_v14  ;;  %1729 = vmatpush1.msra.mxu1 %v1388_v15  ;;  %v417_v43 = vmax.f32 %v3227_v35, 0.0  ;;  %v3250_v48 = vadd.f32 %v3206_v28, %v348_v38  ;;  %v351_v49 = vmul.f32 %v3201_v27, %v312_v47  ;;  %v1379_v53 = vld [vmem:[%s4569_s3 + $0x100] sm:$0xff]  ;;  %v418_v54 = vmax.f32 %v3244_v44, 0.0  ;;  %v316_v63 = vld [vmem:[%s3090_s27 + $0x48] sm:$0xff]  ;;  %v1410_v1 = vld [vmem:[%s4569_s3 + $0x1f8] sm:$0xff] }
  0x3f   : > { %1505 = vmatprep.subr.mxu0 %v3043_v3  ;;  %1730 = vmatprep.subr.mxu1 %v3043_v3  ;;  %v3270_v56 = vadd.f32 %v3206_v28, %v350_v46  ;;  %v315_v58 = vld [vmem:[%s3090_s27 + $0x40] sm:$0xff]  ;;  %v353_v61 = vmul.f32 %v3201_v27, %v314_v51  ;;  %v420_v2 = vmax.f32 %v3267_v55, 0.0  ;;  %v3294_v5 = vadd.f32 %v3206_v28, %v352_v57  ;;  %v317_v7 = vld [vmem:[%s3090_s27 + $0x50] sm:$0xff]  ;;  %v318_v12 = vld [vmem:[%s3090_s27 + $0x58] sm:$0xff] }
  0x40   : > { %1506 = vmatpush1.msra.mxu0 %v1355_v16  ;;  %1731 = vmatpush1.msra.mxu1 %v1387_v17  ;;  %450 = vst [vmem:[#allocation2 + $0x19] sm:$0xff] %v417_v43  ;;  %v419_v59 = vmax.f32 %v3250_v48, 0.0  ;;  %v3276_v60 = vadd.f32 %v3206_v28, %v351_v49  ;;  %v354_v62 = vmul.f32 %v3201_v27, %v315_v58  ;;  %451 = vst [vmem:[#allocation2 + $0x21] sm:$0xff] %v418_v54  ;;  %v1377_v13 = vld [vmem:[%s4569_s3 + $0xf0] sm:$0xff]  ;;  %v322_v36 = vld [vmem:[%s3090_s27 + $0x78] sm:$0xff] }
  0x41   : > { %1507 = vmatprep.subr.mxu0 %v3043_v3  ;;  %1732 = vmatprep.subr.mxu1 %v3043_v3  ;;  %v421_v4 = vmax.f32 %v3270_v56, 0.0  ;;  %v355_v6 = vmul.f32 %v3201_v27, %v316_v63  ;;  %v3302_v9 = vadd.f32 %v3206_v28, %v353_v61  ;;  %v356_v11 = vmul.f32 %v3201_v27, %v317_v7  ;;  %v1409_v14 = vld [vmem:[%s4569_s3 + $0x1f0] sm:$0xff]  ;;  %v1375_v37 = vld [vmem:[%s4569_s3 + $0xe0] sm:$0xff]  ;;  %v1374_v49 = vld [vmem:[%s4569_s3 + $0xd8] sm:$0xff] }
  0x42   : > { %1508 = vmatpush1.msra.mxu0 %v1354_v18  ;;  %1733 = vmatpush1.msra.mxu1 %v1386_v19  ;;  %452 = vst [vmem:[#allocation2 + $0x31] sm:$0xff] %v419_v59  ;;  %v422_v8 = vmax.f32 %v3276_v60, 0.0  ;;  %v3305_v10 = vadd.f32 %v3206_v28, %v354_v62  ;;  %453 = vst [vmem:[#allocation2 + $0x39] sm:$0xff] %v420_v2  ;;  %v423_v15 = vmax.f32 %v3294_v5, 0.0  ;;  %v319_v18 = vld [vmem:[%s3090_s27 + $0x60] sm:$0xff]  ;;  %v321_v31 = vld [vmem:[%s3090_s27 + $0x70] sm:$0xff] }
  0x43   : > { %1509 = vmatprep.subr.mxu0 %v3043_v3  ;;  %1734 = vmatprep.subr.mxu1 %v3043_v3  ;;  %454 = vst [vmem:[#allocation2 + $0x49] sm:$0xff] %v421_v4  ;;  %v3323_v16 = vadd.f32 %v3206_v28, %v355_v6  ;;  %v357_v17 = vmul.f32 %v3201_v27, %v318_v12  ;;  %v424_v19 = vmax.f32 %v3302_v9, 0.0  ;;  %v1407_v38 = vld [vmem:[%s4569_s3 + $0x1e0] sm:$0xff]  ;;  %v1406_v50 = vld [vmem:[%s4569_s3 + $0x1d8] sm:$0xff]  ;;  %v1373_v58 = vld [vmem:[%s4569_s3 + $0xd0] sm:$0xff] }
  0x44   : > { %1510 = vmatpush1.msra.mxu0 %v1353_v20  ;;  %1735 = vmatpush1.msra.mxu1 %v1385_v21  ;;  %455 = vst [vmem:[#allocation2 + $0x51] sm:$0xff] %v422_v8  ;;  %v425_v20 = vmax.f32 %v3305_v10, 0.0  ;;  %v3332_v21 = vadd.f32 %v3206_v28, %v356_v11  ;;  %456 = vst [vmem:[#allocation2 + $0x61] sm:$0xff] %v423_v15  ;;  %v1405_v61 = vld [vmem:[%s4569_s3 + $0x1d0] sm:$0xff]  ;;  %v1404_v6 = vld [vmem:[%s4569_s3 + $0x1c8] sm:$0xff] }
  0x45   : > { %1511 = vmatprep.subr.mxu0 %v3043_v3  ;;  %1736 = vmatprep.subr.mxu1 %v3043_v3  ;;  %v426_v26 = vmax.f32 %v3323_v16, 0.0  ;;  %457 = vst [vmem:[#allocation2 + $0x69] sm:$0xff] %v424_v19  ;;  %v1371_v11 = vld [vmem:[%s4569_s3 + $0xc0] sm:$0xff]  ;;  %v1456_v44 = vld [vmem:[%s4569_s3 + $0x368] sm:$0xff]  ;;  %v1454_v55 = vld [vmem:[%s4569_s3 + $0x358] sm:$0xff] }
  0x46   : > { %1512 = vmatpush1.msra.mxu0 %v1352_v22  ;;  %1737 = vmatpush1.msra.mxu1 %v1384_v23  ;;  %v358_v22 = vmul.f32 %v3201_v27, %v319_v18  ;;  %v320_v23 = vld [vmem:[%s3090_s27 + $0x68] sm:$0xff]  ;;  %458 = vst [vmem:[#allocation2 + $0x79] sm:$0xff] %v425_v20  ;;  %v427_v32 = vmax.f32 %v3332_v21, 0.0  ;;  %v1403_v12 = vld [vmem:[%s4569_s3 + $0x1c0] sm:$0xff]  ;;  %v1453_v56 = vld [vmem:[%s4569_s3 + $0x350] sm:$0xff] }
  0x47   : > { %1513 = vmatprep.subr.mxu0 %v3043_v3  ;;  %1738 = vmatprep.subr.mxu1 %v3043_v3  ;;  %459 = vst [vmem:[#allocation2 + $0x81] sm:$0xff] %v426_v26  ;;  %v1423_v35 = vld [vmem:[%s4569_s3 + $0x260] sm:$0xff]  ;;  %v1452_v60 = vld [vmem:[%s4569_s3 + $0x348] sm:$0xff]  ;;  %v1450_v9 = vld [vmem:[%s4569_s3 + $0x338] sm:$0xff] }
  0x48   : > { %1514 = vmatpush1.msra.mxu0 %v1351_v24  ;;  %1739 = vmatpush1.msra.mxu1 %v1383_v25  ;;  %v1376_v24 = vld [vmem:[%s4569_s3 + $0xe8] sm:$0xff]  ;;  %460 = vst [vmem:[#allocation2 + $0x91] sm:$0xff] %v427_v32  ;;  %v1455_v48 = vld [vmem:[%s4569_s3 + $0x360] sm:$0xff]  ;;  %v1449_v10 = vld [vmem:[%s4569_s3 + $0x330] sm:$0xff] }
  0x49   : > { %1515 = vmatprep.subr.mxu0 %v3043_v3  ;;  %1740 = vmatprep.subr.mxu1 %v3043_v3  ;;  %v1408_v25 = vld [vmem:[%s4569_s3 + $0x1e8] sm:$0xff]  ;;  %v1451_v5 = vld [vmem:[%s4569_s3 + $0x340] sm:$0xff]  ;;  %v1414_v16 = vld [vmem:[%s4569_s3 + $0x218] sm:$0xff] }
  0x4a   : > { %1516 = vmatpush1.msra.mxu0 %v1350_v29  ;;  %1741 = vmatpush1.msra.mxu1 %v1382_v30  ;;  %v3348_v29 = vadd.f32 %v3206_v28, %v357_v17  ;;  %v359_v30 = vmul.f32 %v3201_v27, %v320_v23  ;;  %v1402_v17 = vld [vmem:[%s4569_s3 + $0x1b8] sm:$0xff]  ;;  %v1413_v21 = vld [vmem:[%s4569_s3 + $0x210] sm:$0xff] }
  0x4b   : > { %1517 = vmatprep.subr.mxu0 %v3043_v3  ;;  %1742 = vmatprep.subr.mxu1 %v3043_v3 }
  0x4c   : > { %1518 = vmatpush1.msra.mxu0 %v1349_v33  ;;  %1743 = vmatpush1.msra.mxu1 %v1381_v34  ;;  %v3358_v33 = vadd.f32 %v3206_v28, %v358_v22  ;;  %v360_v34 = vmul.f32 %v3201_v27, %v321_v31  ;;  %v428_v39 = vmax.f32 %v3348_v29, 0.0  ;;  %v3374_v40 = vadd.f32 %v3206_v28, %v359_v30  ;;  %v325_v22 = vld [vmem:[%s3090_s27 + $0x90] sm:$0xff]  ;;  %v1368_v31 = vld [vmem:[%s4569_s3 + $0xa8] sm:$0xff] }
  0x4d   : > { %1519 = vmatprep.subr.mxu0 %v3043_v3  ;;  %1744 = vmatprep.subr.mxu1 %v3043_v3  ;;  %v364_v23 = vmul.f32 %v3201_v27, %v325_v22  ;;  %v1412_v29 = vld [vmem:[%s4569_s3 + $0x208] sm:$0xff] }
  0x4e   : > { %1520 = vmatpush1.msra.mxu0 %v1348_v41  ;;  %1745 = vmatpush1.msra.mxu1 %v1380_v42  ;;  %v361_v41 = vmul.f32 %v3201_v27, %v322_v36  ;;  %v323_v42 = vld [vmem:[%s3090_s27 + $0x80] sm:$0xff]  ;;  %v429_v45 = vmax.f32 %v3358_v33, 0.0  ;;  %v3382_v46 = vadd.f32 %v3206_v28, %v360_v34  ;;  %461 = vst [vmem:[#allocation2 + $0x99] sm:$0xff] %v428_v39  ;;  %v430_v51 = vmax.f32 %v3374_v40, 0.0  ;;  %v1400_v34 = vld [vmem:[%s4569_s3 + $0x1a8] sm:$0xff]  ;;  %v326_v36 = vld [vmem:[%s3090_s27 + $0x98] sm:$0xff] }
  0x4f   : > { %1521 = vmatprep.subr.mxu0 %v3043_v3  ;;  %1746 = vmatprep.subr.mxu1 %v3043_v3  ;;  %v362_v47 = vmul.f32 %v3201_v27, %v323_v42  ;;  %v3466_v30 = vadd.f32 %v3206_v28, %v364_v23  ;;  %v1367_v42 = vld [vmem:[%s4569_s3 + $0xa0] sm:$0xff]  ;;  %v1365_v23 = vld [vmem:[%s4569_s3 + $0x90] sm:$0xff]  ;;  %v1442_v40 = vld [vmem:[%s4569_s3 + $0x2f8] sm:$0xff] }
  0x50   : > { %1522 = vmatpush1.msra.mxu0 %v1347_v52  ;;  %1747 = vmatpush1.msra.mxu1 %v1379_v53  ;;  %v3397_v52 = vadd.f32 %v3206_v28, %v361_v41  ;;  %462 = vst [vmem:[#allocation2 + $0xa9] sm:$0xff] %v429_v45  ;;  %v431_v53 = vmax.f32 %v3382_v46, 0.0  ;;  %463 = vst [vmem:[#allocation2 + $0xb1] sm:$0xff] %v430_v51  ;;  %v327_v41 = vld [vmem:[%s3090_s27 + $0xa0] sm:$0xff]  ;;  %v1441_v46 = vld [vmem:[%s4569_s3 + $0x2f0] sm:$0xff] }
  0x51   : > { %1523 = vmatprep.subr.mxu0 %v3043_v3  ;;  %1748 = vmatprep.subr.mxu1 %v3043_v3  ;;  %v3403_v57 = vadd.f32 %v3206_v28, %v362_v47  ;;  %v1399_v47 = vld [vmem:[%s4569_s3 + $0x1a0] sm:$0xff] }
  0x52   : > { %1524 = vmatpush2.msra.mxu0 %v1378_v0  ;;  %1749 = vmatpush2.msra.mxu1 %v1410_v1  ;;  %v432_v62 = vmax.f32 %v3397_v52, 0.0  ;;  %464 = vst [vmem:[#allocation2 + $0xc1] sm:$0xff] %v431_v53  ;;  %v324_v0 = vld [vmem:[%s3090_s27 + $0x88] sm:$0xff]  ;;  %v1411_v33 = vld [vmem:[%s4569_s3 + $0x200] sm:$0xff] }
  0x53   : > { %1525 = vmatprep.subr.mxu0 %v3043_v3  ;;  %1750 = vmatprep.subr.mxu1 %v3043_v3  ;;  %v433_v63 = vmax.f32 %v3403_v57, 0.0  ;;  %v1372_v1 = vld [vmem:[%s4569_s3 + $0xc8] sm:$0xff]  ;;  %v363_v7 = vmul.f32 %v3201_v27, %v324_v0  ;;  %v329_v0 = vld [vmem:[%s3090_s27 + $0xb0] sm:$0xff]  ;;  %v1439_v57 = vld [vmem:[%s4569_s3 + $0x2e0] sm:$0xff] }
  0x54   : > { %1526 = vmatpush2.msra.mxu0 %v1377_v13  ;;  %1751 = vmatpush2.msra.mxu1 %v1409_v14  ;;  %465 = vst [vmem:[#allocation2 + $0xc9] sm:$0xff] %v432_v62  ;;  %v1370_v14 = vld [vmem:[%s4569_s3 + $0xb8] sm:$0xff]  ;;  %v1440_v52 = vld [vmem:[%s4569_s3 + $0x2e8] sm:$0xff] }
  0x55   : > { %1527 = vmatprep.subr.mxu0 %v3043_v3  ;;  %1752 = vmatprep.subr.mxu1 %v3043_v3  ;;  %466 = vst [vmem:[#allocation2 + $0xd9] sm:$0xff] %v433_v63  ;;  %v3442_v13 = vadd.f32 %v3206_v28, %v363_v7 }
  0x56   : > { %1528 = vmatpush2.msra.mxu0 %v1376_v24  ;;  %1753 = vmatpush2.msra.mxu1 %v1408_v25  ;;  %v1369_v24 = vld [vmem:[%s4569_s3 + $0xb0] sm:$0xff] }
  0x57   : > { %1529 = vmatprep.subr.mxu0 %v3043_v3  ;;  %1754 = vmatprep.subr.mxu1 %v3043_v3  ;;  %v4580_v18 = vmax.f32 %v3442_v13, 0.0  ;;  %v1401_v25 = vld [vmem:[%s4569_s3 + $0x1b0] sm:$0xff] }
  0x58   : > { %1530 = vmatpush2.msra.mxu0 %v1375_v37  ;;  %1755 = vmatpush2.msra.mxu1 %v1407_v38  ;;  %v4579_v37 = vmax.f32 %v3466_v30, 0.0  ;;  %v365_v38 = vmul.f32 %v3201_v27, %v326_v36 }
  0x59   : > { %1531 = vmatprep.subr.mxu0 %v3043_v3  ;;  %1756 = vmatprep.subr.mxu1 %v3043_v3  ;;  %467 = vst [vmem:[#allocation2 + $0xe1] sm:$0xff] %v4580_v18  ;;  %v611_v18 = vld [vmem:[#allocation2 + $0xa] sm:$0xff] }
  0x5a   : > { %1532 = vmatpush2.msra.mxu0 %v1374_v49  ;;  %1757 = vmatpush2.msra.mxu1 %v1406_v50  ;;  %v366_v49 = vmul.f32 %v3201_v27, %v327_v41  ;;  %v328_v50 = vld [vmem:[%s3090_s27 + $0xa8] sm:$0xff]  ;;  %468 = vst [vmem:[#allocation2 + $0xf1] sm:$0xff] %v4579_v37 }
  0x5b   : > { %1533 = vmatprep.subr.mxu0 %v3043_v3  ;;  %1758 = vmatprep.subr.mxu1 %v3043_v3  ;;  %v483_v37 = vld [vmem:[#allocation2 + $0x8] sm:$0xff] }
  0x5c   : > { %1534 = vmatpush2.msra.mxu0 %v1373_v58  ;;  %1759 = vmatpush2.msra.mxu1 %v1405_v61  ;;  %v3493_v58 = vadd.f32 %v3206_v28, %v365_v38  ;;  %v367_v61 = vmul.f32 %v3201_v27, %v328_v50  ;;  %v3506_v7 = vadd.f32 %v3206_v28, %v366_v49  ;;  %v1396_v49 = vld [vmem:[%s4569_s3 + $0x188] sm:$0xff] }
  0x5d   : > { %1535 = vmatprep.subr.mxu0 %v3043_v3  ;;  %1760 = vmatprep.subr.mxu1 %v3043_v3 }
  0x5e   : > { %1536 = vmatpush2.msra.mxu0 %v1372_v1  ;;  %1761 = vmatpush2.msra.mxu1 %v1404_v6  ;;  %v1366_v1 = vld [vmem:[%s4569_s3 + $0x98] sm:$0xff] }
  0x5f   : > { %1537 = vmatprep.subr.mxu0 %v3043_v3  ;;  %1762 = vmatprep.subr.mxu1 %v3043_v3  ;;  %v1398_v6 = vld [vmem:[%s4569_s3 + $0x198] sm:$0xff] }
  0x60   : > { %1538 = vmatpush2.msra.mxu0 %v1371_v11  ;;  %1763 = vmatpush2.msra.mxu1 %v1403_v12  ;;  %v368_v11 = vmul.f32 %v3201_v27, %v329_v0  ;;  %v330_v12 = vld [vmem:[%s3090_s27 + $0xb8] sm:$0xff]  ;;  %v333_v0 = vld [vmem:[%s3090_s27 + $0xd0] sm:$0xff] }
  0x61   : > { %1539 = vmatprep.subr.mxu0 %v3043_v3  ;;  %1764 = vmatprep.subr.mxu1 %v3043_v3  ;;  %v369_v22 = vmul.f32 %v3201_v27, %v330_v12  ;;  %v1363_v12 = vld [vmem:[%s4569_s3 + $0x80] sm:$0xff] }
  0x62   : > { %1540 = vmatpush2.msra.mxu0 %v1370_v14  ;;  %1765 = vmatpush2.msra.mxu1 %v1402_v17  ;;  %v4577_v14 = vmax.f32 %v3493_v58, 0.0  ;;  %v3512_v17 = vadd.f32 %v3206_v28, %v367_v61 }
  0x63   : > { %1541 = vmatprep.subr.mxu0 %v3043_v3  ;;  %1766 = vmatprep.subr.mxu1 %v3043_v3  ;;  %v3532_v38 = vadd.f32 %v3206_v28, %v369_v22  ;;  %v546_v22 = vld [vmem:[#allocation2 + $0x1] sm:$0xff] }
  0x64   : > { %1542 = vmatpush2.msra.mxu0 %v1369_v24  ;;  %1767 = vmatpush2.msra.mxu1 %v1401_v25  ;;  %v1397_v24 = vld [vmem:[%s4569_s3 + $0x190] sm:$0xff]  ;;  %v4575_v25 = vmax.f32 %v3506_v7, 0.0  ;;  %469 = vst [vmem:[#allocation2 + $0xf9] sm:$0xff] %v4577_v14  ;;  %v4574_v36 = vmax.f32 %v3512_v17, 0.0  ;;  %v336_v14 = vld [vmem:[%s3090_s27 + $0xe8] sm:$0xff] }
  0x65   : > { %1543 = vmatprep.subr.mxu0 %v3043_v3  ;;  %1768 = vmatprep.subr.mxu1 %v3043_v3 }
  0x66   : > { %1544 = vmatpush2.msra.mxu0 %v1368_v31  ;;  %1769 = vmatpush2.msra.mxu1 %v1400_v34  ;;  %v3525_v31 = vadd.f32 %v3206_v28, %v368_v11  ;;  %v331_v34 = vld [vmem:[%s3090_s27 + $0xc0] sm:$0xff]  ;;  %470 = vst [vmem:[#allocation2 + $0x109] sm:$0xff] %v4575_v25  ;;  %471 = vst [vmem:[#allocation2 + $0x111] sm:$0xff] %v4574_v36  ;;  %v372_v11 = vmul.f32 %v3201_v27, %v333_v0 }
  0x67   : > { %1545 = vmatprep.subr.mxu0 %v3043_v3  ;;  %1770 = vmatprep.subr.mxu1 %v3043_v3  ;;  %v370_v41 = vmul.f32 %v3201_v27, %v331_v34  ;;  %v1395_v34 = vld [vmem:[%s4569_s3 + $0x180] sm:$0xff] }
  0x68   : > { %1546 = vmatpush2.msra.mxu0 %v1367_v42  ;;  %1771 = vmatpush2.msra.mxu1 %v1399_v47  ;;  %v332_v42 = vld [vmem:[%s3090_s27 + $0xc8] sm:$0xff]  ;;  %v4573_v50 = vmax.f32 %v3525_v31, 0.0  ;;  %v3576_v0 = vadd.f32 %v3206_v28, %v372_v11 }
  0x69   : > { %1547 = vmatprep.subr.mxu0 %v3043_v3  ;;  %1772 = vmatprep.subr.mxu1 %v3043_v3  ;;  %v1364_v47 = vld [vmem:[%s4569_s3 + $0x88] sm:$0xff]  ;;  %v371_v61 = vmul.f32 %v3201_v27, %v332_v42 }
  0x6a   : > { %1548 = vmatpush2.msra.mxu0 %v1366_v1  ;;  %1773 = vmatpush2.msra.mxu1 %v1398_v6  ;;  %v4576_v1 = vmax.f32 %v3532_v38, 0.0  ;;  %v3553_v6 = vadd.f32 %v3206_v28, %v370_v41  ;;  %472 = vst [vmem:[#allocation2 + $0x121] sm:$0xff] %v4573_v50  ;;  %v3570_v41 = vld [vmem:[#allocation2 + $0x18] sm:$0xff]  ;;  %v335_v50 = vld [vmem:[%s3090_s27 + $0xe0] sm:$0xff]  ;;  %v4584_v11 = vmax.f32 %v3576_v0, 0.0 }
  0x6b   : > { %1549 = vmatprep.subr.mxu0 %v3043_v3  ;;  %1774 = vmatprep.subr.mxu1 %v3043_v3  ;;  %v374_v25 = vmul.f32 %v3201_v27, %v335_v50  ;;  %v1426_v50 = vld [vmem:[%s4569_s3 + $0x278] sm:$0xff] }
  0x6c   : > { %1550 = vmatpush2.msra.mxu0 %v1365_v23  ;;  %1775 = vmatpush2.msra.mxu1 %v1397_v24  ;;  %v3564_v23 = vadd.f32 %v3206_v28, %v371_v61  ;;  %v334_v24 = vld [vmem:[%s3090_s27 + $0xd8] sm:$0xff]  ;;  %473 = vst [vmem:[#allocation2 + $0x129] sm:$0xff] %v4576_v1  ;;  %v4578_v42 = vmax.f32 %v3553_v6, 0.0  ;;  %v547_v1 = vld [vmem:[#allocation2 + $0x9] sm:$0xff]  ;;  %476 = vst [vmem:[#allocation2 + $0x151] sm:$0xff] %v4584_v11 }
  0x6d   : > { %1551 = vmatprep.subr.mxu0 %v3043_v3  ;;  %1776 = vmatprep.subr.mxu1 %v3043_v3  ;;  %v373_v61 = vmul.f32 %v3201_v27, %v334_v24 }
  0x6e   : > { %1552 = vmatpush2.msra.mxu0 %v1364_v47  ;;  %1777 = vmatpush2.msra.mxu1 %v1396_v49  ;;  %v482_v47 = vld [vmem:[#allocation2] sm:$0xff]  ;;  %v4581_v36 = vmax.f32 %v3564_v23, 0.0  ;;  %474 = vst [vmem:[#allocation2 + $0x139] sm:$0xff] %v4578_v42  ;;  %v375_v42 = vmul.f32 %v3201_v27, %v336_v14 }
  0x6f   : > { %1553 = vmatprep.subr.mxu0 %v3043_v3  ;;  %1778 = vmatprep.subr.mxu1 %v3043_v3  ;;  %v610_v49 = vld [vmem:[#allocation2 + $0x2] sm:$0xff]  ;;  %v3588_v24 = vadd.f32 %v3206_v28, %v373_v61  ;;  %v337_v61 = vld [vmem:[%s3090_s27 + $0xf0] sm:$0xff] }
  0x70   : > { %1554 = vmatpush2.msra.mxu0 %v1363_v12  ;;  %1555 = vmatprep.mubr.f32.mxu0 %v546_v22  ;;  %v675_v12 = vld [vmem:[#allocation2 + $0x20] sm:$0xff]  ;;  %475 = vst [vmem:[#allocation2 + $0x141] sm:$0xff] %v4581_v36  ;;  %v3598_v22 = vadd.f32 %v3206_v28, %v374_v25  ;;  %v3608_v25 = vadd.f32 %v3206_v28, %v375_v42 }
  0x71   : > { %1779 = vmatpush2.msra.mxu1 %v1395_v34  ;;  %1780 = vmatprep.mubr.f32.mxu1 %v3570_v41  ;;  %v4582_v34 = vmax.f32 %v3588_v24, 0.0  ;;  %v376_v14 = vmul.f32 %v3201_v27, %v337_v61  ;;  %v1458_v61 = vld [vmem:[%s4569_s3 + $0x378] sm:$0xff] }
  0x72   : > { %1556 = vmatmul.mubr.f32.vlgmr.msra.gmra.mxu0 %v482_v47  ;;  %1781 = vmatmul.mubr.f32.vlgmr.msra.gmra.mxu1 %v610_v49  ;;  %v4583_v36 = vmax.f32 %v3598_v22, 0.0  ;;  %v1425_v47 = vld [vmem:[%s4569_s3 + $0x270] sm:$0xff]  ;;  %v446_v42 = vmax.f32 %v3608_v25, 0.0  ;;  %v1459_v25 = vld [vmem:[%s4569_s3 + $0x380] sm:$0xff] }
  0x73   : > { %1941 = vmatprep.subr.mxu0 %v3043_v3  ;;  %1560 = vmatprep.mubr.f32.mxu0 %v547_v1  ;;  %477 = vst [vmem:[#allocation2 + $0x159] sm:$0xff] %v4582_v34  ;;  %v676_v1 = vld [vmem:[#allocation2 + $0x30] sm:$0xff]  ;;  %v415_v49 = vadd.f32 %v3206_v28, %v376_v14  ;;  %v338_v34 = vld [vmem:[%s3090_s27 + $0xf8] sm:$0xff] }
  0x74   : > { %1942 = vmatpush1.msra.mxu0 %v1426_v50  ;;  %1785 = vmatprep.mubr.f32.mxu1 %v675_v12  ;;  %478 = vst [vmem:[#allocation2 + $0x169] sm:$0xff] %v4583_v36  ;;  %v1424_v50 = vld [vmem:[%s4569_s3 + $0x268] sm:$0xff]  ;;  %v612_v36 = vld [vmem:[#allocation2 + $0x1a] sm:$0xff]  ;;  %479 = vst [vmem:[#allocation2 + $0x171] sm:$0xff] %v446_v42 }
  0x75   : > { %1943 = vmatprep.subr.mxu0 %v3043_v3  ;;  %2166 = vmatprep.subr.mxu1 %v3043_v3  ;;  %v447_v14 = vmax.f32 %v415_v49, 0.0  ;;  %v1419_v49 = vld [vmem:[%s4569_s3 + $0x240] sm:$0xff] }
  0x76   : > { %1561 = vmatmul.mubr.f32.gmra.mxu0 %v483_v37  ;;  %1786 = vmatmul.mubr.f32.gmra.mxu1 %v611_v18  ;;  %v377_v18 = vmul.f32 %v3201_v27, %v338_v34  ;;  %v677_v37 = vld [vmem:[#allocation2 + $0x38] sm:$0xff]  ;;  %v1457_v27 = vld [vmem:[%s4569_s3 + $0x370] sm:$0xff] }
  0x77   : > { %1944 = vmatpush1.msra.mxu0 %v1425_v47  ;;  %1565 = vmatprep.mubr.f32.mxu0 %v417_v43  ;;  %480 = vst [vmem:[#allocation2 + $0x181] sm:$0xff] %v447_v14  ;;  %v613_v43 = vld [vmem:[#allocation2 + $0x22] sm:$0xff] }
  0x78   : > { %1790 = vmatprep.mubr.f32.mxu1 %v676_v1  ;;  %1945 = vmatprep.subr.mxu0 %v3043_v3  ;;  %v416_v11 = vadd.f32 %v3206_v28, %v377_v18  ;;  %v678_v28 = vld [vmem:[#allocation2 + $0x48] sm:$0xff]  ;;  %v683_v14 = vld [vmem:[#allocation2 + $0x80] sm:$0xff]  ;;  %v1417_v18 = vld [vmem:[%s4569_s3 + $0x230] sm:$0xff] }
  0x79   : > { %1946 = vmatpush1.msra.mxu0 %v1424_v50  ;;  %2167 = vmatpush1.msra.mxu1 %v1458_v61  ;;  %v1420_v47 = vld [vmem:[%s4569_s3 + $0x248] sm:$0xff]  ;;  %v682_v50 = vld [vmem:[#allocation2 + $0x78] sm:$0xff] }
  0x7a   : > { %1566 = vmatmul.mubr.f32.gmra.mxu0 %v3570_v41  ;;  %1791 = vmatmul.mubr.f32.gmra.mxu1 %v612_v36  ;;  %v448_v34 = vmax.f32 %v416_v11, 0.0  ;;  %v1422_v36 = vld [vmem:[%s4569_s3 + $0x258] sm:$0xff]  ;;  %v679_v41 = vld [vmem:[#allocation2 + $0x50] sm:$0xff] }
  0x7b   : > { %1570 = vmatprep.mubr.f32.mxu0 %v418_v54  ;;  %1795 = vmatprep.mubr.f32.mxu1 %v677_v37  ;;  %v614_v54 = vld [vmem:[#allocation2 + $0x32] sm:$0xff] }
  0x7c   : > { %1947 = vmatprep.subr.mxu0 %v3043_v3  ;;  %2168 = vmatprep.subr.mxu1 %v3043_v3  ;;  %481 = vst [vmem:[#allocation2 + $0x189] sm:$0xff] %v448_v34  ;;  %v1421_v11 = vld [vmem:[%s4569_s3 + $0x250] sm:$0xff]  ;;  %v1418_v61 = vld [vmem:[%s4569_s3 + $0x238] sm:$0xff]  ;;  %v3734_v34 = vld [vmem:[#allocation2 + $0xa8] sm:$0xff] }
  0x7d   : > { %1948 = vmatpush1.msra.mxu0 %v1423_v35  ;;  %2169 = vmatpush1.msra.mxu1 %v1457_v27  ;;  %v1416_v35 = vld [vmem:[%s4569_s3 + $0x228] sm:$0xff]  ;;  %v3718_v27 = vld [vmem:[#allocation2 + $0x98] sm:$0xff] }
  0x7e   : > { %1571 = vmatmul.mubr.f32.gmra.mxu0 %v675_v12  ;;  %1796 = vmatmul.mubr.f32.gmra.mxu1 %v613_v43  ;;  %v680_v12 = vld [vmem:[#allocation2 + $0x60] sm:$0xff] }
  0x7f   : > { %1575 = vmatprep.mubr.f32.mxu0 %v419_v59  ;;  %1800 = vmatprep.mubr.f32.mxu1 %v678_v28  ;;  %v615_v59 = vld [vmem:[#allocation2 + $0x3a] sm:$0xff] }
  0x80   : > { %1949 = vmatprep.subr.mxu0 %v3043_v3  ;;  %2170 = vmatprep.subr.mxu1 %v3043_v3  ;;  %v1415_v43 = vld [vmem:[%s4569_s3 + $0x220] sm:$0xff] }
  0x81   : > { %1950 = vmatpush1.msra.mxu0 %v1422_v36  ;;  %2171 = vmatpush1.msra.mxu1 %v1456_v44  ;;  %v3750_v36 = vld [vmem:[#allocation2 + $0xb0] sm:$0xff]  ;;  %v3763_v44 = vld [vmem:[#allocation2 + $0x9a] sm:$0xff] }
  0x82   : > { %1576 = vmatmul.mubr.f32.gmra.mxu0 %v676_v1  ;;  %1801 = vmatmul.mubr.f32.gmra.mxu1 %v614_v54  ;;  %v681_v1 = vld [vmem:[#allocation2 + $0x68] sm:$0xff]  ;;  %v3766_v54 = vld [vmem:[#allocation2 + $0xc0] sm:$0xff] }
  0x83   : > { %1580 = vmatprep.mubr.f32.mxu0 %v420_v2  ;;  %1805 = vmatprep.mubr.f32.mxu1 %v679_v41  ;;  %v616_v2 = vld [vmem:[#allocation2 + $0x4a] sm:$0xff] }
  0x84   : > { %1951 = vmatprep.subr.mxu0 %v3043_v3  ;;  %2172 = vmatprep.subr.mxu1 %v3043_v3 }
  0x85   : > { %1952 = vmatpush1.msra.mxu0 %v1421_v11  ;;  %2173 = vmatpush1.msra.mxu1 %v1455_v48  ;;  %v3783_v11 = vld [vmem:[#allocation2 + $0xc8] sm:$0xff]  ;;  %v3797_v48 = vld [vmem:[#allocation2 + $0xb2] sm:$0xff] }
  0x86   : > { %1581 = vmatmul.mubr.f32.gmra.mxu0 %v677_v37  ;;  %1806 = vmatmul.mubr.f32.gmra.mxu1 %v615_v59  ;;  %v684_v37 = vld [vmem:[#allocation2 + $0x90] sm:$0xff]  ;;  %v3800_v59 = vld [vmem:[#allocation2 + $0xd8] sm:$0xff] }
  0x87   : > { %1585 = vmatprep.mubr.f32.mxu0 %v421_v4  ;;  %1810 = vmatprep.mubr.f32.mxu1 %v680_v12  ;;  %v617_v4 = vld [vmem:[#allocation2 + $0x52] sm:$0xff] }
  0x88   : > { %1953 = vmatprep.subr.mxu0 %v3043_v3  ;;  %2174 = vmatprep.subr.mxu1 %v3043_v3 }
  0x89   : > { %1954 = vmatpush1.msra.mxu0 %v1420_v47  ;;  %2175 = vmatpush1.msra.mxu1 %v1454_v55  ;;  %v3817_v47 = vld [vmem:[#allocation2 + $0xe0] sm:$0xff]  ;;  %v3831_v55 = vld [vmem:[#allocation2 + $0xca] sm:$0xff] }
  0x8a   : > { %1586 = vmatmul.mubr.f32.gmra.mxu0 %v678_v28  ;;  %1811 = vmatmul.mubr.f32.gmra.mxu1 %v616_v2  ;;  %v3747_v28 = vld [vmem:[#allocation2 + $0x92] sm:$0xff] }
  0x8b   : > { %1590 = vmatprep.mubr.f32.mxu0 %v422_v8  ;;  %1815 = vmatprep.mubr.f32.mxu1 %v681_v1  ;;  %v618_v8 = vld [vmem:[#allocation2 + $0x62] sm:$0xff]  ;;  %v3834_v2 = vld [vmem:[#allocation2 + $0xf0] sm:$0xff] }
  0x8c   : > { %1955 = vmatprep.subr.mxu0 %v3043_v3  ;;  %2176 = vmatprep.subr.mxu1 %v3043_v3 }
  0x8d   : > { %1956 = vmatpush1.msra.mxu0 %v1419_v49  ;;  %2177 = vmatpush1.msra.mxu1 %v1453_v56  ;;  %v3851_v49 = vld [vmem:[#allocation2 + $0xf8] sm:$0xff]  ;;  %v4585_v56 = vmax.f32 %v3442_v13, 0.0 }
  0x8e   : > { %1591 = vmatmul.mubr.f32.gmra.mxu0 %v679_v41  ;;  %1816 = vmatmul.mubr.f32.gmra.mxu1 %v617_v4  ;;  %v3780_v41 = vld [vmem:[#allocation2 + $0xaa] sm:$0xff]  ;;  %v3865_v4 = vld [vmem:[#allocation2 + $0xe2] sm:$0xff]  ;;  %v1438_v13 = vld [vmem:[%s4569_s3 + $0x2d8] sm:$0xff] }
  0x8f   : > { %1595 = vmatprep.mubr.f32.mxu0 %v423_v15  ;;  %1820 = vmatprep.mubr.f32.mxu1 %v682_v50  ;;  %v619_v15 = vld [vmem:[#allocation2 + $0x6a] sm:$0xff] }
  0x90   : > { %1957 = vmatprep.subr.mxu0 %v3043_v3  ;;  %2178 = vmatprep.subr.mxu1 %v3043_v3 }
  0x91   : > { %1958 = vmatpush1.msra.mxu0 %v1418_v61  ;;  %2179 = vmatpush1.msra.mxu1 %v1452_v60  ;;  %v1472_v61 = vld [vmem:[%s4569_s3 + $0x3e8] sm:$0xff]  ;;  %v4586_v60 = vmax.f32 %v3466_v30, 0.0  ;;  %v1437_v30 = vld [vmem:[%s4569_s3 + $0x2d0] sm:$0xff] }
  0x92   : > { %1596 = vmatmul.mubr.f32.gmra.mxu0 %v680_v12  ;;  %1821 = vmatmul.mubr.f32.gmra.mxu1 %v618_v8  ;;  %v3814_v12 = vld [vmem:[#allocation2 + $0xc2] sm:$0xff]  ;;  %v3882_v8 = vld [vmem:[#allocation2 + $0xf2] sm:$0xff] }
  0x93   : > { %1600 = vmatprep.mubr.f32.mxu0 %v424_v19  ;;  %1825 = vmatprep.mubr.f32.mxu1 %v683_v14  ;;  %v3715_v19 = vld [vmem:[#allocation2 + $0x7a] sm:$0xff] }
  0x94   : > { %1959 = vmatprep.subr.mxu0 %v3043_v3  ;;  %2180 = vmatprep.subr.mxu1 %v3043_v3 }
  0x95   : > { %1960 = vmatpush1.msra.mxu0 %v1417_v18  ;;  %2181 = vmatpush1.msra.mxu1 %v1451_v5  ;;  %v1471_v18 = vld [vmem:[%s4569_s3 + $0x3e0] sm:$0xff]  ;;  %v4587_v5 = vmax.f32 %v3493_v58, 0.0  ;;  %v1436_v58 = vld [vmem:[%s4569_s3 + $0x2c8] sm:$0xff] }
  0x96   : > { %1601 = vmatmul.mubr.f32.gmra.mxu0 %v681_v1  ;;  %1826 = vmatmul.mubr.f32.gmra.mxu1 %v619_v15  ;;  %v3848_v1 = vld [vmem:[#allocation2 + $0xda] sm:$0xff] }
  0x97   : > { %1605 = vmatprep.mubr.f32.mxu0 %v425_v20  ;;  %1830 = vmatprep.mubr.f32.mxu1 %v684_v37  ;;  %v3731_v20 = vld [vmem:[#allocation2 + $0x82] sm:$0xff]  ;;  %v3899_v15 = vld [vmem:[#allocation2 + $0xfa] sm:$0xff] }
  0x98   : > { %1961 = vmatprep.subr.mxu0 %v3043_v3  ;;  %2182 = vmatprep.subr.mxu1 %v3043_v3 }
  0x99   : > { %1962 = vmatpush1.msra.mxu0 %v1416_v35  ;;  %2183 = vmatpush1.msra.mxu1 %v1450_v9  ;;  %v1470_v35 = vld [vmem:[%s4569_s3 + $0x3d8] sm:$0xff]  ;;  %v4588_v9 = vmax.f32 %v3506_v7, 0.0  ;;  %v1435_v7 = vld [vmem:[%s4569_s3 + $0x2c0] sm:$0xff] }
  0x9a   : > { %1606 = vmatmul.mubr.f32.gmra.mxu0 %v682_v50  ;;  %1831 = vmatmul.mubr.f32.gmra.mxu1 %v3715_v19  ;;  %v3868_v50 = vld [vmem:[#allocation2 + $0x108] sm:$0xff] }
  0x9b   : > { %1610 = vmatprep.mubr.f32.mxu0 %v426_v26  ;;  %1835 = vmatprep.mubr.f32.mxu1 %v3718_v27  ;;  %v1448_v26 = vld [vmem:[%s4569_s3 + $0x328] sm:$0xff] }
  0x9c   : > { %1963 = vmatprep.subr.mxu0 %v3043_v3  ;;  %2184 = vmatprep.subr.mxu1 %v3043_v3 }
  0x9d   : > { %1964 = vmatpush1.msra.mxu0 %v1415_v43  ;;  %2185 = vmatpush1.msra.mxu1 %v1449_v10  ;;  %v3916_v43 = vld [vmem:[#allocation2 + $0x10a] sm:$0xff] }
  0x9e   : > { %1611 = vmatmul.mubr.f32.gmra.mxu0 %v683_v14  ;;  %1836 = vmatmul.mubr.f32.gmra.mxu1 %v3731_v20  ;;  %v3885_v14 = vld [vmem:[#allocation2 + $0x110] sm:$0xff]  ;;  %v3919_v10 = vld [vmem:[#allocation2 + $0x128] sm:$0xff] }
  0x9f   : > { %1615 = vmatprep.mubr.f32.mxu0 %v427_v32  ;;  %1840 = vmatprep.mubr.f32.mxu1 %v3734_v34  ;;  %v1447_v32 = vld [vmem:[%s4569_s3 + $0x320] sm:$0xff] }
  0xa0   : > { %1965 = vmatprep.subr.mxu0 %v3043_v3  ;;  %2186 = vmatprep.subr.mxu1 %v3043_v3 }
  0xa1   : > { %1966 = vmatpush1.msra.mxu0 %v1414_v16  ;;  %2187 = vmatpush1.msra.mxu1 %v1448_v26  ;;  %v1469_v16 = vld [vmem:[%s4569_s3 + $0x3d0] sm:$0xff]  ;;  %v4589_v26 = vmax.f32 %v3512_v17, 0.0  ;;  %v1434_v17 = vld [vmem:[%s4569_s3 + $0x2b8] sm:$0xff] }
  0xa2   : > { %1616 = vmatmul.mubr.f32.gmra.mxu0 %v684_v37  ;;  %1841 = vmatmul.mubr.f32.gmra.mxu1 %v3747_v28  ;;  %v3902_v37 = vld [vmem:[#allocation2 + $0x120] sm:$0xff] }
  0xa3   : > { %1620 = vmatprep.mubr.f32.mxu0 %v428_v39  ;;  %1845 = vmatprep.mubr.f32.mxu1 %v3750_v36  ;;  %v1446_v39 = vld [vmem:[%s4569_s3 + $0x318] sm:$0xff] }
  0xa4   : > { %1967 = vmatprep.subr.mxu0 %v3043_v3  ;;  %2188 = vmatprep.subr.mxu1 %v3043_v3 }
  0xa5   : > { %1968 = vmatpush1.msra.mxu0 %v1413_v21  ;;  %2189 = vmatpush1.msra.mxu1 %v1447_v32  ;;  %v3933_v21 = vld [vmem:[#allocation2 + $0x112] sm:$0xff] }
  0xa6   : > { %1621 = vmatmul.mubr.f32.gmra.mxu0 %v3718_v27  ;;  %1846 = vmatmul.mubr.f32.gmra.mxu1 %v3763_v44  ;;  %v3936_v32 = vld [vmem:[#allocation2 + $0x138] sm:$0xff] }
  0xa7   : > { %1625 = vmatprep.mubr.f32.mxu0 %v429_v45  ;;  %1850 = vmatprep.mubr.f32.mxu1 %v3766_v54  ;;  %v1445_v45 = vld [vmem:[%s4569_s3 + $0x310] sm:$0xff] }
  0xa8   : > { %1969 = vmatprep.subr.mxu0 %v3043_v3  ;;  %2190 = vmatprep.subr.mxu1 %v3043_v3 }
  0xa9   : > { %1970 = vmatpush1.msra.mxu0 %v1412_v29  ;;  %2191 = vmatpush1.msra.mxu1 %v1446_v39  ;;  %v1468_v29 = vld [vmem:[%s4569_s3 + $0x3c8] sm:$0xff]  ;;  %v4590_v39 = vmax.f32 %v3525_v31, 0.0  ;;  %v1433_v31 = vld [vmem:[%s4569_s3 + $0x2b0] sm:$0xff] }
  0xaa   : > { %1626 = vmatmul.mubr.f32.gmra.mxu0 %v3734_v34  ;;  %1851 = vmatmul.mubr.f32.gmra.mxu1 %v3780_v41 }
  0xab   : > { %1630 = vmatprep.mubr.f32.mxu0 %v430_v51  ;;  %1855 = vmatprep.mubr.f32.mxu1 %v3783_v11  ;;  %v1444_v51 = vld [vmem:[%s4569_s3 + $0x308] sm:$0xff] }
  0xac   : > { %1971 = vmatprep.subr.mxu0 %v3043_v3  ;;  %2192 = vmatprep.subr.mxu1 %v3043_v3 }
  0xad   : > { %1972 = vmatpush1.msra.mxu0 %v1411_v33  ;;  %2193 = vmatpush1.msra.mxu1 %v1445_v45  ;;  %v3950_v33 = vld [vmem:[#allocation2 + $0x122] sm:$0xff] }
  0xae   : > { %1631 = vmatmul.mubr.f32.gmra.mxu0 %v3750_v36  ;;  %1856 = vmatmul.mubr.f32.gmra.mxu1 %v3797_v48  ;;  %v3953_v45 = vld [vmem:[#allocation2 + $0x140] sm:$0xff] }
  0xaf   : > { %1635 = vmatprep.mubr.f32.mxu0 %v431_v53  ;;  %1860 = vmatprep.mubr.f32.mxu1 %v3800_v59  ;;  %v1443_v53 = vld [vmem:[%s4569_s3 + $0x300] sm:$0xff] }
  0xb0   : > { %1973 = vmatprep.subr.mxu0 %v3043_v3  ;;  %2194 = vmatprep.subr.mxu1 %v3043_v3 }
  0xb1   : > { %1974 = vmatpush2.msra.mxu0 %v1442_v40  ;;  %2195 = vmatpush1.msra.mxu1 %v1444_v51  ;;  %v1467_v40 = vld [vmem:[%s4569_s3 + $0x3c0] sm:$0xff]  ;;  %v4591_v51 = vmax.f32 %v3532_v38, 0.0  ;;  %v1432_v38 = vld [vmem:[%s4569_s3 + $0x2a8] sm:$0xff] }
  0xb2   : > { %1636 = vmatmul.mubr.f32.gmra.mxu0 %v3766_v54  ;;  %1861 = vmatmul.mubr.f32.gmra.mxu1 %v3814_v12 }
  0xb3   : > { %1640 = vmatprep.mubr.f32.mxu0 %v432_v62  ;;  %1865 = vmatprep.mubr.f32.mxu1 %v3817_v47  ;;  %v1474_v62 = vld [vmem:[%s4569_s3 + $0x3f8] sm:$0xff] }
  0xb4   : > { %1975 = vmatprep.subr.mxu0 %v3043_v3  ;;  %2196 = vmatprep.subr.mxu1 %v3043_v3 }
  0xb5   : > { %1976 = vmatpush2.msra.mxu0 %v1441_v46  ;;  %2197 = vmatpush1.msra.mxu1 %v1443_v53  ;;  %v3967_v46 = vld [vmem:[#allocation2 + $0x12a] sm:$0xff] }
  0xb6   : > { %1641 = vmatmul.mubr.f32.gmra.mxu0 %v3783_v11  ;;  %1866 = vmatmul.mubr.f32.gmra.mxu1 %v3831_v55  ;;  %v3970_v53 = vld [vmem:[#allocation2 + $0x150] sm:$0xff] }
  0xb7   : > { %1645 = vmatprep.mubr.f32.mxu0 %v433_v63  ;;  %1870 = vmatprep.mubr.f32.mxu1 %v3834_v2  ;;  %v1473_v63 = vld [vmem:[%s4569_s3 + $0x3f0] sm:$0xff] }
  0xb8   : > { %1977 = vmatprep.subr.mxu0 %v3043_v3  ;;  %2198 = vmatprep.subr.mxu1 %v3043_v3 }
  0xb9   : > { %1978 = vmatpush2.msra.mxu0 %v1440_v52  ;;  %2199 = vmatpush2.msra.mxu1 %v1474_v62  ;;  %v1466_v52 = vld [vmem:[%s4569_s3 + $0x3b8] sm:$0xff]  ;;  %v4592_v62 = vmax.f32 %v3553_v6, 0.0  ;;  %v1431_v6 = vld [vmem:[%s4569_s3 + $0x2a0] sm:$0xff] }
  0xba   : > { %1646 = vmatmul.mubr.f32.gmra.mxu0 %v3800_v59  ;;  %1871 = vmatmul.mubr.f32.gmra.mxu1 %v3848_v1 }
  0xbb   : > { %1650 = vmatprep.mubr.f32.mxu0 %v4585_v56  ;;  %1875 = vmatprep.mubr.f32.mxu1 %v3851_v49  ;;  %v1465_v56 = vld [vmem:[%s4569_s3 + $0x3b0] sm:$0xff] }
  0xbc   : > { %1979 = vmatprep.subr.mxu0 %v3043_v3  ;;  %2200 = vmatprep.subr.mxu1 %v3043_v3 }
  0xbd   : > { %1980 = vmatpush2.msra.mxu0 %v1439_v57  ;;  %2201 = vmatpush2.msra.mxu1 %v1473_v63  ;;  %v3984_v57 = vld [vmem:[#allocation2 + $0x13a] sm:$0xff] }
  0xbe   : > { %1651 = vmatmul.mubr.f32.gmra.mxu0 %v3817_v47  ;;  %1876 = vmatmul.mubr.f32.gmra.mxu1 %v3865_v4  ;;  %v3987_v63 = vld [vmem:[#allocation2 + $0x158] sm:$0xff] }
  0xbf   : > { %1655 = vmatprep.mubr.f32.mxu0 %v4586_v60  ;;  %1880 = vmatprep.mubr.f32.mxu1 %v3868_v50  ;;  %v4004_v60 = vld [vmem:[#allocation2 + $0x168] sm:$0xff] }
  0xc0   : > { %1981 = vmatprep.subr.mxu0 %v3043_v3  ;;  %2202 = vmatprep.subr.mxu1 %v3043_v3 }
  0xc1   : > { %1982 = vmatpush2.msra.mxu0 %v1438_v13  ;;  %2203 = vmatpush2.msra.mxu1 %v1472_v61  ;;  %v4593_v13 = vmax.f32 %v3564_v23, 0.0  ;;  %v4001_v61 = vld [vmem:[#allocation2 + $0x142] sm:$0xff]  ;;  %v1430_v23 = vld [vmem:[%s4569_s3 + $0x298] sm:$0xff] }
  0xc2   : > { %1656 = vmatmul.mubr.f32.gmra.mxu0 %v3834_v2  ;;  %1881 = vmatmul.mubr.f32.gmra.mxu1 %v3882_v8 }
  0xc3   : > { %1660 = vmatprep.mubr.f32.mxu0 %v4587_v5  ;;  %1885 = vmatprep.mubr.f32.mxu1 %v3885_v14  ;;  %v4018_v5 = vld [vmem:[#allocation2 + $0x152] sm:$0xff] }
  0xc4   : > { %1983 = vmatprep.subr.mxu0 %v3043_v3  ;;  %2204 = vmatprep.subr.mxu1 %v3043_v3 }
  0xc5   : > { %1984 = vmatpush2.msra.mxu0 %v1437_v30  ;;  %2205 = vmatpush2.msra.mxu1 %v1471_v18  ;;  %v1464_v30 = vld [vmem:[%s4569_s3 + $0x3a8] sm:$0xff]  ;;  %v4594_v18 = vmax.f32 %v3576_v0, 0.0  ;;  %v1429_v0 = vld [vmem:[%s4569_s3 + $0x290] sm:$0xff] }
  0xc6   : > { %1661 = vmatmul.mubr.f32.gmra.mxu0 %v3851_v49  ;;  %1886 = vmatmul.mubr.f32.gmra.mxu1 %v3899_v15 }
  0xc7   : > { %1665 = vmatprep.mubr.f32.mxu0 %v4588_v9  ;;  %1890 = vmatprep.mubr.f32.mxu1 %v3902_v37  ;;  %v4595_v9 = vmax.f32 %v3588_v24, 0.0  ;;  %v1428_v24 = vld [vmem:[%s4569_s3 + $0x288] sm:$0xff] }
  0xc8   : > { %1985 = vmatprep.subr.mxu0 %v3043_v3  ;;  %2206 = vmatprep.subr.mxu1 %v3043_v3 }
  0xc9   : > { %1986 = vmatpush2.msra.mxu0 %v1436_v58  ;;  %2207 = vmatpush2.msra.mxu1 %v1470_v35  ;;  %v4021_v58 = vld [vmem:[#allocation2 + $0x170] sm:$0xff]  ;;  %v1463_v35 = vld [vmem:[%s4569_s3 + $0x3a0] sm:$0xff] }
  0xca   : > { %1666 = vmatmul.mubr.f32.gmra.mxu0 %v3868_v50  ;;  %1891 = vmatmul.mubr.f32.gmra.mxu1 %v3916_v43 }
  0xcb   : > { %1670 = vmatprep.mubr.f32.mxu0 %v4589_v26  ;;  %1895 = vmatprep.mubr.f32.mxu1 %v3919_v10  ;;  %v1462_v26 = vld [vmem:[%s4569_s3 + $0x398] sm:$0xff] }
  0xcc   : > { %1987 = vmatprep.subr.mxu0 %v3043_v3  ;;  %2208 = vmatprep.subr.mxu1 %v3043_v3 }
  0xcd   : > { %1988 = vmatpush2.msra.mxu0 %v1435_v7  ;;  %2209 = vmatpush2.msra.mxu1 %v1469_v16  ;;  %v4035_v7 = vld [vmem:[#allocation2 + $0x15a] sm:$0xff] }
  0xce   : > { %1671 = vmatmul.mubr.f32.gmra.mxu0 %v3885_v14  ;;  %1896 = vmatmul.mubr.f32.gmra.mxu1 %v3933_v21  ;;  %v4039_v16 = vld [vmem:[#allocation2 + $0x180] sm:$0xff] }
  0xcf   : > { %1675 = vmatprep.mubr.f32.mxu0 %v4590_v39  ;;  %1900 = vmatprep.mubr.f32.mxu1 %v3936_v32  ;;  %v4056_v39 = vld [vmem:[#allocation2 + $0x188] sm:$0xff] }
  0xd0   : > { %1989 = vmatprep.subr.mxu0 %v3043_v3  ;;  %2210 = vmatprep.subr.mxu1 %v3043_v3 }
  0xd1   : > { %1990 = vmatpush2.msra.mxu0 %v1434_v17  ;;  %2211 = vmatpush2.msra.mxu1 %v1468_v29  ;;  %v4596_v17 = vmax.f32 %v3598_v22, 0.0  ;;  %v4052_v29 = vld [vmem:[#allocation2 + $0x16a] sm:$0xff]  ;;  %v4066_v22 = vld [vmem:[#allocation2 + $0x172] sm:$0xff] }
  0xd2   : > { %1676 = vmatmul.mubr.f32.gmra.mxu0 %v3902_v37  ;;  %1901 = vmatmul.mubr.f32.gmra.mxu1 %v3950_v33 }
  0xd3   : > { %1680 = vmatprep.mubr.f32.mxu0 %v4591_v51  ;;  %1905 = vmatprep.mubr.f32.mxu1 %v3953_v45  ;;  %v1460_v51 = vld [vmem:[%s4569_s3 + $0x388] sm:$0xff] }
  0xd4   : > { %1991 = vmatprep.subr.mxu0 %v3043_v3  ;;  %2212 = vmatprep.subr.mxu1 %v3043_v3 }
  0xd5   : > { %1992 = vmatpush2.msra.mxu0 %v1433_v31  ;;  %2213 = vmatpush2.msra.mxu1 %v1467_v40  ;;  %v1461_v31 = vld [vmem:[%s4569_s3 + $0x390] sm:$0xff]  ;;  %v1427_v40 = vld [vmem:[%s4569_s3 + $0x280] sm:$0xff] }
  0xd6   : > { %1681 = vmatmul.mubr.f32.gmra.mxu0 %v3919_v10  ;;  %1906 = vmatmul.mubr.f32.gmra.mxu1 %v3967_v46 }
  0xd7   : > { %1685 = vmatprep.mubr.f32.mxu0 %v4592_v62  ;;  %1910 = vmatprep.mubr.f32.mxu1 %v3970_v53  ;;  %v867_v62 = vld [vmem:[#allocation2 + $0x30] sm:$0xff] }
  0xd8   : > { %1993 = vmatprep.subr.mxu0 %v3043_v3  ;;  %2214 = vmatprep.subr.mxu1 %v3043_v3 }
  0xd9   : > { %1994 = vmatpush2.msra.mxu0 %v1432_v38  ;;  %2215 = vmatpush2.msra.mxu1 %v1466_v52  ;;  %v802_v38 = vld [vmem:[#allocation2 + $0x1a] sm:$0xff] }
  0xda   : > { %1686 = vmatmul.mubr.f32.gmra.mxu0 %v3936_v32  ;;  %1911 = vmatmul.mubr.f32.gmra.mxu1 %v3984_v57  ;;  %v738_v52 = vld [vmem:[#allocation2 + $0x19] sm:$0xff] }
  0xdb   : > { %1690 = vmatprep.mubr.f32.mxu0 %v4593_v13  ;;  %1915 = vmatprep.mubr.f32.mxu1 %v3987_v63  ;;  %v932_v13 = vld [vmem:[#allocation2 + $0x39] sm:$0xff] }
  0xdc   : > { %1995 = vmatprep.subr.mxu0 %v3043_v3  ;;  %2216 = vmatprep.subr.mxu1 %v3043_v3 }
  0xdd   : > { %1996 = vmatpush2.msra.mxu0 %v1431_v6  ;;  %2217 = vmatpush2.msra.mxu1 %v1465_v56  ;;  %v1490_v6 = vld [vmem:[%s4569_s3 + $0x478] sm:$0xff]  ;;  %v803_v56 = vld [vmem:[#allocation2 + $0x22] sm:$0xff] }
  0xde   : > { %1691 = vmatmul.mubr.f32.gmra.mxu0 %v3953_v45  ;;  %1916 = vmatmul.mubr.f32.gmra.mxu1 %v4001_v61 }
  0xdf   : > { %1695 = vmatprep.mubr.f32.mxu0 %v4594_v18  ;;  %1920 = vmatprep.mubr.f32.mxu1 %v4004_v60  ;;  %v868_v18 = vld [vmem:[#allocation2 + $0x38] sm:$0xff] }
  0xe0   : > { %1997 = vmatprep.subr.mxu0 %v3043_v3  ;;  %2218 = vmatprep.subr.mxu1 %v3043_v3 }
  0xe1   : > { %1998 = vmatpush2.msra.mxu0 %v1430_v23  ;;  %2219 = vmatpush2.msra.mxu1 %v1464_v30  ;;  %v1489_v23 = vld [vmem:[%s4569_s3 + $0x470] sm:$0xff]  ;;  %v739_v30 = vld [vmem:[#allocation2 + $0x21] sm:$0xff] }
  0xe2   : > { %1696 = vmatmul.mubr.f32.gmra.mxu0 %v3970_v53  ;;  %1921 = vmatmul.mubr.f32.gmra.mxu1 %v4018_v5 }
  0xe3   : > { %1700 = vmatprep.mubr.f32.mxu0 %v4595_v9  ;;  %1925 = vmatprep.mubr.f32.mxu1 %v4021_v58  ;;  %v869_v9 = vld [vmem:[#allocation2 + $0x48] sm:$0xff] }
  0xe4   : > { %1999 = vmatprep.subr.mxu0 %v3043_v3  ;;  %2220 = vmatprep.subr.mxu1 %v3043_v3 }
  0xe5   : > { %2000 = vmatpush2.msra.mxu0 %v1429_v0  ;;  %2221 = vmatpush2.msra.mxu1 %v1463_v35  ;;  %v933_v0 = vld [vmem:[#allocation2 + $0x49] sm:$0xff] }
  0xe6   : > { %1701 = vmatmul.mubr.f32.gmra.mxu0 %v3987_v63  ;;  %1926 = vmatmul.mubr.f32.gmra.mxu1 %v4035_v7  ;;  %v1488_v35 = vld [vmem:[%s4569_s3 + $0x468] sm:$0xff] }
  0xe7   : > { %1705 = vmatprep.mubr.f32.mxu0 %v4596_v17  ;;  %1930 = vmatprep.mubr.f32.mxu1 %v4039_v16  ;;  %v1487_v17 = vld [vmem:[%s4569_s3 + $0x460] sm:$0xff] }
  0xe8   : > { %2001 = vmatprep.subr.mxu0 %v3043_v3  ;;  %2222 = vmatprep.subr.mxu1 %v3043_v3 }
  0xe9   : > { %2002 = vmatpush2.msra.mxu0 %v1428_v24  ;;  %2223 = vmatpush2.msra.mxu1 %v1462_v26  ;;  %v4095_v24 = vld [vmem:[#allocation2 + $0x3a] sm:$0xff]  ;;  %v934_v26 = vld [vmem:[#allocation2 + $0x51] sm:$0xff] }
  0xea   : > { %1706 = vmatmul.mubr.f32.gmra.mxu0 %v4004_v60  ;;  %1931 = vmatmul.mubr.f32.gmra.mxu1 %v4052_v29 }
  0xeb   : > { %2224 = vmatprep.subr.mxu1 %v3043_v3  ;;  %1710 = vmatprep.mubr.f32.mxu0 %v446_v42  ;;  %v931_v42 = vld [vmem:[#allocation2 + $0x31] sm:$0xff] }
  0xec   : > { %1935 = vmatprep.mubr.f32.mxu1 %v4056_v39  ;;  %2225 = vmatpush2.msra.mxu1 %v1461_v31  ;;  %v870_v31 = vld [vmem:[#allocation2 + $0x50] sm:$0xff] }
  0xed   : > { %2003 = vmatprep.subr.mxu0 %v3043_v3  ;;  %2226 = vmatprep.subr.mxu1 %v3043_v3 }
  0xee   : > { %1711 = vmatmul.mubr.f32.gmra.mxu0 %v4021_v58  ;;  %1936 = vmatmul.mubr.f32.gmra.mxu1 %v4066_v22 }
  0xef   : > { %2004 = vmatpush2.msra.mxu0 %v1427_v40  ;;  %2227 = vmatpush2.msra.mxu1 %v1460_v51  ;;  %v4101_v40 = vld [vmem:[#allocation2 + $0x4a] sm:$0xff]  ;;  %v935_v51 = vld [vmem:[#allocation2 + $0x61] sm:$0xff] }
  0xf0   : > { %2228 = vmatprep.subr.mxu1 %v3043_v3  ;;  %2005 = vmatprep.mubr.f32.mxu0 %v802_v38  ;;  %v4089_v3 = vld [vmem:[#allocation2 + $0x32] sm:$0xff] }
  0xf1   : > { %2229 = vmatpush2.msra.mxu1 %v1459_v25  ;;  %2230 = vmatprep.mubr.f32.mxu1 %v931_v42  ;;  %v1486_v38 = vld [vmem:[%s4569_s3 + $0x458] sm:$0xff]  ;;  %v871_v25 = vld [vmem:[#allocation2 + $0x60] sm:$0xff] }
  0xf2   : > { %2006 = vmatmul.mubr.f32.vlgmr.msra.gmra.mxu0 %v738_v52  ;;  %2231 = vmatmul.mubr.f32.vlgmr.msra.gmra.mxu1 %v867_v62  ;;  %v936_v52 = vld [vmem:[#allocation2 + $0x69] sm:$0xff] }
  0xf3   : > { %2891 = vmatprep.subr.mxu0 %v1490_v6  ;;  %2010 = vmatprep.mubr.f32.mxu0 %v803_v56  ;;  %v1485_v62 = vld [vmem:[%s4569_s3 + $0x450] sm:$0xff]  ;;  %v4113_v56 = vld [vmem:[#allocation2 + $0x62] sm:$0xff] }
  0xf4   : > { %2892 = vmatpush3.msra.mxu0 %v1490_v6  ;;  %2235 = vmatprep.mubr.f32.mxu1 %v932_v13 }
  0xf5   : > { %2893 = vmatprep.subr.mxu0 %v1489_v23  ;;  %2971 = vmatprep.subr.mxu1 %v1490_v6 }
  0xf6   : > { %2011 = vmatmul.mubr.f32.gmra.mxu0 %v739_v30  ;;  %2236 = vmatmul.mubr.f32.gmra.mxu1 %v868_v18  ;;  %v873_v30 = vld [vmem:[#allocation2 + $0x78] sm:$0xff]  ;;  %v4119_v18 = vld [vmem:[#allocation2 + $0x6a] sm:$0xff] }
  0xf7   : > { %2015 = vmatprep.mubr.f32.mxu0 %v4089_v3  ;;  %2240 = vmatprep.mubr.f32.mxu1 %v933_v0 }
  0xf8   : > { %2894 = vmatpush3.msra.mxu0 %v1489_v23  ;;  %2987 = vmatpush3.msra.mxu1 %v1490_v6  ;;  %v872_v6 = vld [vmem:[#allocation2 + $0x68] sm:$0xff] }
  0xf9   : > { %2895 = vmatprep.subr.mxu0 %v1488_v35  ;;  %2972 = vmatprep.subr.mxu1 %v1489_v23 }
  0xfa   : > { %2016 = vmatmul.mubr.f32.gmra.mxu0 %v931_v42  ;;  %2241 = vmatmul.mubr.f32.gmra.mxu1 %v869_v9  ;;  %v4107_v42 = vld [vmem:[#allocation2 + $0x52] sm:$0xff]  ;;  %v874_v9 = vld [vmem:[#allocation2 + $0x80] sm:$0xff] }
  0xfb   : > { %2020 = vmatprep.mubr.f32.mxu0 %v4095_v24  ;;  %2245 = vmatprep.mubr.f32.mxu1 %v934_v26 }
  0xfc   : > { %2896 = vmatpush3.msra.mxu0 %v1488_v35  ;;  %2988 = vmatpush3.msra.mxu1 %v1489_v23  ;;  %v1484_v23 = vld [vmem:[%s4569_s3 + $0x448] sm:$0xff] }
  0xfd   : > { %2897 = vmatprep.subr.mxu0 %v1487_v17  ;;  %2973 = vmatprep.subr.mxu1 %v1488_v35 }
  0xfe   : > { %2021 = vmatmul.mubr.f32.gmra.mxu0 %v932_v13  ;;  %2246 = vmatmul.mubr.f32.gmra.mxu1 %v870_v31  ;;  %v937_v13 = vld [vmem:[#allocation2 + $0x79] sm:$0xff]  ;;  %v875_v31 = vld [vmem:[#allocation2 + $0x90] sm:$0xff] }
  0xff   : > { %2025 = vmatprep.mubr.f32.mxu0 %v4101_v40  ;;  %2250 = vmatprep.mubr.f32.mxu1 %v935_v51 }
 0x100   : > { %2898 = vmatpush3.msra.mxu0 %v1487_v17  ;;  %2989 = vmatpush3.msra.mxu1 %v1488_v35  ;;  %v1483_v35 = vld [vmem:[%s4569_s3 + $0x440] sm:$0xff] }
 0x101   : > { %2899 = vmatprep.subr.mxu0 %v1486_v38  ;;  %2974 = vmatprep.subr.mxu1 %v1487_v17 }
 0x102   : > { %2026 = vmatmul.mubr.f32.gmra.mxu0 %v933_v0  ;;  %2251 = vmatmul.mubr.f32.gmra.mxu1 %v871_v25  ;;  %v938_v0 = vld [vmem:[#allocation2 + $0x81] sm:$0xff]  ;;  %v3014_v25 = vld [vmem:[#allocation2 + $0xa9] sm:$0xff] }
 0x103   : > { %2030 = vmatprep.mubr.f32.mxu0 %v4107_v42  ;;  %2255 = vmatprep.mubr.f32.mxu1 %v936_v52 }
 0x104   : > { %2900 = vmatpush3.msra.mxu0 %v1486_v38  ;;  %2990 = vmatpush3.msra.mxu1 %v1487_v17  ;;  %v1482_v17 = vld [vmem:[%s4569_s3 + $0x438] sm:$0xff] }
 0x105   : > { %2901 = vmatprep.subr.mxu0 %v1485_v62  ;;  %2975 = vmatprep.subr.mxu1 %v1486_v38 }
 0x106   : > { %2031 = vmatmul.mubr.f32.gmra.mxu0 %v934_v26  ;;  %2256 = vmatmul.mubr.f32.gmra.mxu1 %v872_v6  ;;  %v939_v26 = vld [vmem:[#allocation2 + $0x91] sm:$0xff] }
 0x107   : > { %2035 = vmatprep.mubr.f32.mxu0 %v4113_v56  ;;  %2260 = vmatprep.mubr.f32.mxu1 %v937_v13  ;;  %v751_v6 = vld [vmem:[#allocation2 + $0xb1] sm:$0xff] }
 0x108   : > { %2902 = vmatpush3.msra.mxu0 %v1485_v62  ;;  %2991 = vmatpush3.msra.mxu1 %v1486_v38  ;;  %v3013_v38 = vld [vmem:[#allocation2 + $0x99] sm:$0xff] }
 0x109   : > { %2903 = vmatprep.subr.mxu0 %v1484_v23  ;;  %2976 = vmatprep.subr.mxu1 %v1485_v62 }
 0x10a   : > { %2036 = vmatmul.mubr.f32.gmra.mxu0 %v935_v51  ;;  %2261 = vmatmul.mubr.f32.gmra.mxu1 %v873_v30  ;;  %v1481_v51 = vld [vmem:[%s4569_s3 + $0x430] sm:$0xff] }
 0x10b   : > { %2040 = vmatprep.mubr.f32.mxu0 %v4119_v18  ;;  %2265 = vmatprep.mubr.f32.mxu1 %v938_v0 }
 0x10c   : > { %2904 = vmatpush3.msra.mxu0 %v1484_v23  ;;  %2992 = vmatpush3.msra.mxu1 %v1485_v62  ;;  %v750_v62 = vld [vmem:[#allocation2 + $0xa9] sm:$0xff] }
 0x10d   : > { %2905 = vmatprep.subr.mxu0 %v1483_v35  ;;  %2977 = vmatprep.subr.mxu1 %v1484_v23 }
 0x10e   : > { %2041 = vmatmul.mubr.f32.gmra.mxu0 %v936_v52  ;;  %2266 = vmatmul.mubr.f32.gmra.mxu1 %v874_v9  ;;  %v749_v52 = vld [vmem:[#allocation2 + $0x99] sm:$0xff]  ;;  %v3022_v9 = vld [vmem:[#allocation2 + $0x109] sm:$0xff] }
 0x10f   : > { %2045 = vmatprep.mubr.f32.mxu0 %v3715_v19  ;;  %2270 = vmatprep.mubr.f32.mxu1 %v939_v26  ;;  %v1480_v19 = vld [vmem:[%s4569_s3 + $0x428] sm:$0xff] }
 0x110   : > { %2906 = vmatpush3.msra.mxu0 %v1483_v35  ;;  %2993 = vmatpush3.msra.mxu1 %v1484_v23  ;;  %v3021_v23 = vld [vmem:[#allocation2 + $0xf9] sm:$0xff] }
 0x111   : > { %2907 = vmatprep.subr.mxu0 %v1482_v17  ;;  %2978 = vmatprep.subr.mxu1 %v1483_v35 }
 0x112   : > { %2046 = vmatmul.mubr.f32.gmra.mxu0 %v937_v13  ;;  %2271 = vmatmul.mubr.f32.gmra.mxu1 %v875_v31 }
 0x113   : > { %2050 = vmatprep.mubr.f32.mxu0 %v3731_v20  ;;  %2275 = vmatprep.mubr.f32.mxu1 %v3013_v38  ;;  %v1479_v20 = vld [vmem:[%s4569_s3 + $0x420] sm:$0xff] }
 0x114   : > { %2908 = vmatpush3.msra.mxu0 %v1482_v17  ;;  %2994 = vmatpush3.msra.mxu1 %v1483_v35 }
 0x115   : > { %2909 = vmatprep.subr.mxu0 %v1481_v51  ;;  %2979 = vmatprep.subr.mxu1 %v1482_v17 }
 0x116   : > { %2051 = vmatmul.mubr.f32.gmra.mxu0 %v938_v0  ;;  %2276 = vmatmul.mubr.f32.gmra.mxu1 %v3718_v27  ;;  %v3015_v27 = vld [vmem:[#allocation2 + $0xb1] sm:$0xff] }
 0x117   : > { %2055 = vmatprep.mubr.f32.mxu0 %v3747_v28  ;;  %2280 = vmatprep.mubr.f32.mxu1 %v3014_v25  ;;  %v3016_v28 = vld [vmem:[#allocation2 + $0xc1] sm:$0xff] }
 0x118   : > { %2910 = vmatpush3.msra.mxu0 %v1481_v51  ;;  %2995 = vmatpush3.msra.mxu1 %v1482_v17 }
 0x119   : > { %2911 = vmatprep.subr.mxu0 %v1480_v19  ;;  %2980 = vmatprep.subr.mxu1 %v1481_v51 }
 0x11a   : > { %2056 = vmatmul.mubr.f32.gmra.mxu0 %v939_v26  ;;  %2281 = vmatmul.mubr.f32.gmra.mxu1 %v3734_v34  ;;  %v1478_v34 = vld [vmem:[%s4569_s3 + $0x418] sm:$0xff] }
 0x11b   : > { %2060 = vmatprep.mubr.f32.mxu0 %v3763_v44  ;;  %2285 = vmatprep.mubr.f32.mxu1 %v3015_v27  ;;  %v3017_v44 = vld [vmem:[#allocation2 + $0xc9] sm:$0xff] }
 0x11c   : > { %2912 = vmatpush3.msra.mxu0 %v1480_v19  ;;  %2996 = vmatpush3.msra.mxu1 %v1481_v51  ;;  %v3023_v51 = vld [vmem:[#allocation2 + $0x111] sm:$0xff] }
 0x11d   : > { %2913 = vmatprep.subr.mxu0 %v1479_v20  ;;  %2981 = vmatprep.subr.mxu1 %v1480_v19 }
 0x11e   : > { %2061 = vmatmul.mubr.f32.gmra.mxu0 %v749_v52  ;;  %2286 = vmatmul.mubr.f32.gmra.mxu1 %v3750_v36  ;;  %v1477_v36 = vld [vmem:[%s4569_s3 + $0x410] sm:$0xff] }
 0x11f   : > { %2065 = vmatprep.mubr.f32.mxu0 %v3780_v41  ;;  %2290 = vmatprep.mubr.f32.mxu1 %v3016_v28  ;;  %v3018_v41 = vld [vmem:[#allocation2 + $0xd9] sm:$0xff] }
 0x120   : > { %2914 = vmatpush3.msra.mxu0 %v1479_v20  ;;  %2997 = vmatpush3.msra.mxu1 %v1480_v19 }
 0x121   : > { %2915 = vmatprep.subr.mxu0 %v1478_v34  ;;  %2982 = vmatprep.subr.mxu1 %v1479_v20 }
 0x122   : > { %2066 = vmatmul.mubr.f32.gmra.mxu0 %v750_v62  ;;  %2291 = vmatmul.mubr.f32.gmra.mxu1 %v3766_v54  ;;  %v1476_v54 = vld [vmem:[%s4569_s3 + $0x408] sm:$0xff] }
 0x123   : > { %2070 = vmatprep.mubr.f32.mxu0 %v3797_v48  ;;  %2295 = vmatprep.mubr.f32.mxu1 %v3017_v44  ;;  %v1475_v48 = vld [vmem:[%s4569_s3 + $0x400] sm:$0xff] }
 0x124   : > { %2916 = vmatpush3.msra.mxu0 %v1478_v34  ;;  %2998 = vmatpush3.msra.mxu1 %v1479_v20  ;;  %v3024_v20 = vld [vmem:[#allocation2 + $0x121] sm:$0xff] }
 0x125   : > { %2917 = vmatprep.subr.mxu0 %v1477_v36  ;;  %2983 = vmatprep.subr.mxu1 %v1478_v34 }
 0x126   : > { %2071 = vmatmul.mubr.f32.gmra.mxu0 %v751_v6  ;;  %2296 = vmatmul.mubr.f32.gmra.mxu1 %v3783_v11  ;;  %v3019_v11 = vld [vmem:[#allocation2 + $0xe1] sm:$0xff]  ;;  %v3026_v6 = vld [vmem:[#allocation2 + $0x139] sm:$0xff] }
 0x127   : > { %2075 = vmatprep.mubr.f32.mxu0 %v3814_v12  ;;  %2300 = vmatprep.mubr.f32.mxu1 %v3018_v41  ;;  %v3020_v12 = vld [vmem:[#allocation2 + $0xf1] sm:$0xff] }
 0x128   : > { %2918 = vmatpush3.msra.mxu0 %v1477_v36  ;;  %2999 = vmatpush3.msra.mxu1 %v1478_v34 }
 0x129   : > { %2919 = vmatprep.subr.mxu0 %v1476_v54  ;;  %2984 = vmatprep.subr.mxu1 %v1477_v36 }
 0x12a   : > { %2076 = vmatmul.mubr.f32.gmra.mxu0 %v3016_v28  ;;  %2301 = vmatmul.mubr.f32.gmra.mxu1 %v3800_v59  ;;  %v3025_v28 = vld [vmem:[#allocation2 + $0x129] sm:$0xff] }
 0x12b   : > { %2080 = vmatprep.mubr.f32.mxu0 %v3831_v55  ;;  %2305 = vmatprep.mubr.f32.mxu1 %v3019_v11 }
 0x12c   : > { %2920 = vmatpush3.msra.mxu0 %v1476_v54  ;;  %3000 = vmatpush3.msra.mxu1 %v1477_v36 }
 0x12d   : > { %2921 = vmatprep.subr.mxu0 %v1475_v48  ;;  %2985 = vmatprep.subr.mxu1 %v1476_v54 }
 0x12e   : > { %2081 = vmatmul.mubr.f32.gmra.mxu0 %v3017_v44  ;;  %2306 = vmatmul.mubr.f32.gmra.mxu1 %v3817_v47 }
 0x12f   : > { %2085 = vmatprep.mubr.f32.mxu0 %v3848_v1  ;;  %2310 = vmatprep.mubr.f32.mxu1 %v3020_v12 }
 0x130   : > { %2922 = vmatpush3.msra.mxu0 %v1475_v48  ;;  %3001 = vmatpush3.msra.mxu1 %v1476_v54 }
 0x131   : > { %2986 = vmatprep.subr.mxu1 %v1475_v48 }
 0x132   : > { %v1557_v59 = vpop.f32.mrf.mxu0  ;;  %v1782_v13 = vpop.f32.mrf.mxu1  ;;  %2086 = vmatmul.mubr.f32.gmra.mxu0 %v3018_v41  ;;  %2311 = vmatmul.mubr.f32.gmra.mxu1 %v3834_v2 }
 0x133   : > { %v4166_v55 = vadd.f32 %v1782_v13, %v1557_v59  ;;  %2090 = vmatprep.mubr.f32.mxu0 %v3865_v4  ;;  %2315 = vmatprep.mubr.f32.mxu1 %v3021_v23 }
 0x134   : > { %v1559_v30 = vpop.f32.mrf.mxu0  ;;  %v1784_v47 = vpop.f32.mrf.mxu1  ;;  %3002 = vmatpush3.msra.mxu1 %v1475_v48 }
 0x136   : > { %v1562_v1 = vpop.f32.mrf.mxu0  ;;  %v1787_v0 = vpop.f32.mrf.mxu1  ;;  %2091 = vmatmul.mubr.f32.gmra.mxu0 %v3019_v11  ;;  %2316 = vmatmul.mubr.f32.gmra.mxu1 %v3851_v49  ;;  %v3027_v11 = vld [vmem:[#allocation2 + $0x141] sm:$0xff] }
 0x137   : > { %v4170_v35 = vadd.f32 %v1787_v0, %v1562_v1  ;;  %2095 = vmatprep.mubr.f32.mxu0 %v3882_v8  ;;  %2320 = vmatprep.mubr.f32.mxu1 %v3022_v9  ;;  %v3029_v0 = vld [vmem:[#allocation2 + $0x159] sm:$0xff] }
 0x138   : > { %v1564_v2 = vpop.f32.mrf.mxu0  ;;  %v1789_v26 = vpop.f32.mrf.mxu1 }
 0x13a   : > { %v1567_v17 = vpop.f32.mrf.mxu0  ;;  %v1792_v4 = vpop.f32.mrf.mxu1  ;;  %2096 = vmatmul.mubr.f32.gmra.mxu0 %v3020_v12  ;;  %2321 = vmatmul.mubr.f32.gmra.mxu1 %v3868_v50 }
 0x13b   : > { %v4174_v31 = vadd.f32 %v1792_v4, %v1567_v17  ;;  %2100 = vmatprep.mubr.f32.mxu0 %v3899_v15  ;;  %2325 = vmatprep.mubr.f32.mxu1 %v3023_v51  ;;  %v3030_v17 = vld [vmem:[#allocation2 + $0x169] sm:$0xff] }
 0x13c   : > { %v1569_v49 = vpop.f32.mrf.mxu0  ;;  %v1794_v38 = vpop.f32.mrf.mxu1 }
 0x13d   : > { %v3031_v38 = vld [vmem:[#allocation2 + $0x171] sm:$0xff] }
 0x13e   : > { %v1572_v19 = vpop.f32.mrf.mxu0  ;;  %v1797_v25 = vpop.f32.mrf.mxu1  ;;  %2101 = vmatmul.mubr.f32.gmra.mxu0 %v3021_v23  ;;  %2326 = vmatmul.mubr.f32.gmra.mxu1 %v3885_v14  ;;  %v3028_v23 = vld [vmem:[#allocation2 + $0x151] sm:$0xff] }
 0x13f   : > { %v4178_v8 = vadd.f32 %v1797_v25, %v1572_v19  ;;  %2105 = vmatprep.mubr.f32.mxu0 %v3916_v43  ;;  %2330 = vmatprep.mubr.f32.mxu1 %v3024_v20 }
 0x140   : > { %v1574_v50 = vpop.f32.mrf.mxu0  ;;  %v1799_v27 = vpop.f32.mrf.mxu1 }
 0x141   : > { %v3032_v50 = vld [vmem:[#allocation2 + $0x181] sm:$0xff] }
 0x142   : > { %v1577_v52 = vpop.f32.mrf.mxu0  ;;  %v1802_v34 = vpop.f32.mrf.mxu1  ;;  %2106 = vmatmul.mubr.f32.gmra.mxu0 %v3022_v9  ;;  %2331 = vmatmul.mubr.f32.gmra.mxu1 %v3902_v37 }
 0x143   : > { %v4182_v15 = vadd.f32 %v1802_v34, %v1577_v52  ;;  %2110 = vmatprep.mubr.f32.mxu0 %v3933_v21  ;;  %2335 = vmatprep.mubr.f32.mxu1 %v3025_v28 }
 0x144   : > { %v1579_v14 = vpop.f32.mrf.mxu0  ;;  %v1804_v62 = vpop.f32.mrf.mxu1 }
 0x145   : > { %v4217_v62 = vld [vmem:[#allocation2 + $0x182] sm:$0xff] }
 0x146   : > { %v1582_v36 = vpop.f32.mrf.mxu0  ;;  %v1807_v44 = vpop.f32.mrf.mxu1  ;;  %2111 = vmatmul.mubr.f32.gmra.mxu0 %v3023_v51  ;;  %2336 = vmatmul.mubr.f32.gmra.mxu1 %v3919_v10 }
 0x147   : > { %v4186_v43 = vadd.f32 %v1807_v44, %v1582_v36  ;;  %2115 = vmatprep.mubr.f32.mxu0 %v3950_v33  ;;  %2340 = vmatprep.mubr.f32.mxu1 %v3026_v6 }
 0x148   : > { %v1584_v37 = vpop.f32.mrf.mxu0  ;;  %v1809_v54 = vpop.f32.mrf.mxu1 }
 0x14a   : > { %v1587_v41 = vpop.f32.mrf.mxu0  ;;  %v1812_v48 = vpop.f32.mrf.mxu1  ;;  %2116 = vmatmul.mubr.f32.gmra.mxu0 %v3024_v20  ;;  %2341 = vmatmul.mubr.f32.gmra.mxu1 %v3936_v32 }
 0x14b   : > { %v4190_v21 = vadd.f32 %v1812_v48, %v1587_v41  ;;  %2120 = vmatprep.mubr.f32.mxu0 %v3967_v46  ;;  %2345 = vmatprep.mubr.f32.mxu1 %v3027_v11  ;;  %v4223_v41 = vld [vmem:[#allocation2 + $0x18a] sm:$0xff]  ;;  %v962_v48 = vld [vmem:[#allocation2 + $0x1a1] sm:$0xff] }
 0x14c   : > { %v1589_v10 = vpop.f32.mrf.mxu0  ;;  %v1814_v12 = vpop.f32.mrf.mxu1 }
 0x14e   : > { %v1592_v59 = vpop.f32.mrf.mxu0  ;;  %v1817_v13 = vpop.f32.mrf.mxu1  ;;  %2121 = vmatmul.mubr.f32.gmra.mxu0 %v3025_v28  ;;  %2346 = vmatmul.mubr.f32.gmra.mxu1 %v3953_v45  ;;  %v3033_v28 = vld [vmem:[#allocation2 + $0x189] sm:$0xff] }
 0x14f   : > { %v4194_v33 = vadd.f32 %v1817_v13, %v1592_v59  ;;  %2125 = vmatprep.mubr.f32.mxu0 %v3984_v57  ;;  %2350 = vmatprep.mubr.f32.mxu1 %v3028_v23 }
 0x150   : > { %v1594_v32 = vpop.f32.mrf.mxu0  ;;  %v1819_v30 = vpop.f32.mrf.mxu1 }
 0x152   : > { %v1597_v47 = vpop.f32.mrf.mxu0  ;;  %v1822_v1 = vpop.f32.mrf.mxu1  ;;  %2126 = vmatmul.mubr.f32.gmra.mxu0 %v3026_v6  ;;  %2351 = vmatmul.mubr.f32.gmra.mxu1 %v3970_v53 }
 0x153   : > { %v4198_v46 = vadd.f32 %v1822_v1, %v1597_v47  ;;  %2130 = vmatprep.mubr.f32.mxu0 %v4001_v61  ;;  %2355 = vmatprep.mubr.f32.mxu1 %v3029_v0  ;;  %v1012_v1 = vld [vmem:[#allocation2 + $0xfa] sm:$0xff] }
 0x154   : > { %v1599_v45 = vpop.f32.mrf.mxu0  ;;  %v1824_v9 = vpop.f32.mrf.mxu1 }
 0x155   : > { %v1013_v9 = vld [vmem:[#allocation2 + $0x10a] sm:$0xff] }
 0x156   : > { %v1602_v2 = vpop.f32.mrf.mxu0  ;;  %v1827_v26 = vpop.f32.mrf.mxu1  ;;  %2131 = vmatmul.mubr.f32.gmra.mxu0 %v3027_v11  ;;  %2356 = vmatmul.mubr.f32.gmra.mxu1 %v3987_v63 }
 0x157   : > { %v4202_v57 = vadd.f32 %v1827_v26, %v1602_v2  ;;  %2135 = vmatprep.mubr.f32.mxu0 %v4018_v5  ;;  %2360 = vmatprep.mubr.f32.mxu1 %v3030_v17 }
 0x158   : > { %v1604_v53 = vpop.f32.mrf.mxu0  ;;  %v1829_v4 = vpop.f32.mrf.mxu1 }
 0x159   : > { %v1014_v53 = vld [vmem:[#allocation2 + $0x112] sm:$0xff] }
 0x15a   : > { %v1607_v51 = vpop.f32.mrf.mxu0  ;;  %v1832_v49 = vpop.f32.mrf.mxu1  ;;  %2136 = vmatmul.mubr.f32.gmra.mxu0 %v3028_v23  ;;  %2361 = vmatmul.mubr.f32.gmra.mxu1 %v4004_v60  ;;  %v1011_v23 = vld [vmem:[#allocation2 + $0xf2] sm:$0xff] }
 0x15b   : > { %v4206_v61 = vadd.f32 %v1832_v49, %v1607_v51  ;;  %2140 = vmatprep.mubr.f32.mxu0 %v4035_v7  ;;  %2365 = vmatprep.mubr.f32.mxu1 %v3031_v38  ;;  %v1015_v49 = vld [vmem:[#allocation2 + $0x122] sm:$0xff] }
 0x15c   : > { %v1609_v63 = vpop.f32.mrf.mxu0  ;;  %v1834_v19 = vpop.f32.mrf.mxu1 }
 0x15e   : > { %v1612_v25 = vpop.f32.mrf.mxu0  ;;  %v1837_v20 = vpop.f32.mrf.mxu1  ;;  %2141 = vmatmul.mubr.f32.gmra.mxu0 %v3029_v0  ;;  %2366 = vmatmul.mubr.f32.gmra.mxu1 %v4021_v58 }
 0x15f   : > { %v4210_v5 = vadd.f32 %v1837_v20, %v1612_v25  ;;  %2145 = vmatprep.mubr.f32.mxu0 %v4052_v29  ;;  %2370 = vmatprep.mubr.f32.mxu1 %v3032_v50  ;;  %v961_v29 = vld [vmem:[#allocation2 + $0x199] sm:$0xff] }
 0x160   : > { %v1614_v60 = vpop.f32.mrf.mxu0  ;;  %v1839_v27 = vpop.f32.mrf.mxu1  ;;  %v1001_v20 = vld [vmem:[#allocation2 + $0x7a] sm:$0xff] }
 0x162   : > { %v1617_v52 = vpop.f32.mrf.mxu0  ;;  %v1842_v34 = vpop.f32.mrf.mxu1  ;;  %2146 = vmatmul.mubr.f32.gmra.mxu0 %v3030_v17  ;;  %2371 = vmatmul.mubr.f32.gmra.mxu1 %v4039_v16  ;;  %v897_v16 = vld [vmem:[#allocation2 + $0x198] sm:$0xff] }
 0x163   : > { %v4214_v7 = vadd.f32 %v1842_v34, %v1617_v52  ;;  %2150 = vmatprep.mubr.f32.mxu0 %v4066_v22  ;;  %2375 = vmatprep.mubr.f32.mxu1 %v3033_v28  ;;  %v1018_v52 = vld [vmem:[#allocation2 + $0x142] sm:$0xff] }
 0x164   : > { %v1619_v58 = vpop.f32.mrf.mxu0  ;;  %v1844_v14 = vpop.f32.mrf.mxu1 }
 0x165   : > { %v1019_v58 = vld [vmem:[#allocation2 + $0x152] sm:$0xff] }
 0x166   : > { %v1622_v36 = vpop.f32.mrf.mxu0  ;;  %v1847_v44 = vpop.f32.mrf.mxu1  ;;  %2151 = vmatmul.mubr.f32.gmra.mxu0 %v3031_v38  ;;  %2376 = vmatmul.mubr.f32.gmra.mxu1 %v4056_v39  ;;  %v898_v39 = vld [vmem:[#allocation2 + $0x1a0] sm:$0xff] }
 0x167   : > { %v4220_v6 = vadd.f32 %v1847_v44, %v1622_v36  ;;  %2155 = vmatprep.mubr.f32.mxu0 %v4217_v62  ;;  %2380 = vmatprep.mubr.f32.mxu1 %v961_v29  ;;  %v1020_v44 = vld [vmem:[#allocation2 + $0x15a] sm:$0xff] }
 0x168   : > { %v1624_v37 = vpop.f32.mrf.mxu0  ;;  %v1849_v54 = vpop.f32.mrf.mxu1 }
 0x169   : > { %v1005_v54 = vld [vmem:[#allocation2 + $0xaa] sm:$0xff] }
 0x16a   : > { %v1627_v11 = vpop.f32.mrf.mxu0  ;;  %v1852_v10 = vpop.f32.mrf.mxu1  ;;  %2156 = vmatmul.mubr.f32.gmra.mxu0 %v3032_v50  ;;  %2381 = vmatmul.mubr.f32.gmra.mxu1 %v897_v16 }
 0x16b   : > { %v4225_v12 = vadd.f32 %v1852_v10, %v1627_v11  ;;  %2160 = vmatprep.mubr.f32.mxu0 %v4223_v41  ;;  %2385 = vmatprep.mubr.f32.mxu1 %v962_v48  ;;  %v1021_v48 = vld [vmem:[#allocation2 + $0x16a] sm:$0xff] }
 0x16c   : > { %v1629_v59 = vpop.f32.mrf.mxu0  ;;  %v1854_v13 = vpop.f32.mrf.mxu1 }
 0x16d   : > { %v1006_v59 = vld [vmem:[#allocation2 + $0xb2] sm:$0xff] }
 0x16e   : > { %v1632_v32 = vpop.f32.mrf.mxu0  ;;  %v1857_v30 = vpop.f32.mrf.mxu1  ;;  %2161 = vmatmul.mubr.f32.gmra.mxu0 %v3033_v28  ;;  %2386 = vmatmul.mubr.f32.gmra.mxu1 %v898_v39 }
 0x16f   : > { %v4228_v47 = vadd.f32 %v1857_v30, %v1632_v32  ;;  %2923 = vmatprep.mubr.f32.mxu0 %v4089_v3  ;;  %2947 = vmatprep.mubr.f32.mxu1 %v1011_v23  ;;  %v1007_v32 = vld [vmem:[#allocation2 + $0xc2] sm:$0xff] }
 0x170   : > { %v1634_v0 = vpop.f32.mrf.mxu0  ;;  %v1859_v45 = vpop.f32.mrf.mxu1 }
 0x171   : > { %v1008_v45 = vld [vmem:[#allocation2 + $0xca] sm:$0xff] }
 0x172   : > { %v1637_v2 = vpop.f32.mrf.mxu0  ;;  %v1862_v26 = vpop.f32.mrf.mxu1  ;;  %2924 = vmatmul.mubr.f32.vlgmr.msra.gmra.mxu0 %v4095_v24  ;;  %2948 = vmatmul.mubr.f32.vlgmr.msra.gmra.mxu1 %v1012_v1  ;;  %v1016_v24 = vld [vmem:[#allocation2 + $0x12a] sm:$0xff] }
 0x173   : > { %v4232_v17 = vadd.f32 %v1862_v26, %v1637_v2  ;;  %2926 = vmatprep.mubr.f32.mxu0 %v4101_v40  ;;  %2950 = vmatprep.mubr.f32.mxu1 %v1013_v9  ;;  %v1017_v40 = vld [vmem:[#allocation2 + $0x13a] sm:$0xff] }
 0x174   : > { %v1639_v4 = vpop.f32.mrf.mxu0  ;;  %v1864_v51 = vpop.f32.mrf.mxu1  ;;  %v1009_v26 = vld [vmem:[#allocation2 + $0xda] sm:$0xff] }
 0x176   : > { %v1642_v3 = vpop.f32.mrf.mxu0  ;;  %v1867_v38 = vpop.f32.mrf.mxu1  ;;  %2927 = vmatmul.mubr.f32.gmra.mxu0 %v4107_v42  ;;  %2951 = vmatmul.mubr.f32.gmra.mxu1 %v1014_v53  ;;  %v1002_v42 = vld [vmem:[#allocation2 + $0x82] sm:$0xff]  ;;  %v1025_v53 = vld [vmem:[#allocation2 + $0x19a] sm:$0xff] }
 0x177   : > { %v4236_v63 = vadd.f32 %v1867_v38, %v1642_v3  ;;  %2929 = vmatprep.mubr.f32.mxu0 %v4113_v56  ;;  %2953 = vmatprep.mubr.f32.mxu1 %v1015_v49  ;;  %v1003_v56 = vld [vmem:[#allocation2 + $0x92] sm:$0xff]  ;;  %v1026_v3 = vld [vmem:[#allocation2 + $0x1a2] sm:$0xff] }
 0x178   : > { %v1644_v19 = vpop.f32.mrf.mxu0  ;;  %v1869_v25 = vpop.f32.mrf.mxu1 }
 0x17a   : > { %v1647_v50 = vpop.f32.mrf.mxu0  ;;  %v1872_v60 = vpop.f32.mrf.mxu1  ;;  %2930 = vmatmul.mubr.f32.gmra.mxu0 %v4119_v18  ;;  %2954 = vmatmul.mubr.f32.gmra.mxu1 %v1016_v24  ;;  %v1004_v18 = vld [vmem:[#allocation2 + $0x9a] sm:$0xff] }
 0x17b   : > { %v4240_v27 = vadd.f32 %v1872_v60, %v1647_v50  ;;  %2932 = vmatprep.mubr.f32.mxu0 %v1001_v20  ;;  %2956 = vmatprep.mubr.f32.mxu1 %v1017_v40 }
 0x17c   : > { %v1649_v34 = vpop.f32.mrf.mxu0  ;;  %v1874_v28 = vpop.f32.mrf.mxu1 }
 0x17e   : > { %v1652_v14 = vpop.f32.mrf.mxu0  ;;  %v1877_v29 = vpop.f32.mrf.mxu1  ;;  %2933 = vmatmul.mubr.f32.gmra.mxu0 %v1002_v42  ;;  %2957 = vmatmul.mubr.f32.gmra.mxu1 %v1018_v52 }
 0x17f   : > { %v4242_v36 = vadd.f32 %v1877_v29, %v1652_v14  ;;  %2935 = vmatprep.mubr.f32.mxu0 %v1003_v56  ;;  %2959 = vmatprep.mubr.f32.mxu1 %v1019_v58 }
 0x180   : > { %v1654_v16 = vpop.f32.mrf.mxu0  ;;  %v1879_v37 = vpop.f32.mrf.mxu1 }
 0x182   : > { %v1657_v11 = vpop.f32.mrf.mxu0  ;;  %v1882_v10 = vpop.f32.mrf.mxu1  ;;  %2936 = vmatmul.mubr.f32.gmra.mxu0 %v1004_v18  ;;  %2960 = vmatmul.mubr.f32.gmra.mxu1 %v1020_v44 }
 0x183   : > { %v4244_v39 = vadd.f32 %v1882_v10, %v1657_v11  ;;  %2938 = vmatprep.mubr.f32.mxu0 %v1005_v54  ;;  %2962 = vmatprep.mubr.f32.mxu1 %v1021_v48 }
 0x184   : > { %v1659_v13 = vpop.f32.mrf.mxu0  ;;  %v1884_v23 = vpop.f32.mrf.mxu1 }
 0x186   : > { %v1662_v30 = vpop.f32.mrf.mxu0  ;;  %v1887_v1 = vpop.f32.mrf.mxu1  ;;  %2939 = vmatmul.mubr.f32.gmra.mxu0 %v1006_v59  ;;  %2963 = vmatmul.mubr.f32.gmra.mxu1 %v4066_v22  ;;  %v1010_v22 = vld [vmem:[#allocation2 + $0xe2] sm:$0xff] }
 0x187   : > { %v4247_v0 = vadd.f32 %v1887_v1, %v1662_v30  ;;  %2941 = vmatprep.mubr.f32.mxu0 %v1007_v32  ;;  %2965 = vmatprep.mubr.f32.mxu1 %v4217_v62 }
 0x188   : > { %v1664_v9 = vpop.f32.mrf.mxu0  ;;  %v1889_v2 = vpop.f32.mrf.mxu1 }
 0x18a   : > { %v1667_v4 = vpop.f32.mrf.mxu0  ;;  %v1892_v51 = vpop.f32.mrf.mxu1  ;;  %2942 = vmatmul.mubr.f32.gmra.mxu0 %v1008_v45  ;;  %2966 = vmatmul.mubr.f32.gmra.mxu1 %v4223_v41 }
 0x18b   : > { %v4251_v49 = vadd.f32 %v1892_v51, %v1667_v4  ;;  %2944 = vmatprep.mubr.f32.mxu0 %v1009_v26  ;;  %2968 = vmatprep.mubr.f32.mxu1 %v1025_v53 }
 0x18c   : > { %v1669_v38 = vpop.f32.mrf.mxu0  ;;  %v1894_v24 = vpop.f32.mrf.mxu1 }
 0x18e   : > { %v1672_v19 = vpop.f32.mrf.mxu0  ;;  %v1897_v62 = vpop.f32.mrf.mxu1  ;;  %2945 = vmatmul.mubr.f32.gmra.mxu0 %v1010_v22  ;;  %2969 = vmatmul.mubr.f32.gmra.mxu1 %v1026_v3 }
 0x18f   : > { %v4253_v25 = vadd.f32 %v1897_v62, %v1672_v19 }
 0x190   : > { %v1674_v20 = vpop.f32.mrf.mxu0  ;;  %v1899_v40 = vpop.f32.mrf.mxu1 }
 0x192   : > { %v1677_v50 = vpop.f32.mrf.mxu0  ;;  %v1902_v60 = vpop.f32.mrf.mxu1 }
 0x193   : > { %v4255_v42 = vadd.f32 %v1902_v60, %v1677_v50 }
 0x194   : > { %v1679_v41 = vpop.f32.mrf.mxu0  ;;  %v1904_v52 = vpop.f32.mrf.mxu1 }
 0x196   : > { %v1682_v34 = vpop.f32.mrf.mxu0  ;;  %v1907_v28 = vpop.f32.mrf.mxu1 }
 0x197   : > { %v4257_v56 = vadd.f32 %v1907_v28, %v1682_v34 }
 0x198   : > { %v1684_v58 = vpop.f32.mrf.mxu0  ;;  %v1909_v14 = vpop.f32.mrf.mxu1 }
 0x19a   : > { %v1687_v29 = vpop.f32.mrf.mxu0  ;;  %v1912_v18 = vpop.f32.mrf.mxu1 }
 0x19b   : > { %v4259_v44 = vadd.f32 %v1912_v18, %v1687_v29 }
 0x19c   : > { %v1689_v16 = vpop.f32.mrf.mxu0  ;;  %v1914_v37 = vpop.f32.mrf.mxu1 }
 0x19e   : > { %v1692_v54 = vpop.f32.mrf.mxu0  ;;  %v1917_v48 = vpop.f32.mrf.mxu1 }
 0x19f   : > { %v4261_v11 = vadd.f32 %v1917_v48, %v1692_v54 }
 0x1a0   : > { %v1694_v10 = vpop.f32.mrf.mxu0  ;;  %v1919_v59 = vpop.f32.mrf.mxu1 }
 0x1a2   : > { %v1697_v13 = vpop.f32.mrf.mxu0  ;;  %v1922_v23 = vpop.f32.mrf.mxu1 }
 0x1a3   : > { %v4263_v32 = vadd.f32 %v1922_v23, %v1697_v13 }
 0x1a4   : > { %v1699_v30 = vpop.f32.mrf.mxu0  ;;  %v1924_v1 = vpop.f32.mrf.mxu1 }
 0x1a6   : > { %v1702_v45 = vpop.f32.mrf.mxu0  ;;  %v1927_v9 = vpop.f32.mrf.mxu1 }
 0x1a7   : > { %v4265_v2 = vadd.f32 %v1927_v9, %v1702_v45 }
 0x1a8   : > { %v1704_v26 = vpop.f32.mrf.mxu0  ;;  %v1929_v53 = vpop.f32.mrf.mxu1 }
 0x1aa   : > { %v1707_v4 = vpop.f32.mrf.mxu0  ;;  %v1932_v51 = vpop.f32.mrf.mxu1 }
 0x1ab   : > { %v4267_v22 = vadd.f32 %v1932_v51, %v1707_v4 }
 0x1ac   : > { %v1709_v3 = vpop.f32.mrf.mxu0  ;;  %v1934_v38 = vpop.f32.mrf.mxu1 }
 0x1ad   : > { %4597 = vst [vmem:[#allocation4_spill] sm:$0xff] %v4267_v22 }
 0x1ae   : > { %v1712_v24 = vpop.f32.mrf.mxu0  ;;  %v1937_v19 = vpop.f32.mrf.mxu1 }
 0x1af   : > { %v4269_v62 = vadd.f32 %v1937_v19, %v1712_v24 }
 0x1b0   : > { %v1714_v20 = vpop.f32.mrf.mxu0  ;;  %v1939_v40 = vpop.f32.mrf.mxu1 }
 0x1b2   : > { %v2007_v50 = vpop.f32.mrf.mxu0  ;;  %v2232_v60 = vpop.f32.mrf.mxu1 }
 0x1b3   : > { %v2008_v41 = vadd.f32 %v2007_v50, %v4166_v55 }
 0x1b4   : > { %v2009_v52 = vpop.f32.mrf.mxu0  ;;  %v2234_v34 = vpop.f32.mrf.mxu1 }
 0x1b5   : > { %v4272_v28 = vadd.f32 %v2232_v60, %v2008_v41 }
 0x1b6   : > { %v2012_v58 = vpop.f32.mrf.mxu0  ;;  %v2237_v14 = vpop.f32.mrf.mxu1 }
 0x1b7   : > { %v2013_v29 = vadd.f32 %v2012_v58, %v4170_v35 }
 0x1b8   : > { %v2014_v18 = vpop.f32.mrf.mxu0  ;;  %v2239_v16 = vpop.f32.mrf.mxu1 }
 0x1b9   : > { %v4275_v37 = vadd.f32 %v2237_v14, %v2013_v29 }
 0x1ba   : > { %v2017_v54 = vpop.f32.mrf.mxu0  ;;  %v2242_v48 = vpop.f32.mrf.mxu1 }
 0x1bb   : > { %v2018_v10 = vadd.f32 %v2017_v54, %v4174_v31 }
 0x1bc   : > { %v2019_v59 = vpop.f32.mrf.mxu0  ;;  %v2244_v13 = vpop.f32.mrf.mxu1 }
 0x1bd   : > { %v4278_v23 = vadd.f32 %v2242_v48, %v2018_v10 }
 0x1be   : > { %v2022_v55 = vpop.f32.mrf.mxu0  ;;  %v2247_v30 = vpop.f32.mrf.mxu1 }
 0x1bf   : > { %v2023_v1 = vadd.f32 %v2022_v55, %v4178_v8 }
 0x1c0   : > { %v2024_v45 = vpop.f32.mrf.mxu0  ;;  %v2249_v9 = vpop.f32.mrf.mxu1 }
 0x1c1   : > { %v4281_v26 = vadd.f32 %v2247_v30, %v2023_v1 }
 0x1c2   : > { %v2027_v35 = vpop.f32.mrf.mxu0  ;;  %v2252_v53 = vpop.f32.mrf.mxu1 }
 0x1c3   : > { %v2028_v4 = vadd.f32 %v2027_v35, %v4182_v15 }
 0x1c4   : > { %v2029_v51 = vpop.f32.mrf.mxu0  ;;  %v2254_v3 = vpop.f32.mrf.mxu1 }
 0x1c5   : > { %v4284_v38 = vadd.f32 %v2252_v53, %v2028_v4 }
 0x1c6   : > { %v2032_v31 = vpop.f32.mrf.mxu0  ;;  %v2257_v24 = vpop.f32.mrf.mxu1 }
 0x1c7   : > { %v2033_v19 = vadd.f32 %v2032_v31, %v4186_v43 }
 0x1c8   : > { %v2034_v20 = vpop.f32.mrf.mxu0  ;;  %v2259_v40 = vpop.f32.mrf.mxu1 }
 0x1c9   : > { %v4287_v50 = vadd.f32 %v2257_v24, %v2033_v19 }
 0x1ca   : > { %v2037_v8 = vpop.f32.mrf.mxu0  ;;  %v2262_v60 = vpop.f32.mrf.mxu1 }
 0x1cb   : > { %v2038_v41 = vadd.f32 %v2037_v8, %v4190_v21 }
 0x1cc   : > { %v2039_v52 = vpop.f32.mrf.mxu0  ;;  %v2264_v34 = vpop.f32.mrf.mxu1 }
 0x1cd   : > { %v4290_v58 = vadd.f32 %v2262_v60, %v2038_v41 }
 0x1ce   : > { %v2042_v15 = vpop.f32.mrf.mxu0  ;;  %v2267_v14 = vpop.f32.mrf.mxu1 }
 0x1cf   : > { %v2043_v29 = vadd.f32 %v2042_v15, %v4194_v33 }
 0x1d0   : > { %v2044_v18 = vpop.f32.mrf.mxu0  ;;  %v2269_v16 = vpop.f32.mrf.mxu1 }
 0x1d1   : > { %v4293_v54 = vadd.f32 %v2267_v14, %v2043_v29 }
 0x1d2   : > { %v2047_v43 = vpop.f32.mrf.mxu0  ;;  %v2272_v48 = vpop.f32.mrf.mxu1 }
 0x1d3   : > { %v2048_v10 = vadd.f32 %v2047_v43, %v4198_v46 }
 0x1d4   : > { %v2049_v59 = vpop.f32.mrf.mxu0  ;;  %v2274_v13 = vpop.f32.mrf.mxu1 }
 0x1d5   : > { %v4296_v55 = vadd.f32 %v2272_v48, %v2048_v10 }
 0x1d6   : > { %v2052_v21 = vpop.f32.mrf.mxu0  ;;  %v2277_v30 = vpop.f32.mrf.mxu1 }
 0x1d7   : > { %v2053_v1 = vadd.f32 %v2052_v21, %v4202_v57 }
 0x1d8   : > { %v2054_v45 = vpop.f32.mrf.mxu0  ;;  %v2279_v9 = vpop.f32.mrf.mxu1 }
 0x1d9   : > { %v4299_v35 = vadd.f32 %v2277_v30, %v2053_v1 }
 0x1da   : > { %v2057_v33 = vpop.f32.mrf.mxu0  ;;  %v2282_v53 = vpop.f32.mrf.mxu1 }
 0x1db   : > { %v2058_v4 = vadd.f32 %v2057_v33, %v4206_v61 }
 0x1dc   : > { %v2059_v51 = vpop.f32.mrf.mxu0  ;;  %v2284_v3 = vpop.f32.mrf.mxu1 }
 0x1dd   : > { %v4302_v31 = vadd.f32 %v2282_v53, %v2058_v4 }
 0x1de   : > { %v2062_v46 = vpop.f32.mrf.mxu0  ;;  %v2287_v24 = vpop.f32.mrf.mxu1 }
 0x1df   : > { %v2063_v19 = vadd.f32 %v2062_v46, %v4210_v5 }
 0x1e0   : > { %v2064_v20 = vpop.f32.mrf.mxu0  ;;  %v2289_v40 = vpop.f32.mrf.mxu1 }
 0x1e1   : > { %v4305_v8 = vadd.f32 %v2287_v24, %v2063_v19 }
 0x1e2   : > { %v2067_v57 = vpop.f32.mrf.mxu0  ;;  %v2292_v60 = vpop.f32.mrf.mxu1 }
 0x1e3   : > { %v2068_v41 = vadd.f32 %v2067_v57, %v4214_v7 }
 0x1e4   : > { %v2069_v52 = vpop.f32.mrf.mxu0  ;;  %v2294_v34 = vpop.f32.mrf.mxu1 }
 0x1e5   : > { %v4308_v15 = vadd.f32 %v2292_v60, %v2068_v41 }
 0x1e6   : > { %v2072_v61 = vpop.f32.mrf.mxu0  ;;  %v2297_v14 = vpop.f32.mrf.mxu1 }
 0x1e7   : > { %4598 = vst [vmem:[#allocation5_spill] sm:$0xff] %v4308_v15  ;;  %v2073_v29 = vadd.f32 %v2072_v61, %v4220_v6 }
 0x1e8   : > { %v2074_v18 = vpop.f32.mrf.mxu0  ;;  %v2299_v16 = vpop.f32.mrf.mxu1 }
 0x1e9   : > { %v4311_v43 = vadd.f32 %v2297_v14, %v2073_v29 }
 0x1ea   : > { %v2077_v5 = vpop.f32.mrf.mxu0  ;;  %v2302_v48 = vpop.f32.mrf.mxu1 }
 0x1eb   : > { %4599 = vst [vmem:[#allocation6_spill] sm:$0xff] %v4311_v43  ;;  %v2078_v10 = vadd.f32 %v2077_v5, %v4225_v12 }
 0x1ec   : > { %v2079_v59 = vpop.f32.mrf.mxu0  ;;  %v2304_v13 = vpop.f32.mrf.mxu1 }
 0x1ed   : > { %v4314_v21 = vadd.f32 %v2302_v48, %v2078_v10 }
 0x1ee   : > { %v2082_v7 = vpop.f32.mrf.mxu0  ;;  %v2307_v30 = vpop.f32.mrf.mxu1 }
 0x1ef   : > { %4600 = vst [vmem:[#allocation7_spill] sm:$0xff] %v4314_v21  ;;  %v2083_v1 = vadd.f32 %v2082_v7, %v4228_v47 }
 0x1f0   : > { %v2084_v45 = vpop.f32.mrf.mxu0  ;;  %v2309_v9 = vpop.f32.mrf.mxu1 }
 0x1f1   : > { %v4317_v33 = vadd.f32 %v2307_v30, %v2083_v1 }
 0x1f2   : > { %v2087_v6 = vpop.f32.mrf.mxu0  ;;  %v2312_v53 = vpop.f32.mrf.mxu1 }
 0x1f3   : > { %4601 = vst [vmem:[#allocation8_spill] sm:$0xff] %v4317_v33  ;;  %v2088_v4 = vadd.f32 %v2087_v6, %v4232_v17 }
 0x1f4   : > { %v2089_v51 = vpop.f32.mrf.mxu0  ;;  %v2314_v3 = vpop.f32.mrf.mxu1 }
 0x1f5   : > { %v4320_v46 = vadd.f32 %v2312_v53, %v2088_v4 }
 0x1f6   : > { %v2092_v12 = vpop.f32.mrf.mxu0  ;;  %v2317_v24 = vpop.f32.mrf.mxu1 }
 0x1f8   : > { %v2094_v19 = vpop.f32.mrf.mxu0  ;;  %v2319_v20 = vpop.f32.mrf.mxu1 }
 0x1fa   : > { %v2097_v40 = vpop.f32.mrf.mxu0  ;;  %v4322_v57 = vpop.f32.mrf.mxu1 }
 0x1fc   : > { %v2099_v47 = vpop.f32.mrf.mxu0  ;;  %v2324_v60 = vpop.f32.mrf.mxu1 }
 0x1fe   : > { %v2102_v41 = vpop.f32.mrf.mxu0  ;;  %v4324_v52 = vpop.f32.mrf.mxu1 }
 0x200   : > { %v2104_v34 = vpop.f32.mrf.mxu0  ;;  %v2329_v61 = vpop.f32.mrf.mxu1 }
 0x202   : > { %v4326_v14 = vpop.f32.mrf.mxu0  ;;  %v4328_v17 = vpop.f32.mrf.mxu1 }
 0x204   : > { %v2109_v29 = vpop.f32.mrf.mxu0  ;;  %v2334_v18 = vpop.f32.mrf.mxu1 }
 0x206   : > { %v2112_v16 = vpop.f32.mrf.mxu0  ;;  %v4330_v5 = vpop.f32.mrf.mxu1 }
 0x208   : > { %v2114_v48 = vpop.f32.mrf.mxu0  ;;  %v2339_v10 = vpop.f32.mrf.mxu1 }
 0x20a   : > { %v4332_v59 = vpop.f32.mrf.mxu0  ;;  %v4334_v13 = vpop.f32.mrf.mxu1 }
 0x20c   : > { %v2119_v7 = vpop.f32.mrf.mxu0  ;;  %v2344_v30 = vpop.f32.mrf.mxu1 }
 0x20e   : > { %v4336_v1 = vpop.f32.mrf.mxu0  ;;  %v4338_v45 = vpop.f32.mrf.mxu1 }
 0x210   : > { %v2124_v9 = vpop.f32.mrf.mxu0  ;;  %v2349_v6 = vpop.f32.mrf.mxu1 }
 0x212   : > { %v4340_v53 = vpop.f32.mrf.mxu0  ;;  %v4342_v4 = vpop.f32.mrf.mxu1 }
 0x214   : > { %v2129_v51 = vpop.f32.mrf.mxu0  ;;  %v2354_v3 = vpop.f32.mrf.mxu1 }
 0x216   : > { %v4344_v19 = vpop.f32.mrf.mxu0  ;;  %v4346_v20 = vpop.f32.mrf.mxu1 }
 0x218   : > { %v2134_v47 = vpop.f32.mrf.mxu0  ;;  %v2359_v60 = vpop.f32.mrf.mxu1 }
 0x21a   : > { %v4348_v34 = vpop.f32.mrf.mxu0  ;;  %v4350_v61 = vpop.f32.mrf.mxu1 }
 0x21c   : > { %v2139_v29 = vpop.f32.mrf.mxu0  ;;  %v2364_v18 = vpop.f32.mrf.mxu1 }
 0x21e   : > { %v4352_v48 = vpop.f32.mrf.mxu0  ;;  %v4354_v10 = vpop.f32.mrf.mxu1 }
 0x220   : > { %v2144_v7 = vpop.f32.mrf.mxu0  ;;  %v2369_v30 = vpop.f32.mrf.mxu1 }
 0x221   : > { %v2093_v30 = vadd.f32 %v2092_v12, %v4236_v63 }
 0x222   : > { %v4356_v9 = vpop.f32.mrf.mxu0  ;;  %v4358_v6 = vpop.f32.mrf.mxu1 }
 0x223   : > { %4602 = vst [vmem:[#allocation9_spill] sm:$0xff] %v4358_v6  ;;  %v2318_v43 = vadd.f32 %v2317_v24, %v2093_v30 }
 0x224   : > { %v2149_v51 = vpop.f32.mrf.mxu0  ;;  %v2374_v3 = vpop.f32.mrf.mxu1 }
 0x226   : > { %v4360_v47 = vpop.f32.mrf.mxu0  ;;  %v4362_v60 = vpop.f32.mrf.mxu1 }
 0x228   : > { %v2154_v21 = vpop.f32.mrf.mxu0  ;;  %v2379_v33 = vpop.f32.mrf.mxu1 }
 0x229   : > { %v2098_v21 = vadd.f32 %v2097_v40, %v4240_v27  ;;  %v2103_v33 = vadd.f32 %v2102_v41, %v4242_v36 }
 0x22a   : > { %v4364_v29 = vpop.f32.mrf.mxu0  ;;  %v4366_v18 = vpop.f32.mrf.mxu1 }
 0x22b   : > { %4603 = vst [vmem:[#allocation10_spill] sm:$0xff] %v4364_v29  ;;  %4604 = vst [vmem:[#allocation11_spill] sm:$0xff] %v4366_v18  ;;  %v2323_v27 = vadd.f32 %v4322_v57, %v2098_v21  ;;  %v2328_v36 = vadd.f32 %v4324_v52, %v2103_v33  ;;  %v2123_v33 = vadd.f32 %v4336_v1, %v4253_v25 }
 0x22c   : > { %v2159_v15 = vpop.f32.mrf.mxu0  ;;  %v2384_v7 = vpop.f32.mrf.mxu1 }
 0x22e   : > { %v4369_v22 = vpop.f32.mrf.mxu0  ;;  %v4371_v51 = vpop.f32.mrf.mxu1 }
 0x230   : > { %v2164_v3 = vpop.f32.mrf.mxu0  ;;  %v2389_v6 = vpop.f32.mrf.mxu1 }
 0x232   : > { %v2925_v29 = vpop.f32.mrf.mxu0  ;;  %v2949_v18 = vpop.f32.mrf.mxu1 }
 0x233   : > { %v2463_v15 = vadd.f32 %v2925_v29, %v4275_v37  ;;  %v4376_v7 = vadd.f32 %v2949_v18, %v2318_v43  ;;  %v2113_v37 = vadd.f32 %v2112_v16, %v4247_v0 }
 0x234   : > { %v2457_v63 = vpop.f32.mrf.mxu0  ;;  %v2537_v12 = vpop.f32.mrf.mxu1 }
 0x235   : > { %2617 = vst [vmem:[%s3095_s30 + $0x8] sm:$0xff] %v2463_v15  ;;  %2633 = vst [vmem:[%s3095_s30 + $0x88] sm:$0xff] %v4376_v7  ;;  %v2458_v6 = vadd.f32 %v2457_v63, %v4272_v28  ;;  %v4383_v24 = vadd.f32 %v2537_v12, %v4320_v46  ;;  %v2690_v41 = vmul.f32 %v2463_v15, %v2463_v15 }
 0x236   : > { %v2928_v43 = vpop.f32.mrf.mxu0  ;;  %v2952_v40 = vpop.f32.mrf.mxu1  ;;  %v2108_v46 = vadd.f32 %v4326_v14, %v4244_v39  ;;  %v2338_v21 = vadd.f32 %v4330_v5, %v2113_v37  ;;  %v2118_v5 = vadd.f32 %v4332_v59, %v4251_v49 }
 0x237   : > { %2616 = vst [vmem:[%s3095_s30] sm:$0xff] %v2458_v6  ;;  %v2649_v29 = vadd.f32 %v2463_v15, %v2458_v6  ;;  %v2689_v18 = vmul.f32 %v2458_v6, %v2458_v6  ;;  %2632 = vst [vmem:[%s3095_s30 + $0x80] sm:$0xff] %v4383_v24  ;;  %v2473_v28 = vadd.f32 %v2928_v43, %v4281_v26 }
 0x238   : > { %v4394_v57 = vadd.f32 %v2952_v40, %v2328_v36  ;;  %v2467_v52 = vpop.f32.mrf.mxu0  ;;  %v2547_v0 = vpop.f32.mrf.mxu1  ;;  %v2333_v63 = vadd.f32 %v4328_v17, %v2108_v46  ;;  %v2348_v43 = vadd.f32 %v4338_v45, %v2123_v33  ;;  %v2128_v45 = vadd.f32 %v4340_v53, %v4255_v42 }
 0x239   : > { %v2721_v16 = vadd.f32 %v2690_v41, %v2689_v18  ;;  %2619 = vst [vmem:[%s3095_s30 + $0x18] sm:$0xff] %v2473_v28  ;;  %v2468_v30 = vadd.f32 %v2467_v52, %v4278_v23  ;;  %v4398_v3 = vadd.f32 %v2547_v0, %v2323_v27  ;;  %v2692_v6 = vmul.f32 %v2473_v28, %v2473_v28 }
 0x23a   : > { %2635 = vst [vmem:[%s3095_s30 + $0x98] sm:$0xff] %v4394_v57  ;;  %v2931_v39 = vpop.f32.mrf.mxu0  ;;  %v2955_v26 = vpop.f32.mrf.mxu1  ;;  %v2343_v18 = vadd.f32 %v4334_v13, %v2118_v5  ;;  %v2143_v13 = vadd.f32 %v4352_v48, %v4261_v11 }
 0x23b   : > { %2618 = vst [vmem:[%s3095_s30 + $0x10] sm:$0xff] %v2468_v30  ;;  %v2650_v14 = vadd.f32 %v2649_v29, %v2468_v30  ;;  %v2691_v15 = vmul.f32 %v2468_v30, %v2468_v30  ;;  %2634 = vst [vmem:[%s3095_s30 + $0x90] sm:$0xff] %v4398_v3  ;;  %v2483_v23 = vadd.f32 %v2931_v39, %v4287_v50 }
 0x23c   : > { %v4412_v25 = vadd.f32 %v2955_v26, %v2338_v21  ;;  %v2477_v1 = vpop.f32.mrf.mxu0  ;;  %v2557_v12 = vpop.f32.mrf.mxu1  ;;  %v2133_v50 = vadd.f32 %v4344_v19, %v4257_v56  ;;  %v2353_v26 = vadd.f32 %v4342_v4, %v2128_v45  ;;  %v2153_v4 = vadd.f32 %v4360_v47, %v4265_v2  ;;  %v4606_v45 = vld [vmem:[#allocation9_spill] sm:$0xff] }
 0x23d   : > { %v2722_v27 = vadd.f32 %v2721_v16, %v2691_v15  ;;  %2621 = vst [vmem:[%s3095_s30 + $0x28] sm:$0xff] %v2483_v23  ;;  %v2478_v36 = vadd.f32 %v2477_v1, %v4284_v38  ;;  %v2651_v37 = vadd.f32 %v2650_v14, %v2473_v28  ;;  %v4421_v17 = vadd.f32 %v2557_v12, %v2333_v63 }
 0x23e   : > { %2637 = vst [vmem:[%s3095_s30 + $0xa8] sm:$0xff] %v4412_v25  ;;  %v2934_v49 = vpop.f32.mrf.mxu0  ;;  %v2958_v59 = vpop.f32.mrf.mxu1  ;;  %v2694_v46 = vmul.f32 %v2483_v23, %v2483_v23 }
 0x23f   : > { %2620 = vst [vmem:[%s3095_s30 + $0x20] sm:$0xff] %v2478_v36  ;;  %v2652_v40 = vadd.f32 %v2651_v37, %v2478_v36  ;;  %v2693_v41 = vmul.f32 %v2478_v36, %v2478_v36  ;;  %v2723_v29 = vadd.f32 %v2722_v27, %v2692_v6  ;;  %v2493_v38 = vadd.f32 %v2934_v49, %v4293_v54 }
 0x240   : > { %2636 = vst [vmem:[%s3095_s30 + $0xa0] sm:$0xff] %v4421_v17  ;;  %v4430_v56 = vadd.f32 %v2958_v59, %v2348_v43  ;;  %v2487_v19 = vpop.f32.mrf.mxu0  ;;  %v2567_v28 = vpop.f32.mrf.mxu1  ;;  %v2358_v54 = vadd.f32 %v4346_v20, %v2133_v50  ;;  %v2138_v20 = vadd.f32 %v4348_v34, %v4259_v44 }
 0x241   : > { %v2724_v52 = vadd.f32 %v2723_v29, %v2693_v41  ;;  %2623 = vst [vmem:[%s3095_s30 + $0x38] sm:$0xff] %v2493_v38  ;;  %v2488_v0 = vadd.f32 %v2487_v19, %v4290_v58  ;;  %v2653_v16 = vadd.f32 %v2652_v40, %v2483_v23  ;;  %v4439_v42 = vadd.f32 %v2567_v28, %v2343_v18  ;;  %v4605_v18 = vld [vmem:[#allocation6_spill] sm:$0xff] }
 0x242   : > { %2639 = vst [vmem:[%s3095_s30 + $0xb8] sm:$0xff] %v4430_v56  ;;  %v2937_v53 = vpop.f32.mrf.mxu0  ;;  %v2961_v30 = vpop.f32.mrf.mxu1  ;;  %v2696_v15 = vmul.f32 %v2493_v38, %v2493_v38  ;;  %v2363_v36 = vadd.f32 %v4350_v61, %v2138_v20  ;;  %v2163_v61 = vadd.f32 %v4369_v22, %v4269_v62  ;;  %v4608_v28 = vld [vmem:[#allocation10_spill] sm:$0xff] }
 0x243   : > { %2622 = vst [vmem:[%s3095_s30 + $0x30] sm:$0xff] %v2488_v0  ;;  %v2654_v21 = vadd.f32 %v2653_v16, %v2488_v0  ;;  %v2695_v33 = vmul.f32 %v2488_v0, %v2488_v0  ;;  %v2725_v39 = vadd.f32 %v2724_v52, %v2694_v46  ;;  %v2503_v58 = vadd.f32 %v2937_v53, %v4299_v35 }
 0x244   : > { %2638 = vst [vmem:[%s3095_s30 + $0xb0] sm:$0xff] %v4439_v42  ;;  %v4448_v11 = vadd.f32 %v2961_v30, %v2358_v54  ;;  %v2497_v48 = vpop.f32.mrf.mxu0  ;;  %v2577_v14 = vpop.f32.mrf.mxu1  ;;  %v2368_v35 = vadd.f32 %v4354_v10, %v2143_v13  ;;  %v2148_v10 = vadd.f32 %v4356_v9, %v4263_v32  ;;  %v4609_v54 = vld [vmem:[#allocation5_spill] sm:$0xff]  ;;  %v2388_v30 = vadd.f32 %v4371_v51, %v2163_v61 }
 0x245   : > { %v2726_v23 = vadd.f32 %v2725_v39, %v2695_v33  ;;  %2625 = vst [vmem:[%s3095_s30 + $0x48] sm:$0xff] %v2503_v58  ;;  %v2498_v63 = vadd.f32 %v2497_v48, %v4296_v55  ;;  %v2655_v5 = vadd.f32 %v2654_v21, %v2493_v38  ;;  %v4457_v44 = vadd.f32 %v2577_v14, %v2353_v26  ;;  %v4610_v48 = vld [vmem:[#allocation8_spill] sm:$0xff] }
 0x246   : > { %2641 = vst [vmem:[%s3095_s30 + $0xc8] sm:$0xff] %v4448_v11  ;;  %v2940_v34 = vpop.f32.mrf.mxu0  ;;  %v2964_v1 = vpop.f32.mrf.mxu1  ;;  %v2698_v43 = vmul.f32 %v2503_v58, %v2503_v58  ;;  %v2373_v19 = vadd.f32 %v4606_v45, %v2148_v10 }
 0x247   : > { %2624 = vst [vmem:[%s3095_s30 + $0x40] sm:$0xff] %v2498_v63  ;;  %v2656_v12 = vadd.f32 %v2655_v5, %v2498_v63  ;;  %v2697_v6 = vmul.f32 %v2498_v63, %v2498_v63  ;;  %v2727_v27 = vadd.f32 %v2726_v23, %v2696_v15  ;;  %v2513_v55 = vadd.f32 %v2940_v34, %v4305_v8  ;;  %v4611_v15 = vld [vmem:[#allocation11_spill] sm:$0xff] }
 0x248   : > { %2640 = vst [vmem:[%s3095_s30 + $0xc0] sm:$0xff] %v4457_v44  ;;  %v4466_v2 = vadd.f32 %v2964_v1, %v2368_v35  ;;  %v2507_v47 = vpop.f32.mrf.mxu0  ;;  %v2587_v37 = vpop.f32.mrf.mxu1  ;;  %v2378_v8 = vadd.f32 %v4362_v60, %v2153_v4  ;;  %v4607_v60 = vld [vmem:[#allocation4_spill] sm:$0xff]  ;;  %v4612_v34 = vld [vmem:[#allocation7_spill] sm:$0xff] }
 0x249   : > { %v2728_v50 = vadd.f32 %v2727_v27, %v2697_v6  ;;  %2627 = vst [vmem:[%s3095_s30 + $0x58] sm:$0xff] %v2513_v55  ;;  %v2508_v49 = vadd.f32 %v2507_v47, %v4302_v31  ;;  %v2657_v59 = vadd.f32 %v2656_v12, %v2503_v58  ;;  %v4475_v32 = vadd.f32 %v2587_v37, %v2363_v36 }
 0x24a   : > { %2643 = vst [vmem:[%s3095_s30 + $0xd8] sm:$0xff] %v4466_v2  ;;  %v2943_v9 = vpop.f32.mrf.mxu0  ;;  %v2967_v40 = vpop.f32.mrf.mxu1  ;;  %v2158_v22 = vadd.f32 %v4608_v28, %v4607_v60  ;;  %v2700_v0 = vmul.f32 %v2513_v55, %v2513_v55 }
 0x24b   : > { %2626 = vst [vmem:[%s3095_s30 + $0x50] sm:$0xff] %v2508_v49  ;;  %v2658_v41 = vadd.f32 %v2657_v59, %v2508_v49  ;;  %v2699_v29 = vmul.f32 %v2508_v49, %v2508_v49  ;;  %v2729_v38 = vadd.f32 %v2728_v50, %v2698_v43  ;;  %v2523_v31 = vadd.f32 %v2943_v9, %v4605_v18 }
 0x24c   : > { %2642 = vst [vmem:[%s3095_s30 + $0xd0] sm:$0xff] %v4475_v32  ;;  %v4484_v62 = vadd.f32 %v2967_v40, %v2378_v8  ;;  %v2517_v46 = vpop.f32.mrf.mxu0  ;;  %v2597_v52 = vpop.f32.mrf.mxu1  ;;  %v2383_v23 = vadd.f32 %v4611_v15, %v2158_v22  ;;  %v2705_v43 = vmul.f32 %v4383_v24, %v4383_v24  ;;  %v2706_v59 = vmul.f32 %v4376_v7, %v4376_v7 }
 0x24d   : > { %v2730_v16 = vadd.f32 %v2729_v38, %v2699_v29  ;;  %2629 = vst [vmem:[%s3095_s30 + $0x68] sm:$0xff] %v2523_v31  ;;  %v2518_v13 = vadd.f32 %v2517_v46, %v4609_v54  ;;  %v2659_v53 = vadd.f32 %v2658_v41, %v2513_v55  ;;  %v4491_v21 = vadd.f32 %v2597_v52, %v2373_v19 }
 0x24e   : > { %2645 = vst [vmem:[%s3095_s30 + $0xe8] sm:$0xff] %v4484_v62  ;;  %v2946_v33 = vpop.f32.mrf.mxu0  ;;  %v2970_v39 = vpop.f32.mrf.mxu1  ;;  %v2702_v35 = vmul.f32 %v2523_v31, %v2523_v31  ;;  %v2707_v9 = vmul.f32 %v4398_v3, %v4398_v3  ;;  %v2708_v29 = vmul.f32 %v4394_v57, %v4394_v57 }
 0x24f   : > { %2628 = vst [vmem:[%s3095_s30 + $0x60] sm:$0xff] %v2518_v13  ;;  %v2660_v58 = vadd.f32 %v2659_v53, %v2518_v13  ;;  %v2701_v26 = vmul.f32 %v2518_v13, %v2518_v13  ;;  %v2731_v20 = vadd.f32 %v2730_v16, %v2700_v0  ;;  %v2533_v14 = vadd.f32 %v2946_v33, %v4610_v48 }
 0x250   : > { %2644 = vst [vmem:[%s3095_s30 + $0xe0] sm:$0xff] %v4491_v21  ;;  %v4498_v51 = vadd.f32 %v2970_v39, %v2388_v30  ;;  %v2527_v63 = vpop.f32.mrf.mxu0  ;;  %v2607_v5 = vpop.f32.mrf.mxu1 }
 0x251   : > { %v2732_v4 = vadd.f32 %v2731_v20, %v2701_v26  ;;  %2631 = vst [vmem:[%s3095_s30 + $0x78] sm:$0xff] %v2533_v14  ;;  %v2528_v1 = vadd.f32 %v2527_v63, %v4612_v34  ;;  %v2661_v12 = vadd.f32 %v2660_v58, %v2523_v31  ;;  %v2608_v6 = vadd.f32 %v2607_v5, %v2383_v23 }
 0x252   : > { %2647 = vst [vmem:[%s3095_s30 + $0xf8] sm:$0xff] %v4498_v51  ;;  %v2704_v10 = vmul.f32 %v2533_v14, %v2533_v14  ;;  %v2720_v23 = vmul.f32 %v4498_v51, %v4498_v51 }
 0x253   : > { %2630 = vst [vmem:[%s3095_s30 + $0x70] sm:$0xff] %v2528_v1  ;;  %v2662_v27 = vadd.f32 %v2661_v12, %v2528_v1  ;;  %v2703_v55 = vmul.f32 %v2528_v1, %v2528_v1  ;;  %v2733_v36 = vadd.f32 %v2732_v4, %v2702_v35  ;;  %2646 = vst [vmem:[%s3095_s30 + $0xf0] sm:$0xff] %v2608_v6 }
 0x255   : > { %v2663_v47 = vadd.f32 %v2662_v27, %v2533_v14  ;;  %v2734_v37 = vadd.f32 %v2733_v36, %v2703_v55  ;;  %v2719_v14 = vmul.f32 %v2608_v6, %v2608_v6 }
 0x257   : > { %v2664_v50 = vadd.f32 %v2663_v47, %v4383_v24  ;;  %v2735_v49 = vadd.f32 %v2734_v37, %v2704_v10  ;;  %v2709_v24 = vmul.f32 %v4421_v17, %v4421_v17 }
 0x259   : > { %v2665_v8 = vadd.f32 %v2664_v50, %v4376_v7  ;;  %v2736_v61 = vadd.f32 %v2735_v49, %v2705_v43  ;;  %v2710_v7 = vmul.f32 %v4412_v25, %v4412_v25 }
 0x25b   : > { %v2666_v40 = vadd.f32 %v2665_v8, %v4398_v3  ;;  %v2737_v41 = vadd.f32 %v2736_v61, %v2706_v59  ;;  %v2711_v3 = vmul.f32 %v4439_v42, %v4439_v42 }
 0x25d   : > { %v2667_v38 = vadd.f32 %v2666_v40, %v4394_v57  ;;  %v2738_v18 = vadd.f32 %v2737_v41, %v2707_v9  ;;  %v2712_v57 = vmul.f32 %v4430_v56, %v4430_v56 }
 0x25f   : > { %v2668_v31 = vadd.f32 %v2667_v38, %v4421_v17  ;;  %v2739_v45 = vadd.f32 %v2738_v18, %v2708_v29  ;;  %v2713_v17 = vmul.f32 %v4457_v44, %v4457_v44 }
 0x261   : > { %v2669_v19 = vadd.f32 %v2668_v31, %v4412_v25  ;;  %v2740_v60 = vadd.f32 %v2739_v45, %v2709_v24  ;;  %v2714_v25 = vmul.f32 %v4448_v11, %v4448_v11 }
 0x263   : > { %v2741_v28 = vadd.f32 %v2740_v60, %v2710_v7  ;;  %v2670_v22 = vadd.f32 %v2669_v19, %v4439_v42  ;;  %v2715_v42 = vmul.f32 %v4475_v32, %v4475_v32 }
 0x265   : > { %v2671_v46 = vadd.f32 %v2670_v22, %v4430_v56  ;;  %v2742_v52 = vadd.f32 %v2741_v28, %v2711_v3  ;;  %v2716_v56 = vmul.f32 %v4466_v2, %v4466_v2 }
 0x267   : > { %v2672_v0 = vadd.f32 %v2671_v46, %v4457_v44  ;;  %v2743_v16 = vadd.f32 %v2742_v52, %v2712_v57  ;;  %v2717_v44 = vmul.f32 %v4491_v21, %v4491_v21 }
 0x269   : > { %v2673_v54 = vadd.f32 %v2672_v0, %v4448_v11  ;;  %v2744_v13 = vadd.f32 %v2743_v16, %v2713_v17  ;;  %v2718_v11 = vmul.f32 %v4484_v62, %v4484_v62 }
 0x26b   : > { %v2674_v53 = vadd.f32 %v2673_v54, %v4475_v32  ;;  %v2745_v30 = vadd.f32 %v2744_v13, %v2714_v25 }
 0x26d   : > { %v2675_v33 = vadd.f32 %v2674_v53, %v4466_v2  ;;  %v2746_v39 = vadd.f32 %v2745_v30, %v2715_v42 }
 0x26f   : > { %v2676_v58 = vadd.f32 %v2675_v33, %v4491_v21  ;;  %v2747_v26 = vadd.f32 %v2746_v39, %v2716_v56 }
 0x271   : > { %v2677_v20 = vadd.f32 %v2676_v58, %v4484_v62  ;;  %v2748_v48 = vadd.f32 %v2747_v26, %v2717_v44 }
 0x273   : > { %v2678_v32 = vadd.f32 %v2677_v20, %v2608_v6  ;;  %v2749_v15 = vadd.f32 %v2748_v48, %v2718_v11  ;;  %v2648_v6 = vld [vmem:[%s4571_s5] sm:$0x1] }
 0x275   : > { %v2679_v2 = vadd.f32 %v2678_v32, %v4498_v51  ;;  %v2750_v63 = vadd.f32 %v2749_v15, %v2719_v14  ;;  %v2688_v51 = vld [vmem:[%s4572_s6] sm:$0x1] }
 0x277   : > { %v2680_v5 = vrot.slane %v2679_v2, 4  ;;  %v2751_v35 = vadd.f32 %v2750_v63, %v2720_v23 }
 0x279   : > { %v2681_v4 = vadd.f32 %v2680_v5, %v2679_v2  ;;  %v2752_v21 = vrot.slane %v2751_v35, 4 }
 0x27b   : > { %v2682_v34 = vrot.slane %v2681_v4, 2  ;;  %v2753_v1 = vadd.f32 %v2752_v21, %v2751_v35 }
 0x27d   : > { %v2683_v12 = vadd.f32 %v2682_v34, %v2681_v4  ;;  %v2754_v27 = vrot.slane %v2753_v1, 2 }
 0x27f   : > { %v2684_v55 = vrot.slane %v2683_v12, 1  ;;  %v2755_v62 = vadd.f32 %v2754_v27, %v2753_v1 }
 0x281   : > { %v2685_v36 = vadd.f32 %v2684_v55, %v2683_v12  ;;  %v2756_v10 = vrot.slane %v2755_v62, 1 }
 0x283   : > { %v2686_v47 = vadd.f32 %v2685_v36, %v2648_v6  ;;  %v2757_v37 = vadd.f32 %v2756_v10, %v2755_v62 }
 0x285   : > { %2687 = vst [vmem:[%s4571_s5] sm:$0x1] %v2686_v47  ;;  %v2758_v43 = vadd.f32 %v2757_v37, %v2688_v51 }
 0x287   : > { %2759 = vst [vmem:[%s4572_s6] sm:$0x1] %v2758_v43 }
 0x288 PF: > { %s17_s21 = sadd.s32 1, %s3040_s21  }
 0x289   : > { %p14_p5 = scmp.ge.s32.totalorder %s17_s21, 4  }
 0x28b   :  { %16 = sbr.rel (!%p14_p5) target bundleno = 1 (0x1), region = 88 }

// kernel: unet_down.3
= control target key start
LH: loop header
LB: loop body
LE: loop exit
PB: predicated region body
PF: predicated region fallthrough
CT: control target
= control target key end

     0   :  { %s2977_s21 = smov 0   ;;  %s4349_s0 = inlined_call_operand.vmem [shape: f32[2,16,16,128], index: 0, kind: input, shape index: {}]   ;;  %s4350_s1 = inlined_call_operand.vmem [shape: f32[1,128], index: 1, kind: input, shape index: {}]   ;;  %s4351_s2 = inlined_call_operand.vmem [shape: f32[1,128], index: 2, kind: input, shape index: {}]   ;;  %s4352_s3 = inlined_call_operand.vmem [shape: f32[1152,128], index: 3, kind: input, shape index: {}]   ;;  %s4353_s4 = inlined_call_operand.vmem [shape: f32[2,16,16,128], index: 4, kind: output, shape index: {0}]   ;;  %s4354_s5 = inlined_call_operand.vmem [shape: f32[1,128], index: 5, kind: output, shape index: {1}]   ;;  %s4355_s6 = inlined_call_operand.vmem [shape: f32[1,128], index: 6, kind: output, shape index: {2}]  }
   0x1 LB: > { %s2717_s1 = sadd.s32 4294967295, %s2938_s21   ;;  %p2721_p0 = scmp.ge.s32.totalorder %s2938_s21, 1  ;;  %s2938_s21 = sphi %s2977_s21, %s17_s21  }
   0x2   : > { %p207_p1 = scmp.lt.s32.totalorder %s2938_s21, 3 }
   0x4   : > { %p208_p2 = pnand %p2721_p0, %p207_p1 }
   0x6   : > { %211 = sbr.rel (%p208_p2) target bundleno = 648 (0x288), region = 36 }
   0xb   : > { %p237_p3 = scmp.lt.s32.totalorder %s2717_s1, 1  ;;  %p2726_p4 = scmp.ne.s32.totalorder %s2717_s1, 0 }
   0xd   : > { %s238_s2 = scalar_select %p237_p3, %s2717_s1, 1 }
   0xe   : > { %250 = sbr.rel (%p2726_p4) target bundleno = 48 (0x30), region = 40 }
   0xf   : > { %s2729_s22 = sshll.u32 %s238_s2, 8 }
  0x10   : > { %s2988_s25 = scalar_lea.vmem %s4349_s0, %s2729_s22  ;;  %s2993_s28 = scalar_lea.vmem %s4353_s4, %s2729_s22 }
  0x13   : > { %v2940_v0 = vmov 0.0  }
  0x14   : > { %251 = vst [vmem:[%s4354_s5] sm:$0x1] %v2940_v0  ;;  %252 = vst [vmem:[%s4355_s6] sm:$0x1] %v2940_v0 }
  0x15   : > { %253 = vst [vmem:[#allocation2] sm:$0xff] %v2940_v0  ;;  %254 = vst [vmem:[#allocation2 + $0x8] sm:$0xff] %v2940_v0 }
  0x16   : > { %255 = vst [vmem:[#allocation2 + $0x10] sm:$0x3] %v2940_v0  ;;  %256 = vst [vmem:[#allocation2 + $0x18] sm:$0xff] %v2940_v0 }
  0x17   : > { %257 = vst [vmem:[#allocation2 + $0x20] sm:$0xff] %v2940_v0  ;;  %258 = vst [vmem:[#allocation2 + $0x28] sm:$0x3] %v2940_v0 }
  0x18   : > { %259 = vst [vmem:[#allocation2 + $0x30] sm:$0xff] %v2940_v0  ;;  %260 = vst [vmem:[#allocation2 + $0x38] sm:$0xff] %v2940_v0 }
  0x19   : > { %261 = vst [vmem:[#allocation2 + $0x40] sm:$0x3] %v2940_v0  ;;  %262 = vst [vmem:[#allocation2 + $0x48] sm:$0xff] %v2940_v0 }
  0x1a   : > { %263 = vst [vmem:[#allocation2 + $0x50] sm:$0xff] %v2940_v0  ;;  %264 = vst [vmem:[#allocation2 + $0x58] sm:$0x3] %v2940_v0 }
  0x1b   : > { %265 = vst [vmem:[#allocation2 + $0x60] sm:$0xff] %v2940_v0  ;;  %266 = vst [vmem:[#allocation2 + $0x68] sm:$0xff] %v2940_v0 }
  0x1c   : > { %267 = vst [vmem:[#allocation2 + $0x70] sm:$0x3] %v2940_v0  ;;  %268 = vst [vmem:[#allocation2 + $0x78] sm:$0xff] %v2940_v0 }
  0x1d   : > { %269 = vst [vmem:[#allocation2 + $0x80] sm:$0xff] %v2940_v0  ;;  %270 = vst [vmem:[#allocation2 + $0x88] sm:$0x3] %v2940_v0 }
  0x1e   : > { %271 = vst [vmem:[#allocation2 + $0x90] sm:$0xff] %v2940_v0  ;;  %272 = vst [vmem:[#allocation2 + $0x98] sm:$0xff] %v2940_v0 }
  0x1f   : > { %273 = vst [vmem:[#allocation2 + $0xa0] sm:$0x3] %v2940_v0  ;;  %274 = vst [vmem:[#allocation2 + $0xa8] sm:$0xff] %v2940_v0 }
  0x20   : > { %275 = vst [vmem:[#allocation2 + $0xb0] sm:$0xff] %v2940_v0  ;;  %276 = vst [vmem:[#allocation2 + $0xb8] sm:$0x3] %v2940_v0 }
  0x21   : > { %277 = vst [vmem:[#allocation2 + $0xc0] sm:$0xff] %v2940_v0  ;;  %278 = vst [vmem:[#allocation2 + $0xc8] sm:$0xff] %v2940_v0 }
  0x22   : > { %279 = vst [vmem:[#allocation2 + $0xd0] sm:$0x3] %v2940_v0  ;;  %280 = vst [vmem:[#allocation2 + $0xd8] sm:$0xff] %v2940_v0 }
  0x23   : > { %281 = vst [vmem:[#allocation2 + $0xe0] sm:$0xff] %v2940_v0  ;;  %282 = vst [vmem:[#allocation2 + $0xe8] sm:$0x3] %v2940_v0 }
  0x24   : > { %283 = vst [vmem:[#allocation2 + $0xf0] sm:$0xff] %v2940_v0  ;;  %284 = vst [vmem:[#allocation2 + $0xf8] sm:$0xff] %v2940_v0 }
  0x25   : > { %285 = vst [vmem:[#allocation2 + $0x100] sm:$0x3] %v2940_v0  ;;  %286 = vst [vmem:[#allocation2 + $0x108] sm:$0xff] %v2940_v0 }
  0x26   : > { %287 = vst [vmem:[#allocation2 + $0x110] sm:$0xff] %v2940_v0  ;;  %288 = vst [vmem:[#allocation2 + $0x118] sm:$0x3] %v2940_v0 }
  0x27   : > { %289 = vst [vmem:[#allocation2 + $0x120] sm:$0xff] %v2940_v0  ;;  %290 = vst [vmem:[#allocation2 + $0x128] sm:$0xff] %v2940_v0 }
  0x28   : > { %291 = vst [vmem:[#allocation2 + $0x130] sm:$0x3] %v2940_v0  ;;  %292 = vst [vmem:[#allocation2 + $0x138] sm:$0xff] %v2940_v0 }
  0x29   : > { %293 = vst [vmem:[#allocation2 + $0x140] sm:$0xff] %v2940_v0  ;;  %294 = vst [vmem:[#allocation2 + $0x148] sm:$0x3] %v2940_v0 }
  0x2a   : > { %295 = vst [vmem:[#allocation2 + $0x150] sm:$0xff] %v2940_v0  ;;  %296 = vst [vmem:[#allocation2 + $0x158] sm:$0xff] %v2940_v0 }
  0x2b   : > { %297 = vst [vmem:[#allocation2 + $0x160] sm:$0x3] %v2940_v0  ;;  %298 = vst [vmem:[#allocation2 + $0x168] sm:$0xff] %v2940_v0 }
  0x2c   : > { %299 = vst [vmem:[#allocation2 + $0x170] sm:$0xff] %v2940_v0  ;;  %300 = vst [vmem:[#allocation2 + $0x178] sm:$0x3] %v2940_v0 }
  0x2d   : > { %301 = vst [vmem:[#allocation2 + $0x180] sm:$0xff] %v2940_v0  ;;  %302 = vst [vmem:[#allocation2 + $0x188] sm:$0xff] %v2940_v0 }
  0x2e   : > { %303 = vst [vmem:[#allocation2 + $0x190] sm:$0x3] %v2940_v0  ;;  %304 = vst [vmem:[#allocation2 + $0x198] sm:$0xff] %v2940_v0 }
  0x2f   : > { %305 = vst [vmem:[#allocation2 + $0x1a0] sm:$0xff] %v2940_v0  ;;  %306 = vst [vmem:[#allocation2 + $0x1a8] sm:$0x3] %v2940_v0 }
  0x30 PF: > { %v1252_v1 = vld [vmem:[%s4352_s3 + $0x78] sm:$0xff]  ;;  %v4356_v3 = vmov 0.0   ;;  %v1251_v4 = vld [vmem:[%s4352_s3 + $0x70] sm:$0xff]  ;;  %v1250_v6 = vld [vmem:[%s4352_s3 + $0x68] sm:$0xff] }
  0x31   : > { %v1284_v2 = vld [vmem:[%s4352_s3 + $0x178] sm:$0xff]  ;;  %1381 = vmatprep.subr.mxu0 %v4356_v3  ;;  %1606 = vmatprep.subr.mxu1 %v4356_v3  ;;  %v1283_v5 = vld [vmem:[%s4352_s3 + $0x170] sm:$0xff]  ;;  %v1282_v7 = vld [vmem:[%s4352_s3 + $0x168] sm:$0xff] }
  0x32   : > { %1382 = vmatpush1.msra.mxu0 %v1252_v1  ;;  %1607 = vmatpush1.msra.mxu1 %v1284_v2  ;;  %v1249_v8 = vld [vmem:[%s4352_s3 + $0x60] sm:$0xff]  ;;  %v1248_v10 = vld [vmem:[%s4352_s3 + $0x58] sm:$0xff]  ;;  %v1247_v12 = vld [vmem:[%s4352_s3 + $0x50] sm:$0xff] }
  0x33   : > { %1383 = vmatprep.subr.mxu0 %v4356_v3  ;;  %1608 = vmatprep.subr.mxu1 %v4356_v3  ;;  %v1281_v9 = vld [vmem:[%s4352_s3 + $0x160] sm:$0xff]  ;;  %v1280_v11 = vld [vmem:[%s4352_s3 + $0x158] sm:$0xff]  ;;  %v1279_v13 = vld [vmem:[%s4352_s3 + $0x150] sm:$0xff] }
  0x34   : > { %1384 = vmatpush1.msra.mxu0 %v1251_v4  ;;  %1609 = vmatpush1.msra.mxu1 %v1283_v5  ;;  %v1246_v14 = vld [vmem:[%s4352_s3 + $0x48] sm:$0xff]  ;;  %v1245_v16 = vld [vmem:[%s4352_s3 + $0x40] sm:$0xff]  ;;  %v1244_v18 = vld [vmem:[%s4352_s3 + $0x38] sm:$0xff] }
  0x35   : > { %1385 = vmatprep.subr.mxu0 %v4356_v3  ;;  %1610 = vmatprep.subr.mxu1 %v4356_v3  ;;  %v1278_v15 = vld [vmem:[%s4352_s3 + $0x148] sm:$0xff]  ;;  %v1277_v17 = vld [vmem:[%s4352_s3 + $0x140] sm:$0xff]  ;;  %v1276_v19 = vld [vmem:[%s4352_s3 + $0x138] sm:$0xff] }
  0x36   : > { %1386 = vmatpush1.msra.mxu0 %v1250_v6  ;;  %1611 = vmatpush1.msra.mxu1 %v1282_v7  ;;  %v1243_v20 = vld [vmem:[%s4352_s3 + $0x30] sm:$0xff]  ;;  %v1242_v22 = vld [vmem:[%s4352_s3 + $0x28] sm:$0xff]  ;;  %v1241_v24 = vld [vmem:[%s4352_s3 + $0x20] sm:$0xff] }
  0x37   : > { %1387 = vmatprep.subr.mxu0 %v4356_v3  ;;  %1612 = vmatprep.subr.mxu1 %v4356_v3  ;;  %v1275_v21 = vld [vmem:[%s4352_s3 + $0x130] sm:$0xff]  ;;  %v1274_v23 = vld [vmem:[%s4352_s3 + $0x128] sm:$0xff]  ;;  %v1273_v25 = vld [vmem:[%s4352_s3 + $0x120] sm:$0xff] }
  0x38   : > { %1388 = vmatpush1.msra.mxu0 %v1249_v8  ;;  %1613 = vmatpush1.msra.mxu1 %v1281_v9  ;;  %v3096_v26 = vld [vmem:[%s2988_s25] sm:$0xff]  ;;  %v1240_v27 = vld [vmem:[%s4352_s3 + $0x18] sm:$0xff]  ;;  %v3108_v29 = vld [vmem:[%s2988_s25 + $0x8] sm:$0xff] }
  0x39   : > { %1389 = vmatprep.subr.mxu0 %v4356_v3  ;;  %1614 = vmatprep.subr.mxu1 %v4356_v3  ;;  %340 = vst [vmem:[#allocation2 + $0x19] sm:$0xff] %v3096_v26  ;;  %v1272_v28 = vld [vmem:[%s4352_s3 + $0x118] sm:$0xff]  ;;  %341 = vst [vmem:[#allocation2 + $0x21] sm:$0xff] %v3108_v29  ;;  %v3112_v30 = vld [vmem:[%s2988_s25 + $0x10] sm:$0xff] }
  0x3a   : > { %1390 = vmatpush1.msra.mxu0 %v1248_v10  ;;  %1615 = vmatpush1.msra.mxu1 %v1280_v11  ;;  %v1239_v31 = vld [vmem:[%s4352_s3 + $0x10] sm:$0xff]  ;;  %342 = vst [vmem:[#allocation2 + $0x31] sm:$0xff] %v3112_v30  ;;  %v3124_v33 = vld [vmem:[%s2988_s25 + $0x18] sm:$0xff]  ;;  %v3128_v34 = vld [vmem:[%s2988_s25 + $0x20] sm:$0xff] }
  0x3b   : > { %1391 = vmatprep.subr.mxu0 %v4356_v3  ;;  %1616 = vmatprep.subr.mxu1 %v4356_v3  ;;  %v1271_v32 = vld [vmem:[%s4352_s3 + $0x110] sm:$0xff]  ;;  %343 = vst [vmem:[#allocation2 + $0x39] sm:$0xff] %v3124_v33  ;;  %v3131_v35 = vld [vmem:[%s2988_s25 + $0x28] sm:$0xff]  ;;  %344 = vst [vmem:[#allocation2 + $0x49] sm:$0xff] %v3128_v34 }
  0x3c   : > { %1392 = vmatpush1.msra.mxu0 %v1247_v12  ;;  %1617 = vmatpush1.msra.mxu1 %v1279_v13  ;;  %v1238_v36 = vld [vmem:[%s4352_s3 + $0x8] sm:$0xff]  ;;  %345 = vst [vmem:[#allocation2 + $0x51] sm:$0xff] %v3131_v35  ;;  %v3144_v38 = vld [vmem:[%s2988_s25 + $0x30] sm:$0xff]  ;;  %v3148_v39 = vld [vmem:[%s2988_s25 + $0x38] sm:$0xff] }
  0x3d   : > { %1393 = vmatprep.subr.mxu0 %v4356_v3  ;;  %1618 = vmatprep.subr.mxu1 %v4356_v3  ;;  %v1270_v37 = vld [vmem:[%s4352_s3 + $0x108] sm:$0xff]  ;;  %346 = vst [vmem:[#allocation2 + $0x61] sm:$0xff] %v3144_v38  ;;  %v3151_v40 = vld [vmem:[%s2988_s25 + $0x40] sm:$0xff]  ;;  %347 = vst [vmem:[#allocation2 + $0x69] sm:$0xff] %v3148_v39 }
  0x3e   : > { %1394 = vmatpush1.msra.mxu0 %v1246_v14  ;;  %1619 = vmatpush1.msra.mxu1 %v1278_v15  ;;  %v1237_v41 = vld [vmem:[%s4352_s3] sm:$0xff]  ;;  %348 = vst [vmem:[#allocation2 + $0x79] sm:$0xff] %v3151_v40  ;;  %v3164_v43 = vld [vmem:[%s2988_s25 + $0x48] sm:$0xff]  ;;  %v1268_v44 = vld [vmem:[%s4352_s3 + $0xf8] sm:$0xff] }
  0x3f   : > { %1395 = vmatprep.subr.mxu0 %v4356_v3  ;;  %1620 = vmatprep.subr.mxu1 %v4356_v3  ;;  %v1269_v42 = vld [vmem:[%s4352_s3 + $0x100] sm:$0xff]  ;;  %v1300_v45 = vld [vmem:[%s4352_s3 + $0x1f8] sm:$0xff]  ;;  %349 = vst [vmem:[#allocation2 + $0x81] sm:$0xff] %v3164_v43  ;;  %v3176_v46 = vld [vmem:[%s2988_s25 + $0x50] sm:$0xff] }
  0x40   : > { %1396 = vmatpush1.msra.mxu0 %v1245_v16  ;;  %1621 = vmatpush1.msra.mxu1 %v1277_v17  ;;  %v1267_v47 = vld [vmem:[%s4352_s3 + $0xf0] sm:$0xff]  ;;  %350 = vst [vmem:[#allocation2 + $0x91] sm:$0xff] %v3176_v46  ;;  %v1266_v49 = vld [vmem:[%s4352_s3 + $0xe8] sm:$0xff]  ;;  %v1265_v51 = vld [vmem:[%s4352_s3 + $0xe0] sm:$0xff] }
  0x41   : > { %1397 = vmatprep.subr.mxu0 %v4356_v3  ;;  %1622 = vmatprep.subr.mxu1 %v4356_v3  ;;  %v1299_v48 = vld [vmem:[%s4352_s3 + $0x1f0] sm:$0xff]  ;;  %v1298_v50 = vld [vmem:[%s4352_s3 + $0x1e8] sm:$0xff]  ;;  %v1297_v52 = vld [vmem:[%s4352_s3 + $0x1e0] sm:$0xff] }
  0x42   : > { %1398 = vmatpush1.msra.mxu0 %v1244_v18  ;;  %1623 = vmatpush1.msra.mxu1 %v1276_v19  ;;  %v3204_v53 = vld [vmem:[%s2988_s25 + $0x58] sm:$0xff]  ;;  %v3216_v56 = vld [vmem:[%s2988_s25 + $0x60] sm:$0xff]  ;;  %v3220_v57 = vld [vmem:[%s2988_s25 + $0x68] sm:$0xff] }
  0x43   : > { %1399 = vmatprep.subr.mxu0 %v4356_v3  ;;  %1624 = vmatprep.subr.mxu1 %v4356_v3  ;;  %351 = vst [vmem:[#allocation2 + $0x99] sm:$0xff] %v3204_v53  ;;  %v1264_v54 = vld [vmem:[%s4352_s3 + $0xd8] sm:$0xff]  ;;  %352 = vst [vmem:[#allocation2 + $0xa9] sm:$0xff] %v3216_v56  ;;  %v1263_v58 = vld [vmem:[%s4352_s3 + $0xd0] sm:$0xff] }
  0x44   : > { %1400 = vmatpush1.msra.mxu0 %v1243_v20  ;;  %1625 = vmatpush1.msra.mxu1 %v1275_v21  ;;  %v1296_v55 = vld [vmem:[%s4352_s3 + $0x1d8] sm:$0xff]  ;;  %v1295_v59 = vld [vmem:[%s4352_s3 + $0x1d0] sm:$0xff]  ;;  %353 = vst [vmem:[#allocation2 + $0xb1] sm:$0xff] %v3220_v57  ;;  %v1262_v62 = vld [vmem:[%s4352_s3 + $0xc8] sm:$0xff] }
  0x45   : > { %1401 = vmatprep.subr.mxu0 %v4356_v3  ;;  %1626 = vmatprep.subr.mxu1 %v4356_v3  ;;  %v3232_v60 = vld [vmem:[%s2988_s25 + $0x70] sm:$0xff]  ;;  %v3236_v61 = vld [vmem:[%s2988_s25 + $0x78] sm:$0xff]  ;;  %v1294_v63 = vld [vmem:[%s4352_s3 + $0x1c8] sm:$0xff] }
  0x46   : > { %1402 = vmatpush1.msra.mxu0 %v1242_v22  ;;  %1627 = vmatpush1.msra.mxu1 %v1274_v23  ;;  %354 = vst [vmem:[#allocation2 + $0xc1] sm:$0xff] %v3232_v60  ;;  %355 = vst [vmem:[#allocation2 + $0xc9] sm:$0xff] %v3236_v61  ;;  %v3248_v0 = vld [vmem:[%s2988_s25 + $0x80] sm:$0xff]  ;;  %v3252_v1 = vld [vmem:[%s2988_s25 + $0x88] sm:$0xff] }
  0x47   : > { %1403 = vmatprep.subr.mxu0 %v4356_v3  ;;  %1628 = vmatprep.subr.mxu1 %v4356_v3  ;;  %356 = vst [vmem:[#allocation2 + $0xd9] sm:$0xff] %v3248_v0  ;;  %v1261_v2 = vld [vmem:[%s4352_s3 + $0xc0] sm:$0xff]  ;;  %357 = vst [vmem:[#allocation2 + $0xe1] sm:$0xff] %v3252_v1  ;;  %v3264_v5 = vld [vmem:[%s2988_s25 + $0x90] sm:$0xff] }
  0x48   : > { %1404 = vmatpush1.msra.mxu0 %v1241_v24  ;;  %1629 = vmatpush1.msra.mxu1 %v1273_v25  ;;  %v1293_v4 = vld [vmem:[%s4352_s3 + $0x1c0] sm:$0xff]  ;;  %v1260_v6 = vld [vmem:[%s4352_s3 + $0xb8] sm:$0xff]  ;;  %358 = vst [vmem:[#allocation2 + $0xf1] sm:$0xff] %v3264_v5  ;;  %v1259_v8 = vld [vmem:[%s4352_s3 + $0xb0] sm:$0xff] }
  0x49   : > { %1405 = vmatprep.subr.mxu0 %v4356_v3  ;;  %1630 = vmatprep.subr.mxu1 %v4356_v3  ;;  %v1292_v7 = vld [vmem:[%s4352_s3 + $0x1b8] sm:$0xff]  ;;  %v1291_v9 = vld [vmem:[%s4352_s3 + $0x1b0] sm:$0xff]  ;;  %v1258_v11 = vld [vmem:[%s4352_s3 + $0xa8] sm:$0xff] }
  0x4a   : > { %1406 = vmatpush1.msra.mxu0 %v1240_v27  ;;  %1631 = vmatpush1.msra.mxu1 %v1272_v28  ;;  %v3284_v10 = vld [vmem:[%s2988_s25 + $0x98] sm:$0xff]  ;;  %v1290_v12 = vld [vmem:[%s4352_s3 + $0x1a8] sm:$0xff]  ;;  %v3296_v13 = vld [vmem:[%s2988_s25 + $0xa0] sm:$0xff] }
  0x4b   : > { %1407 = vmatprep.subr.mxu0 %v4356_v3  ;;  %1632 = vmatprep.subr.mxu1 %v4356_v3  ;;  %359 = vst [vmem:[#allocation2 + $0xf9] sm:$0xff] %v3284_v10  ;;  %360 = vst [vmem:[#allocation2 + $0x109] sm:$0xff] %v3296_v13  ;;  %v1257_v14 = vld [vmem:[%s4352_s3 + $0xa0] sm:$0xff]  ;;  %v3308_v16 = vld [vmem:[%s2988_s25 + $0xa8] sm:$0xff] }
  0x4c   : > { %1408 = vmatpush1.msra.mxu0 %v1239_v31  ;;  %1633 = vmatpush1.msra.mxu1 %v1271_v32  ;;  %v1289_v15 = vld [vmem:[%s4352_s3 + $0x1a0] sm:$0xff]  ;;  %361 = vst [vmem:[#allocation2 + $0x111] sm:$0xff] %v3308_v16  ;;  %v1256_v17 = vld [vmem:[%s4352_s3 + $0x98] sm:$0xff]  ;;  %v3320_v19 = vld [vmem:[%s2988_s25 + $0xb0] sm:$0xff] }
  0x4d   : > { %1409 = vmatprep.subr.mxu0 %v4356_v3  ;;  %1634 = vmatprep.subr.mxu1 %v4356_v3  ;;  %v1288_v18 = vld [vmem:[%s4352_s3 + $0x198] sm:$0xff]  ;;  %362 = vst [vmem:[#allocation2 + $0x121] sm:$0xff] %v3320_v19  ;;  %v1255_v21 = vld [vmem:[%s4352_s3 + $0x90] sm:$0xff]  ;;  %v3336_v23 = vld [vmem:[%s2988_s25 + $0xc0] sm:$0xff] }
  0x4e   : > { %1410 = vmatpush1.msra.mxu0 %v1238_v36  ;;  %1635 = vmatpush1.msra.mxu1 %v1270_v37  ;;  %v3324_v20 = vld [vmem:[%s2988_s25 + $0xb8] sm:$0xff]  ;;  %v1287_v22 = vld [vmem:[%s4352_s3 + $0x190] sm:$0xff]  ;;  %v1254_v24 = vld [vmem:[%s4352_s3 + $0x88] sm:$0xff]  ;;  %364 = vst [vmem:[#allocation2 + $0x139] sm:$0xff] %v3336_v23 }
  0x4f   : > { %1411 = vmatprep.subr.mxu0 %v4356_v3  ;;  %1636 = vmatprep.subr.mxu1 %v4356_v3  ;;  %363 = vst [vmem:[#allocation2 + $0x129] sm:$0xff] %v3324_v20  ;;  %v1286_v25 = vld [vmem:[%s4352_s3 + $0x188] sm:$0xff]  ;;  %v3352_v28 = vld [vmem:[%s2988_s25 + $0xd0] sm:$0xff]  ;;  %v1253_v31 = vld [vmem:[%s4352_s3 + $0x80] sm:$0xff] }
  0x50   : > { %1412 = vmatpush1.msra.mxu0 %v1237_v41  ;;  %1637 = vmatpush1.msra.mxu1 %v1269_v42  ;;  %v3348_v27 = vld [vmem:[%s2988_s25 + $0xc8] sm:$0xff]  ;;  %366 = vst [vmem:[#allocation2 + $0x151] sm:$0xff] %v3352_v28  ;;  %v1285_v36 = vld [vmem:[%s4352_s3 + $0x180] sm:$0xff]  ;;  %v564_v37 = vld [vmem:[#allocation2 + $0x18] sm:$0xff] }
  0x51   : > { %1413 = vmatprep.subr.mxu0 %v4356_v3  ;;  %1638 = vmatprep.subr.mxu1 %v4356_v3  ;;  %365 = vst [vmem:[#allocation2 + $0x141] sm:$0xff] %v3348_v27  ;;  %v436_v32 = vld [vmem:[#allocation2 + $0x1] sm:$0xff] }
  0x52   : > { %1414 = vmatpush2.msra.mxu0 %v1268_v44  ;;  %1639 = vmatpush2.msra.mxu1 %v1300_v45  ;;  %v372_v41 = vld [vmem:[#allocation2] sm:$0xff]  ;;  %v3366_v44 = vld [vmem:[%s2988_s25 + $0xd8] sm:$0xff]  ;;  %v437_v45 = vld [vmem:[#allocation2 + $0x9] sm:$0xff] }
  0x53   : > { %1415 = vmatprep.subr.mxu0 %v4356_v3  ;;  %1640 = vmatprep.subr.mxu1 %v4356_v3  ;;  %v500_v42 = vld [vmem:[#allocation2 + $0x2] sm:$0xff]  ;;  %367 = vst [vmem:[#allocation2 + $0x159] sm:$0xff] %v3366_v44 }
  0x54   : > { %1416 = vmatpush2.msra.mxu0 %v1267_v47  ;;  %1641 = vmatpush2.msra.mxu1 %v1299_v48  ;;  %v1316_v47 = vld [vmem:[%s4352_s3 + $0x278] sm:$0xff]  ;;  %v565_v48 = vld [vmem:[#allocation2 + $0x20] sm:$0xff] }
  0x55   : > { %1417 = vmatprep.subr.mxu0 %v4356_v3  ;;  %1642 = vmatprep.subr.mxu1 %v4356_v3 }
  0x56   : > { %1418 = vmatpush2.msra.mxu0 %v1266_v49  ;;  %1643 = vmatpush2.msra.mxu1 %v1298_v50  ;;  %v3373_v49 = vld [vmem:[%s2988_s25 + $0xe0] sm:$0xff]  ;;  %v373_v50 = vld [vmem:[#allocation2 + $0x8] sm:$0xff] }
  0x57   : > { %1419 = vmatprep.subr.mxu0 %v4356_v3  ;;  %1644 = vmatprep.subr.mxu1 %v4356_v3  ;;  %368 = vst [vmem:[#allocation2 + $0x169] sm:$0xff] %v3373_v49 }
  0x58   : > { %1420 = vmatpush2.msra.mxu0 %v1265_v51  ;;  %1645 = vmatpush2.msra.mxu1 %v1297_v52  ;;  %v501_v51 = vld [vmem:[#allocation2 + $0xa] sm:$0xff] }
  0x59   : > { %1421 = vmatprep.subr.mxu0 %v4356_v3  ;;  %1646 = vmatprep.subr.mxu1 %v4356_v3  ;;  %v1315_v52 = vld [vmem:[%s4352_s3 + $0x270] sm:$0xff] }
  0x5a   : > { %1422 = vmatpush2.msra.mxu0 %v1264_v54  ;;  %1647 = vmatpush2.msra.mxu1 %v1296_v55  ;;  %v3381_v54 = vld [vmem:[%s2988_s25 + $0xe8] sm:$0xff]  ;;  %v3384_v55 = vld [vmem:[#allocation2 + $0x30] sm:$0xff] }
  0x5b   : > { %1423 = vmatprep.subr.mxu0 %v4356_v3  ;;  %1648 = vmatprep.subr.mxu1 %v4356_v3  ;;  %369 = vst [vmem:[#allocation2 + $0x171] sm:$0xff] %v3381_v54 }
  0x5c   : > { %1424 = vmatpush2.msra.mxu0 %v1263_v58  ;;  %1649 = vmatpush2.msra.mxu1 %v1295_v59  ;;  %v1314_v58 = vld [vmem:[%s4352_s3 + $0x268] sm:$0xff]  ;;  %v1348_v59 = vld [vmem:[%s4352_s3 + $0x378] sm:$0xff] }
  0x5d   : > { %1425 = vmatprep.subr.mxu0 %v4356_v3  ;;  %1650 = vmatprep.subr.mxu1 %v4356_v3 }
  0x5e   : > { %1426 = vmatpush2.msra.mxu0 %v1262_v62  ;;  %1651 = vmatpush2.msra.mxu1 %v1294_v63  ;;  %v337_v62 = vld [vmem:[%s2988_s25 + $0xf0] sm:$0xff]  ;;  %v3396_v63 = vld [vmem:[#allocation2 + $0x1a] sm:$0xff] }
  0x5f   : > { %1427 = vmatprep.subr.mxu0 %v4356_v3  ;;  %1652 = vmatprep.subr.mxu1 %v4356_v3  ;;  %370 = vst [vmem:[#allocation2 + $0x181] sm:$0xff] %v337_v62  ;;  %v3555_v62 = vld [vmem:[#allocation2 + $0x92] sm:$0xff] }
  0x60   : > { %1428 = vmatpush2.msra.mxu0 %v1261_v2  ;;  %1653 = vmatpush2.msra.mxu1 %v1293_v4  ;;  %v3400_v2 = vld [vmem:[#allocation2 + $0x38] sm:$0xff] }
  0x61   : > { %1429 = vmatprep.subr.mxu0 %v4356_v3  ;;  %1654 = vmatprep.subr.mxu1 %v4356_v3  ;;  %v338_v4 = vld [vmem:[%s2988_s25 + $0xf8] sm:$0xff] }
  0x62   : > { %1430 = vmatpush2.msra.mxu0 %v1260_v6  ;;  %1655 = vmatpush2.msra.mxu1 %v1292_v7  ;;  %371 = vst [vmem:[#allocation2 + $0x189] sm:$0xff] %v338_v4  ;;  %v1347_v6 = vld [vmem:[%s4352_s3 + $0x370] sm:$0xff]  ;;  %v3412_v7 = vld [vmem:[#allocation2 + $0x22] sm:$0xff] }
  0x63   : > { %1431 = vmatprep.subr.mxu0 %v4356_v3  ;;  %1656 = vmatprep.subr.mxu1 %v4356_v3  ;;  %v3558_v4 = vld [vmem:[#allocation2 + $0xb0] sm:$0xff] }
  0x64   : > { %1432 = vmatpush2.msra.mxu0 %v1259_v8  ;;  %1657 = vmatpush2.msra.mxu1 %v1291_v9  ;;  %v3415_v8 = vld [vmem:[#allocation2 + $0x48] sm:$0xff]  ;;  %v1312_v9 = vld [vmem:[%s4352_s3 + $0x258] sm:$0xff] }
  0x65   : > { %1433 = vmatprep.subr.mxu0 %v4356_v3  ;;  %1658 = vmatprep.subr.mxu1 %v4356_v3 }
  0x66   : > { %1434 = vmatpush2.msra.mxu0 %v1258_v11  ;;  %1659 = vmatpush2.msra.mxu1 %v1290_v12  ;;  %v3427_v11 = vld [vmem:[#allocation2 + $0x32] sm:$0xff] }
  0x67   : > { %1435 = vmatprep.subr.mxu0 %v4356_v3  ;;  %1660 = vmatprep.subr.mxu1 %v4356_v3  ;;  %v3430_v12 = vld [vmem:[#allocation2 + $0x50] sm:$0xff] }
  0x68   : > { %1436 = vmatpush2.msra.mxu0 %v1257_v14  ;;  %1661 = vmatpush2.msra.mxu1 %v1289_v15  ;;  %v1345_v14 = vld [vmem:[%s4352_s3 + $0x360] sm:$0xff] }
  0x69   : > { %1437 = vmatprep.subr.mxu0 %v4356_v3  ;;  %1662 = vmatprep.subr.mxu1 %v4356_v3  ;;  %v3443_v15 = vld [vmem:[#allocation2 + $0x3a] sm:$0xff] }
  0x6a   : > { %1438 = vmatpush2.msra.mxu0 %v1256_v17  ;;  %1663 = vmatpush2.msra.mxu1 %v1288_v18  ;;  %v3446_v17 = vld [vmem:[#allocation2 + $0x60] sm:$0xff]  ;;  %v1344_v18 = vld [vmem:[%s4352_s3 + $0x358] sm:$0xff] }
  0x6b   : > { %1439 = vmatprep.subr.mxu0 %v4356_v3  ;;  %1664 = vmatprep.subr.mxu1 %v4356_v3 }
  0x6c   : > { %1440 = vmatpush2.msra.mxu0 %v1255_v21  ;;  %1665 = vmatpush2.msra.mxu1 %v1287_v22  ;;  %v3459_v21 = vld [vmem:[#allocation2 + $0x4a] sm:$0xff] }
  0x6d   : > { %1441 = vmatprep.subr.mxu0 %v4356_v3  ;;  %1666 = vmatprep.subr.mxu1 %v4356_v3  ;;  %v3462_v22 = vld [vmem:[#allocation2 + $0x68] sm:$0xff] }
  0x6e   : > { %1442 = vmatpush2.msra.mxu0 %v1254_v24  ;;  %1667 = vmatpush2.msra.mxu1 %v1286_v25  ;;  %v1343_v24 = vld [vmem:[%s4352_s3 + $0x350] sm:$0xff] }
  0x6f   : > { %1443 = vmatprep.subr.mxu0 %v4356_v3  ;;  %1668 = vmatprep.subr.mxu1 %v4356_v3  ;;  %v3475_v25 = vld [vmem:[#allocation2 + $0x52] sm:$0xff] }
  0x70   : > { %1444 = vmatpush2.msra.mxu0 %v1253_v31  ;;  %1445 = vmatprep.mubr.f32.mxu0 %v436_v32  ;;  %v3478_v31 = vld [vmem:[#allocation2 + $0x78] sm:$0xff]  ;;  %v1342_v32 = vld [vmem:[%s4352_s3 + $0x348] sm:$0xff] }
  0x71   : > { %1669 = vmatpush2.msra.mxu1 %v1285_v36  ;;  %1670 = vmatprep.mubr.f32.mxu1 %v564_v37  ;;  %v3491_v36 = vld [vmem:[#allocation2 + $0x62] sm:$0xff] }
  0x72   : > { %1446 = vmatmul.mubr.f32.vlgmr.msra.gmra.mxu0 %v372_v41  ;;  %1671 = vmatmul.mubr.f32.vlgmr.msra.gmra.mxu1 %v500_v42  ;;  %v1341_v41 = vld [vmem:[%s4352_s3 + $0x340] sm:$0xff]  ;;  %v3507_v42 = vld [vmem:[#allocation2 + $0x6a] sm:$0xff] }
  0x73   : > { %1831 = vmatprep.subr.mxu0 %v4356_v3  ;;  %1450 = vmatprep.mubr.f32.mxu0 %v437_v45  ;;  %v3510_v45 = vld [vmem:[#allocation2 + $0x90] sm:$0xff] }
  0x74   : > { %1832 = vmatpush1.msra.mxu0 %v1316_v47  ;;  %1675 = vmatprep.mubr.f32.mxu1 %v565_v48  ;;  %v1340_v47 = vld [vmem:[%s4352_s3 + $0x338] sm:$0xff] }
  0x75   : > { %1833 = vmatprep.subr.mxu0 %v4356_v3  ;;  %2056 = vmatprep.subr.mxu1 %v4356_v3 }
  0x76   : > { %1451 = vmatmul.mubr.f32.gmra.mxu0 %v373_v50  ;;  %1676 = vmatmul.mubr.f32.gmra.mxu1 %v501_v51  ;;  %v3526_v50 = vld [vmem:[#allocation2 + $0x98] sm:$0xff]  ;;  %v1339_v51 = vld [vmem:[%s4352_s3 + $0x330] sm:$0xff] }
  0x77   : > { %1834 = vmatpush1.msra.mxu0 %v1315_v52  ;;  %1455 = vmatprep.mubr.f32.mxu0 %v3096_v26  ;;  %v1313_v26 = vld [vmem:[%s4352_s3 + $0x260] sm:$0xff] }
  0x78   : > { %1680 = vmatprep.mubr.f32.mxu1 %v3384_v55  ;;  %1835 = vmatprep.subr.mxu0 %v4356_v3  ;;  %v3539_v52 = vld [vmem:[#allocation2 + $0x82] sm:$0xff] }
  0x79   : > { %1836 = vmatpush1.msra.mxu0 %v1314_v58  ;;  %2057 = vmatpush1.msra.mxu1 %v1348_v59  ;;  %v3542_v58 = vld [vmem:[#allocation2 + $0xa8] sm:$0xff] }
  0x7a   : > { %1456 = vmatmul.mubr.f32.gmra.mxu0 %v564_v37  ;;  %1681 = vmatmul.mubr.f32.gmra.mxu1 %v3396_v63  ;;  %v3494_v37 = vld [vmem:[#allocation2 + $0x80] sm:$0xff]  ;;  %v1338_v59 = vld [vmem:[%s4352_s3 + $0x328] sm:$0xff] }
  0x7b   : > { %1460 = vmatprep.mubr.f32.mxu0 %v3108_v29  ;;  %1685 = vmatprep.mubr.f32.mxu1 %v3400_v2  ;;  %v1346_v29 = vld [vmem:[%s4352_s3 + $0x368] sm:$0xff] }
  0x7c   : > { %1837 = vmatprep.subr.mxu0 %v4356_v3  ;;  %2058 = vmatprep.subr.mxu1 %v4356_v3 }
  0x7d   : > { %1838 = vmatpush1.msra.mxu0 %v1313_v26  ;;  %2059 = vmatpush1.msra.mxu1 %v1347_v6  ;;  %v1337_v26 = vld [vmem:[%s4352_s3 + $0x320] sm:$0xff] }
  0x7e   : > { %1461 = vmatmul.mubr.f32.gmra.mxu0 %v565_v48  ;;  %1686 = vmatmul.mubr.f32.gmra.mxu1 %v3412_v7  ;;  %v3523_v48 = vld [vmem:[#allocation2 + $0x7a] sm:$0xff] }
  0x7f   : > { %1465 = vmatprep.mubr.f32.mxu0 %v3112_v30  ;;  %1690 = vmatprep.mubr.f32.mxu1 %v3415_v8  ;;  %v1311_v30 = vld [vmem:[%s4352_s3 + $0x250] sm:$0xff]  ;;  %v3571_v6 = vld [vmem:[#allocation2 + $0x9a] sm:$0xff] }
  0x80   : > { %1839 = vmatprep.subr.mxu0 %v4356_v3  ;;  %2060 = vmatprep.subr.mxu1 %v4356_v3 }
  0x81   : > { %1840 = vmatpush1.msra.mxu0 %v1312_v9  ;;  %2061 = vmatpush1.msra.mxu1 %v1346_v29  ;;  %v3574_v9 = vld [vmem:[#allocation2 + $0xc0] sm:$0xff]  ;;  %v1336_v29 = vld [vmem:[%s4352_s3 + $0x318] sm:$0xff] }
  0x82   : > { %1466 = vmatmul.mubr.f32.gmra.mxu0 %v3384_v55  ;;  %1691 = vmatmul.mubr.f32.gmra.mxu1 %v3427_v11 }
  0x83   : > { %1470 = vmatprep.mubr.f32.mxu0 %v3124_v33  ;;  %1695 = vmatprep.mubr.f32.mxu1 %v3430_v12  ;;  %v1310_v33 = vld [vmem:[%s4352_s3 + $0x248] sm:$0xff] }
  0x84   : > { %1841 = vmatprep.subr.mxu0 %v4356_v3  ;;  %2062 = vmatprep.subr.mxu1 %v4356_v3 }
  0x85   : > { %1842 = vmatpush1.msra.mxu0 %v1311_v30  ;;  %2063 = vmatpush1.msra.mxu1 %v1345_v14  ;;  %v3587_v30 = vld [vmem:[#allocation2 + $0xaa] sm:$0xff] }
  0x86   : > { %1471 = vmatmul.mubr.f32.gmra.mxu0 %v3400_v2  ;;  %1696 = vmatmul.mubr.f32.gmra.mxu1 %v3443_v15  ;;  %v3590_v14 = vld [vmem:[#allocation2 + $0xc8] sm:$0xff] }
  0x87   : > { %1475 = vmatprep.mubr.f32.mxu0 %v3128_v34  ;;  %1700 = vmatprep.mubr.f32.mxu1 %v3446_v17  ;;  %v1309_v34 = vld [vmem:[%s4352_s3 + $0x240] sm:$0xff] }
  0x88   : > { %1843 = vmatprep.subr.mxu0 %v4356_v3  ;;  %2064 = vmatprep.subr.mxu1 %v4356_v3 }
  0x89   : > { %1844 = vmatpush1.msra.mxu0 %v1310_v33  ;;  %2065 = vmatpush1.msra.mxu1 %v1344_v18  ;;  %v1335_v33 = vld [vmem:[%s4352_s3 + $0x310] sm:$0xff] }
  0x8a   : > { %1476 = vmatmul.mubr.f32.gmra.mxu0 %v3415_v8  ;;  %1701 = vmatmul.mubr.f32.gmra.mxu1 %v3459_v21  ;;  %v3603_v18 = vld [vmem:[#allocation2 + $0xb2] sm:$0xff] }
  0x8b   : > { %1480 = vmatprep.mubr.f32.mxu0 %v3131_v35  ;;  %1705 = vmatprep.mubr.f32.mxu1 %v3462_v22  ;;  %v1308_v35 = vld [vmem:[%s4352_s3 + $0x238] sm:$0xff] }
  0x8c   : > { %1845 = vmatprep.subr.mxu0 %v4356_v3  ;;  %2066 = vmatprep.subr.mxu1 %v4356_v3 }
  0x8d   : > { %1846 = vmatpush1.msra.mxu0 %v1309_v34  ;;  %2067 = vmatpush1.msra.mxu1 %v1343_v24  ;;  %v3606_v34 = vld [vmem:[#allocation2 + $0xd8] sm:$0xff]  ;;  %v1334_v24 = vld [vmem:[%s4352_s3 + $0x308] sm:$0xff] }
  0x8e   : > { %1481 = vmatmul.mubr.f32.gmra.mxu0 %v3430_v12  ;;  %1706 = vmatmul.mubr.f32.gmra.mxu1 %v3475_v25 }
  0x8f   : > { %1485 = vmatprep.mubr.f32.mxu0 %v3144_v38  ;;  %1710 = vmatprep.mubr.f32.mxu1 %v3478_v31  ;;  %v1307_v38 = vld [vmem:[%s4352_s3 + $0x230] sm:$0xff] }
  0x90   : > { %1847 = vmatprep.subr.mxu0 %v4356_v3  ;;  %2068 = vmatprep.subr.mxu1 %v4356_v3 }
  0x91   : > { %1848 = vmatpush1.msra.mxu0 %v1308_v35  ;;  %2069 = vmatpush1.msra.mxu1 %v1342_v32  ;;  %v3619_v35 = vld [vmem:[#allocation2 + $0xc2] sm:$0xff] }
  0x92   : > { %1486 = vmatmul.mubr.f32.gmra.mxu0 %v3446_v17  ;;  %1711 = vmatmul.mubr.f32.gmra.mxu1 %v3491_v36  ;;  %v3622_v32 = vld [vmem:[#allocation2 + $0xe0] sm:$0xff] }
  0x93   : > { %1490 = vmatprep.mubr.f32.mxu0 %v3148_v39  ;;  %1715 = vmatprep.mubr.f32.mxu1 %v3494_v37  ;;  %v1306_v39 = vld [vmem:[%s4352_s3 + $0x228] sm:$0xff] }
  0x94   : > { %1849 = vmatprep.subr.mxu0 %v4356_v3  ;;  %2070 = vmatprep.subr.mxu1 %v4356_v3 }
  0x95   : > { %1850 = vmatpush1.msra.mxu0 %v1307_v38  ;;  %2071 = vmatpush1.msra.mxu1 %v1341_v41  ;;  %v1333_v38 = vld [vmem:[%s4352_s3 + $0x300] sm:$0xff]  ;;  %v3635_v41 = vld [vmem:[#allocation2 + $0xca] sm:$0xff] }
  0x96   : > { %1491 = vmatmul.mubr.f32.gmra.mxu0 %v3462_v22  ;;  %1716 = vmatmul.mubr.f32.gmra.mxu1 %v3507_v42 }
  0x97   : > { %1495 = vmatprep.mubr.f32.mxu0 %v3151_v40  ;;  %1720 = vmatprep.mubr.f32.mxu1 %v3510_v45  ;;  %v1305_v40 = vld [vmem:[%s4352_s3 + $0x220] sm:$0xff] }
  0x98   : > { %1851 = vmatprep.subr.mxu0 %v4356_v3  ;;  %2072 = vmatprep.subr.mxu1 %v4356_v3 }
  0x99   : > { %1852 = vmatpush1.msra.mxu0 %v1306_v39  ;;  %2073 = vmatpush1.msra.mxu1 %v1340_v47  ;;  %v3638_v39 = vld [vmem:[#allocation2 + $0xf0] sm:$0xff]  ;;  %v1364_v47 = vld [vmem:[%s4352_s3 + $0x3f8] sm:$0xff] }
  0x9a   : > { %1496 = vmatmul.mubr.f32.gmra.mxu0 %v3478_v31  ;;  %1721 = vmatmul.mubr.f32.gmra.mxu1 %v3523_v48 }
  0x9b   : > { %1500 = vmatprep.mubr.f32.mxu0 %v3164_v43  ;;  %1725 = vmatprep.mubr.f32.mxu1 %v3526_v50  ;;  %v1304_v43 = vld [vmem:[%s4352_s3 + $0x218] sm:$0xff] }
  0x9c   : > { %1853 = vmatprep.subr.mxu0 %v4356_v3  ;;  %2074 = vmatprep.subr.mxu1 %v4356_v3 }
  0x9d   : > { %1854 = vmatpush1.msra.mxu0 %v1305_v40  ;;  %2075 = vmatpush1.msra.mxu1 %v1339_v51  ;;  %v3651_v40 = vld [vmem:[#allocation2 + $0xda] sm:$0xff] }
  0x9e   : > { %1501 = vmatmul.mubr.f32.gmra.mxu0 %v3494_v37  ;;  %1726 = vmatmul.mubr.f32.gmra.mxu1 %v3539_v52  ;;  %v3654_v51 = vld [vmem:[#allocation2 + $0xf8] sm:$0xff] }
  0x9f   : > { %1505 = vmatprep.mubr.f32.mxu0 %v3176_v46  ;;  %1730 = vmatprep.mubr.f32.mxu1 %v3542_v58  ;;  %v1303_v46 = vld [vmem:[%s4352_s3 + $0x210] sm:$0xff] }
  0xa0   : > { %1855 = vmatprep.subr.mxu0 %v4356_v3  ;;  %2076 = vmatprep.subr.mxu1 %v4356_v3 }
  0xa1   : > { %1856 = vmatpush1.msra.mxu0 %v1304_v43  ;;  %2077 = vmatpush1.msra.mxu1 %v1338_v59  ;;  %v1363_v43 = vld [vmem:[%s4352_s3 + $0x3f0] sm:$0xff]  ;;  %v3667_v59 = vld [vmem:[#allocation2 + $0xe2] sm:$0xff] }
  0xa2   : > { %1506 = vmatmul.mubr.f32.gmra.mxu0 %v3510_v45  ;;  %1731 = vmatmul.mubr.f32.gmra.mxu1 %v3555_v62 }
  0xa3   : > { %1510 = vmatprep.mubr.f32.mxu0 %v3204_v53  ;;  %1735 = vmatprep.mubr.f32.mxu1 %v3558_v4  ;;  %v1302_v53 = vld [vmem:[%s4352_s3 + $0x208] sm:$0xff] }
  0xa4   : > { %1857 = vmatprep.subr.mxu0 %v4356_v3  ;;  %2078 = vmatprep.subr.mxu1 %v4356_v3 }
  0xa5   : > { %1858 = vmatpush1.msra.mxu0 %v1303_v46  ;;  %2079 = vmatpush1.msra.mxu1 %v1337_v26  ;;  %v3670_v46 = vld [vmem:[#allocation2 + $0x108] sm:$0xff] }
  0xa6   : > { %1511 = vmatmul.mubr.f32.gmra.mxu0 %v3526_v50  ;;  %1736 = vmatmul.mubr.f32.gmra.mxu1 %v3571_v6  ;;  %v1362_v26 = vld [vmem:[%s4352_s3 + $0x3e8] sm:$0xff] }
  0xa7   : > { %1515 = vmatprep.mubr.f32.mxu0 %v3216_v56  ;;  %1740 = vmatprep.mubr.f32.mxu1 %v3574_v9  ;;  %v1301_v56 = vld [vmem:[%s4352_s3 + $0x200] sm:$0xff] }
  0xa8   : > { %1859 = vmatprep.subr.mxu0 %v4356_v3  ;;  %2080 = vmatprep.subr.mxu1 %v4356_v3 }
  0xa9   : > { %1860 = vmatpush1.msra.mxu0 %v1302_v53  ;;  %2081 = vmatpush1.msra.mxu1 %v1336_v29  ;;  %v3683_v53 = vld [vmem:[#allocation2 + $0xf2] sm:$0xff] }
  0xaa   : > { %1516 = vmatmul.mubr.f32.gmra.mxu0 %v3542_v58  ;;  %1741 = vmatmul.mubr.f32.gmra.mxu1 %v3587_v30  ;;  %v3686_v29 = vld [vmem:[#allocation2 + $0x110] sm:$0xff] }
  0xab   : > { %1520 = vmatprep.mubr.f32.mxu0 %v3220_v57  ;;  %1745 = vmatprep.mubr.f32.mxu1 %v3590_v14  ;;  %v1332_v57 = vld [vmem:[%s4352_s3 + $0x2f8] sm:$0xff] }
  0xac   : > { %1861 = vmatprep.subr.mxu0 %v4356_v3  ;;  %2082 = vmatprep.subr.mxu1 %v4356_v3 }
  0xad   : > { %1862 = vmatpush1.msra.mxu0 %v1301_v56  ;;  %2083 = vmatpush1.msra.mxu1 %v1335_v33  ;;  %v1361_v56 = vld [vmem:[%s4352_s3 + $0x3e0] sm:$0xff] }
  0xae   : > { %1521 = vmatmul.mubr.f32.gmra.mxu0 %v3558_v4  ;;  %1746 = vmatmul.mubr.f32.gmra.mxu1 %v3603_v18  ;;  %v3699_v33 = vld [vmem:[#allocation2 + $0xfa] sm:$0xff] }
  0xaf   : > { %1525 = vmatprep.mubr.f32.mxu0 %v3232_v60  ;;  %1750 = vmatprep.mubr.f32.mxu1 %v3606_v34  ;;  %v1331_v60 = vld [vmem:[%s4352_s3 + $0x2f0] sm:$0xff] }
  0xb0   : > { %1863 = vmatprep.subr.mxu0 %v4356_v3  ;;  %2084 = vmatprep.subr.mxu1 %v4356_v3 }
  0xb1   : > { %1864 = vmatpush2.msra.mxu0 %v1332_v57  ;;  %2085 = vmatpush1.msra.mxu1 %v1334_v24  ;;  %v3702_v57 = vld [vmem:[#allocation2 + $0x120] sm:$0xff]  ;;  %v1360_v24 = vld [vmem:[%s4352_s3 + $0x3d8] sm:$0xff] }
  0xb2   : > { %1526 = vmatmul.mubr.f32.gmra.mxu0 %v3574_v9  ;;  %1751 = vmatmul.mubr.f32.gmra.mxu1 %v3619_v35 }
  0xb3   : > { %1530 = vmatprep.mubr.f32.mxu0 %v3236_v61  ;;  %1755 = vmatprep.mubr.f32.mxu1 %v3622_v32  ;;  %v1330_v61 = vld [vmem:[%s4352_s3 + $0x2e8] sm:$0xff] }
  0xb4   : > { %1865 = vmatprep.subr.mxu0 %v4356_v3  ;;  %2086 = vmatprep.subr.mxu1 %v4356_v3 }
  0xb5   : > { %1866 = vmatpush2.msra.mxu0 %v1331_v60  ;;  %2087 = vmatpush1.msra.mxu1 %v1333_v38  ;;  %v3715_v60 = vld [vmem:[#allocation2 + $0x10a] sm:$0xff] }
  0xb6   : > { %1531 = vmatmul.mubr.f32.gmra.mxu0 %v3590_v14  ;;  %1756 = vmatmul.mubr.f32.gmra.mxu1 %v3635_v41  ;;  %v3718_v38 = vld [vmem:[#allocation2 + $0x128] sm:$0xff] }
  0xb7   : > { %1535 = vmatprep.mubr.f32.mxu0 %v3248_v0  ;;  %1760 = vmatprep.mubr.f32.mxu1 %v3638_v39  ;;  %v1329_v0 = vld [vmem:[%s4352_s3 + $0x2e0] sm:$0xff] }
  0xb8   : > { %1867 = vmatprep.subr.mxu0 %v4356_v3  ;;  %2088 = vmatprep.subr.mxu1 %v4356_v3 }
  0xb9   : > { %1868 = vmatpush2.msra.mxu0 %v1330_v61  ;;  %2089 = vmatpush2.msra.mxu1 %v1364_v47  ;;  %v1359_v61 = vld [vmem:[%s4352_s3 + $0x3d0] sm:$0xff] }
  0xba   : > { %1536 = vmatmul.mubr.f32.gmra.mxu0 %v3606_v34  ;;  %1761 = vmatmul.mubr.f32.gmra.mxu1 %v3651_v40  ;;  %v3731_v47 = vld [vmem:[#allocation2 + $0x112] sm:$0xff] }
  0xbb   : > { %1540 = vmatprep.mubr.f32.mxu0 %v3252_v1  ;;  %1765 = vmatprep.mubr.f32.mxu1 %v3654_v51  ;;  %v1328_v1 = vld [vmem:[%s4352_s3 + $0x2d8] sm:$0xff] }
  0xbc   : > { %1869 = vmatprep.subr.mxu0 %v4356_v3  ;;  %2090 = vmatprep.subr.mxu1 %v4356_v3 }
  0xbd   : > { %1870 = vmatpush2.msra.mxu0 %v1329_v0  ;;  %2091 = vmatpush2.msra.mxu1 %v1363_v43  ;;  %v3734_v0 = vld [vmem:[#allocation2 + $0x138] sm:$0xff]  ;;  %v1358_v43 = vld [vmem:[%s4352_s3 + $0x3c8] sm:$0xff] }
  0xbe   : > { %1541 = vmatmul.mubr.f32.gmra.mxu0 %v3622_v32  ;;  %1766 = vmatmul.mubr.f32.gmra.mxu1 %v3667_v59 }
  0xbf   : > { %1545 = vmatprep.mubr.f32.mxu0 %v3264_v5  ;;  %1770 = vmatprep.mubr.f32.mxu1 %v3670_v46  ;;  %v1327_v5 = vld [vmem:[%s4352_s3 + $0x2d0] sm:$0xff] }
  0xc0   : > { %1871 = vmatprep.subr.mxu0 %v4356_v3  ;;  %2092 = vmatprep.subr.mxu1 %v4356_v3 }
  0xc1   : > { %1872 = vmatpush2.msra.mxu0 %v1328_v1  ;;  %2093 = vmatpush2.msra.mxu1 %v1362_v26  ;;  %v3747_v1 = vld [vmem:[#allocation2 + $0x122] sm:$0xff] }
  0xc2   : > { %1546 = vmatmul.mubr.f32.gmra.mxu0 %v3638_v39  ;;  %1771 = vmatmul.mubr.f32.gmra.mxu1 %v3683_v53  ;;  %v3750_v26 = vld [vmem:[#allocation2 + $0x140] sm:$0xff] }
  0xc3   : > { %1550 = vmatprep.mubr.f32.mxu0 %v3284_v10  ;;  %1775 = vmatprep.mubr.f32.mxu1 %v3686_v29  ;;  %v1326_v10 = vld [vmem:[%s4352_s3 + $0x2c8] sm:$0xff] }
  0xc4   : > { %1873 = vmatprep.subr.mxu0 %v4356_v3  ;;  %2094 = vmatprep.subr.mxu1 %v4356_v3 }
  0xc5   : > { %1874 = vmatpush2.msra.mxu0 %v1327_v5  ;;  %2095 = vmatpush2.msra.mxu1 %v1361_v56  ;;  %v1357_v5 = vld [vmem:[%s4352_s3 + $0x3c0] sm:$0xff]  ;;  %v3763_v56 = vld [vmem:[#allocation2 + $0x12a] sm:$0xff] }
  0xc6   : > { %1551 = vmatmul.mubr.f32.gmra.mxu0 %v3654_v51  ;;  %1776 = vmatmul.mubr.f32.gmra.mxu1 %v3699_v33 }
  0xc7   : > { %1555 = vmatprep.mubr.f32.mxu0 %v3296_v13  ;;  %1780 = vmatprep.mubr.f32.mxu1 %v3702_v57  ;;  %v1325_v13 = vld [vmem:[%s4352_s3 + $0x2c0] sm:$0xff] }
  0xc8   : > { %1875 = vmatprep.subr.mxu0 %v4356_v3  ;;  %2096 = vmatprep.subr.mxu1 %v4356_v3 }
  0xc9   : > { %1876 = vmatpush2.msra.mxu0 %v1326_v10  ;;  %2097 = vmatpush2.msra.mxu1 %v1360_v24  ;;  %v3766_v10 = vld [vmem:[#allocation2 + $0x150] sm:$0xff]  ;;  %v1356_v24 = vld [vmem:[%s4352_s3 + $0x3b8] sm:$0xff] }
  0xca   : > { %1556 = vmatmul.mubr.f32.gmra.mxu0 %v3670_v46  ;;  %1781 = vmatmul.mubr.f32.gmra.mxu1 %v3715_v60 }
  0xcb   : > { %1560 = vmatprep.mubr.f32.mxu0 %v3308_v16  ;;  %1785 = vmatprep.mubr.f32.mxu1 %v3718_v38  ;;  %v1324_v16 = vld [vmem:[%s4352_s3 + $0x2b8] sm:$0xff] }
  0xcc   : > { %1877 = vmatprep.subr.mxu0 %v4356_v3  ;;  %2098 = vmatprep.subr.mxu1 %v4356_v3 }
  0xcd   : > { %1878 = vmatpush2.msra.mxu0 %v1325_v13  ;;  %2099 = vmatpush2.msra.mxu1 %v1359_v61  ;;  %v3779_v13 = vld [vmem:[#allocation2 + $0x13a] sm:$0xff] }
  0xce   : > { %1561 = vmatmul.mubr.f32.gmra.mxu0 %v3686_v29  ;;  %1786 = vmatmul.mubr.f32.gmra.mxu1 %v3731_v47  ;;  %v3782_v61 = vld [vmem:[#allocation2 + $0x158] sm:$0xff] }
  0xcf   : > { %1565 = vmatprep.mubr.f32.mxu0 %v3320_v19  ;;  %1790 = vmatprep.mubr.f32.mxu1 %v3734_v0  ;;  %v1323_v19 = vld [vmem:[%s4352_s3 + $0x2b0] sm:$0xff] }
  0xd0   : > { %1879 = vmatprep.subr.mxu0 %v4356_v3  ;;  %2100 = vmatprep.subr.mxu1 %v4356_v3 }
  0xd1   : > { %1880 = vmatpush2.msra.mxu0 %v1324_v16  ;;  %2101 = vmatpush2.msra.mxu1 %v1358_v43  ;;  %v1355_v16 = vld [vmem:[%s4352_s3 + $0x3b0] sm:$0xff]  ;;  %v3795_v43 = vld [vmem:[#allocation2 + $0x142] sm:$0xff] }
  0xd2   : > { %1566 = vmatmul.mubr.f32.gmra.mxu0 %v3702_v57  ;;  %1791 = vmatmul.mubr.f32.gmra.mxu1 %v3747_v1 }
  0xd3   : > { %1570 = vmatprep.mubr.f32.mxu0 %v3324_v20  ;;  %1795 = vmatprep.mubr.f32.mxu1 %v3750_v26  ;;  %v1322_v20 = vld [vmem:[%s4352_s3 + $0x2a8] sm:$0xff] }
  0xd4   : > { %1881 = vmatprep.subr.mxu0 %v4356_v3  ;;  %2102 = vmatprep.subr.mxu1 %v4356_v3 }
  0xd5   : > { %1882 = vmatpush2.msra.mxu0 %v1323_v19  ;;  %2103 = vmatpush2.msra.mxu1 %v1357_v5  ;;  %v3798_v19 = vld [vmem:[#allocation2 + $0x168] sm:$0xff] }
  0xd6   : > { %1571 = vmatmul.mubr.f32.gmra.mxu0 %v3718_v38  ;;  %1796 = vmatmul.mubr.f32.gmra.mxu1 %v3763_v56  ;;  %v1354_v5 = vld [vmem:[%s4352_s3 + $0x3a8] sm:$0xff] }
  0xd7   : > { %1575 = vmatprep.mubr.f32.mxu0 %v3336_v23  ;;  %1800 = vmatprep.mubr.f32.mxu1 %v3766_v10  ;;  %v1321_v23 = vld [vmem:[%s4352_s3 + $0x2a0] sm:$0xff] }
  0xd8   : > { %1883 = vmatprep.subr.mxu0 %v4356_v3  ;;  %2104 = vmatprep.subr.mxu1 %v4356_v3 }
  0xd9   : > { %1884 = vmatpush2.msra.mxu0 %v1322_v20  ;;  %2105 = vmatpush2.msra.mxu1 %v1356_v24  ;;  %v3811_v20 = vld [vmem:[#allocation2 + $0x152] sm:$0xff] }
  0xda   : > { %1576 = vmatmul.mubr.f32.gmra.mxu0 %v3734_v0  ;;  %1801 = vmatmul.mubr.f32.gmra.mxu1 %v3779_v13  ;;  %v3814_v24 = vld [vmem:[#allocation2 + $0x170] sm:$0xff] }
  0xdb   : > { %1580 = vmatprep.mubr.f32.mxu0 %v3348_v27  ;;  %1805 = vmatprep.mubr.f32.mxu1 %v3782_v61  ;;  %v1320_v27 = vld [vmem:[%s4352_s3 + $0x298] sm:$0xff] }
  0xdc   : > { %1885 = vmatprep.subr.mxu0 %v4356_v3  ;;  %2106 = vmatprep.subr.mxu1 %v4356_v3 }
  0xdd   : > { %1886 = vmatpush2.msra.mxu0 %v1321_v23  ;;  %2107 = vmatpush2.msra.mxu1 %v1355_v16  ;;  %v1353_v23 = vld [vmem:[%s4352_s3 + $0x3a0] sm:$0xff] }
  0xde   : > { %1581 = vmatmul.mubr.f32.gmra.mxu0 %v3750_v26  ;;  %1806 = vmatmul.mubr.f32.gmra.mxu1 %v3795_v43  ;;  %v3827_v16 = vld [vmem:[#allocation2 + $0x15a] sm:$0xff] }
  0xdf   : > { %1585 = vmatprep.mubr.f32.mxu0 %v3352_v28  ;;  %1810 = vmatprep.mubr.f32.mxu1 %v3798_v19  ;;  %v1319_v28 = vld [vmem:[%s4352_s3 + $0x290] sm:$0xff]  ;;  %4361 = vst [vmem:[#allocation4_spill] sm:$0xff] %v3827_v16 }
  0xe0   : > { %1887 = vmatprep.subr.mxu0 %v4356_v3  ;;  %2108 = vmatprep.subr.mxu1 %v4356_v3 }
  0xe1   : > { %1888 = vmatpush2.msra.mxu0 %v1320_v27  ;;  %2109 = vmatpush2.msra.mxu1 %v1354_v5  ;;  %v3831_v27 = vld [vmem:[#allocation2 + $0x180] sm:$0xff]  ;;  %v1352_v5 = vld [vmem:[%s4352_s3 + $0x398] sm:$0xff] }
  0xe2   : > { %1586 = vmatmul.mubr.f32.gmra.mxu0 %v3766_v10  ;;  %1811 = vmatmul.mubr.f32.gmra.mxu1 %v3811_v20  ;;  %4362 = vst [vmem:[#allocation5_spill] sm:$0xff] %v3831_v27 }
  0xe3   : > { %1590 = vmatprep.mubr.f32.mxu0 %v3366_v44  ;;  %1815 = vmatprep.mubr.f32.mxu1 %v3814_v24  ;;  %v1318_v44 = vld [vmem:[%s4352_s3 + $0x288] sm:$0xff] }
  0xe4   : > { %1889 = vmatprep.subr.mxu0 %v4356_v3  ;;  %2110 = vmatprep.subr.mxu1 %v4356_v3  ;;  %v3843_v3 = vld [vmem:[#allocation2 + $0x16a] sm:$0xff] }
  0xe5   : > { %1890 = vmatpush2.msra.mxu0 %v1319_v28  ;;  %2111 = vmatpush2.msra.mxu1 %v1353_v23  ;;  %v4363_v28 = vmov 0.0   ;;  %v3847_v23 = vld [vmem:[#allocation2 + $0x188] sm:$0xff] }
  0xe6   : > { %1591 = vmatmul.mubr.f32.gmra.mxu0 %v3782_v61  ;;  %1816 = vmatmul.mubr.f32.gmra.mxu1 %v3827_v16  ;;  %4364 = vst [vmem:[#allocation6_spill] sm:$0xff] %v3847_v23  ;;  %v1351_v16 = vld [vmem:[%s4352_s3 + $0x390] sm:$0xff] }
  0xe7   : > { %1595 = vmatprep.mubr.f32.mxu0 %v3373_v49  ;;  %1820 = vmatprep.mubr.f32.mxu1 %v3831_v27  ;;  %v3856_v49 = vld [vmem:[#allocation2 + $0x172] sm:$0xff] }
  0xe8   : > { %1891 = vmatprep.subr.mxu0 %v4363_v28  ;;  %2112 = vmatprep.subr.mxu1 %v4363_v28  ;;  %v2901_v27 = vld [vmem:[#allocation2 + $0x31] sm:$0xff] }
  0xe9   : > { %1892 = vmatpush2.msra.mxu0 %v1318_v44  ;;  %2113 = vmatpush2.msra.mxu1 %v1352_v5  ;;  %v1317_v44 = vld [vmem:[%s4352_s3 + $0x280] sm:$0xff]  ;;  %v1350_v5 = vld [vmem:[%s4352_s3 + $0x388] sm:$0xff] }
  0xea   : > { %1596 = vmatmul.mubr.f32.gmra.mxu0 %v3798_v19  ;;  %1821 = vmatmul.mubr.f32.gmra.mxu1 %v3843_v3 }
  0xeb   : > { %2114 = vmatprep.subr.mxu1 %v4363_v28  ;;  %1600 = vmatprep.mubr.f32.mxu0 %v3381_v54  ;;  %v1349_v54 = vld [vmem:[%s4352_s3 + $0x380] sm:$0xff] }
  0xec   : > { %1825 = vmatprep.mubr.f32.mxu1 %v3847_v23  ;;  %2115 = vmatpush2.msra.mxu1 %v1351_v16  ;;  %v628_v16 = vld [vmem:[#allocation2 + $0x19] sm:$0xff] }
  0xed   : > { %1893 = vmatprep.subr.mxu0 %v4363_v28  ;;  %2116 = vmatprep.subr.mxu1 %v4363_v28  ;;  %v1380_v23 = vld [vmem:[%s4352_s3 + $0x478] sm:$0xff] }
  0xee   : > { %1601 = vmatmul.mubr.f32.gmra.mxu0 %v3814_v24  ;;  %1826 = vmatmul.mubr.f32.gmra.mxu1 %v3856_v49 }
  0xef   : > { %1894 = vmatpush2.msra.mxu0 %v1317_v44  ;;  %2117 = vmatpush2.msra.mxu1 %v1350_v5  ;;  %v1379_v44 = vld [vmem:[%s4352_s3 + $0x470] sm:$0xff] }
  0xf0   : > { %2118 = vmatprep.subr.mxu1 %v4363_v28  ;;  %1895 = vmatprep.mubr.f32.mxu0 %v3396_v63  ;;  %v2902_v28 = vld [vmem:[#allocation2 + $0x39] sm:$0xff]  ;;  %v2903_v63 = vld [vmem:[#allocation2 + $0x21] sm:$0xff]  ;;  %v2904_v5 = vld [vmem:[#allocation2 + $0x49] sm:$0xff] }
  0xf1   : > { %2119 = vmatpush2.msra.mxu1 %v1349_v54  ;;  %2120 = vmatprep.mubr.f32.mxu1 %v2901_v27 }
  0xf2   : > { %1896 = vmatmul.mubr.f32.vlgmr.msra.gmra.mxu0 %v628_v16  ;;  %2121 = vmatmul.mubr.f32.vlgmr.msra.gmra.mxu1 %v3384_v55  ;;  %v1378_v55 = vld [vmem:[%s4352_s3 + $0x468] sm:$0xff] }
  0xf3   : > { %2779 = vmatprep.subr.mxu0 %v1380_v23  ;;  %1900 = vmatprep.mubr.f32.mxu0 %v3412_v7  ;;  %v1377_v7 = vld [vmem:[%s4352_s3 + $0x460] sm:$0xff] }
  0xf4   : > { %2780 = vmatpush3.msra.mxu0 %v1380_v23  ;;  %2125 = vmatprep.mubr.f32.mxu1 %v2902_v28 }
  0xf5   : > { %2781 = vmatprep.subr.mxu0 %v1379_v44  ;;  %2859 = vmatprep.subr.mxu1 %v1380_v23 }
  0xf6   : > { %1901 = vmatmul.mubr.f32.gmra.mxu0 %v2903_v63  ;;  %2126 = vmatmul.mubr.f32.gmra.mxu1 %v3400_v2  ;;  %v2905_v2 = vld [vmem:[#allocation2 + $0x51] sm:$0xff] }
  0xf7   : > { %1905 = vmatprep.mubr.f32.mxu0 %v3427_v11  ;;  %2130 = vmatprep.mubr.f32.mxu1 %v2904_v5  ;;  %v1376_v11 = vld [vmem:[%s4352_s3 + $0x458] sm:$0xff] }
  0xf8   : > { %2782 = vmatpush3.msra.mxu0 %v1379_v44  ;;  %2875 = vmatpush3.msra.mxu1 %v1380_v23  ;;  %v2919_v23 = vld [vmem:[#allocation2 + $0xf9] sm:$0xff] }
  0xf9   : > { %2783 = vmatprep.subr.mxu0 %v1378_v55  ;;  %2860 = vmatprep.subr.mxu1 %v1379_v44 }
  0xfa   : > { %1906 = vmatmul.mubr.f32.gmra.mxu0 %v2901_v27  ;;  %2131 = vmatmul.mubr.f32.gmra.mxu1 %v3415_v8  ;;  %v2906_v8 = vld [vmem:[#allocation2 + $0x61] sm:$0xff] }
  0xfb   : > { %1910 = vmatprep.mubr.f32.mxu0 %v3443_v15  ;;  %2135 = vmatprep.mubr.f32.mxu1 %v2905_v2  ;;  %v1375_v15 = vld [vmem:[%s4352_s3 + $0x450] sm:$0xff] }
  0xfc   : > { %2784 = vmatpush3.msra.mxu0 %v1378_v55  ;;  %2876 = vmatpush3.msra.mxu1 %v1379_v44 }
  0xfd   : > { %2785 = vmatprep.subr.mxu0 %v1377_v7  ;;  %2861 = vmatprep.subr.mxu1 %v1378_v55 }
  0xfe   : > { %1911 = vmatmul.mubr.f32.gmra.mxu0 %v2902_v28  ;;  %2136 = vmatmul.mubr.f32.gmra.mxu1 %v3430_v12  ;;  %v2907_v12 = vld [vmem:[#allocation2 + $0x69] sm:$0xff] }
  0xff   : > { %1915 = vmatprep.mubr.f32.mxu0 %v3459_v21  ;;  %2140 = vmatprep.mubr.f32.mxu1 %v2906_v8  ;;  %v1374_v21 = vld [vmem:[%s4352_s3 + $0x448] sm:$0xff] }
 0x100   : > { %2786 = vmatpush3.msra.mxu0 %v1377_v7  ;;  %2877 = vmatpush3.msra.mxu1 %v1378_v55  ;;  %v2920_v28 = vld [vmem:[#allocation2 + $0x109] sm:$0xff] }
 0x101   : > { %2787 = vmatprep.subr.mxu0 %v1376_v11  ;;  %2862 = vmatprep.subr.mxu1 %v1377_v7 }
 0x102   : > { %1916 = vmatmul.mubr.f32.gmra.mxu0 %v2904_v5  ;;  %2141 = vmatmul.mubr.f32.gmra.mxu1 %v3446_v17  ;;  %v2908_v17 = vld [vmem:[#allocation2 + $0x79] sm:$0xff] }
 0x103   : > { %1920 = vmatprep.mubr.f32.mxu0 %v3475_v25  ;;  %2145 = vmatprep.mubr.f32.mxu1 %v2907_v12  ;;  %v1373_v25 = vld [vmem:[%s4352_s3 + $0x440] sm:$0xff] }
 0x104   : > { %2788 = vmatpush3.msra.mxu0 %v1376_v11  ;;  %2878 = vmatpush3.msra.mxu1 %v1377_v7  ;;  %v2921_v7 = vld [vmem:[#allocation2 + $0x111] sm:$0xff] }
 0x105   : > { %2789 = vmatprep.subr.mxu0 %v1375_v15  ;;  %2863 = vmatprep.subr.mxu1 %v1376_v11 }
 0x106   : > { %1921 = vmatmul.mubr.f32.gmra.mxu0 %v2905_v2  ;;  %2146 = vmatmul.mubr.f32.gmra.mxu1 %v3462_v22  ;;  %v2909_v22 = vld [vmem:[#allocation2 + $0x81] sm:$0xff] }
 0x107   : > { %1925 = vmatprep.mubr.f32.mxu0 %v3491_v36  ;;  %2150 = vmatprep.mubr.f32.mxu1 %v2908_v17  ;;  %v1372_v36 = vld [vmem:[%s4352_s3 + $0x438] sm:$0xff] }
 0x108   : > { %2790 = vmatpush3.msra.mxu0 %v1375_v15  ;;  %2879 = vmatpush3.msra.mxu1 %v1376_v11 }
 0x109   : > { %2791 = vmatprep.subr.mxu0 %v1374_v21  ;;  %2864 = vmatprep.subr.mxu1 %v1375_v15 }
 0x10a   : > { %1926 = vmatmul.mubr.f32.gmra.mxu0 %v2906_v8  ;;  %2151 = vmatmul.mubr.f32.gmra.mxu1 %v3478_v31  ;;  %v2910_v31 = vld [vmem:[#allocation2 + $0x91] sm:$0xff] }
 0x10b   : > { %1930 = vmatprep.mubr.f32.mxu0 %v3507_v42  ;;  %2155 = vmatprep.mubr.f32.mxu1 %v2909_v22  ;;  %v1371_v42 = vld [vmem:[%s4352_s3 + $0x430] sm:$0xff] }
 0x10c   : > { %2792 = vmatpush3.msra.mxu0 %v1374_v21  ;;  %2880 = vmatpush3.msra.mxu1 %v1375_v15  ;;  %v2922_v15 = vld [vmem:[#allocation2 + $0x121] sm:$0xff] }
 0x10d   : > { %2793 = vmatprep.subr.mxu0 %v1373_v25  ;;  %2865 = vmatprep.subr.mxu1 %v1374_v21 }
 0x10e   : > { %1931 = vmatmul.mubr.f32.gmra.mxu0 %v2907_v12  ;;  %2156 = vmatmul.mubr.f32.gmra.mxu1 %v3494_v37  ;;  %v2911_v37 = vld [vmem:[#allocation2 + $0x99] sm:$0xff] }
 0x10f   : > { %1935 = vmatprep.mubr.f32.mxu0 %v3523_v48  ;;  %2160 = vmatprep.mubr.f32.mxu1 %v2910_v31  ;;  %v1370_v48 = vld [vmem:[%s4352_s3 + $0x428] sm:$0xff] }
 0x110   : > { %2794 = vmatpush3.msra.mxu0 %v1373_v25  ;;  %2881 = vmatpush3.msra.mxu1 %v1374_v21 }
 0x111   : > { %2795 = vmatprep.subr.mxu0 %v1372_v36  ;;  %2866 = vmatprep.subr.mxu1 %v1373_v25 }
 0x112   : > { %1936 = vmatmul.mubr.f32.gmra.mxu0 %v2908_v17  ;;  %2161 = vmatmul.mubr.f32.gmra.mxu1 %v3510_v45  ;;  %v2912_v45 = vld [vmem:[#allocation2 + $0xa9] sm:$0xff] }
 0x113   : > { %1940 = vmatprep.mubr.f32.mxu0 %v3539_v52  ;;  %2165 = vmatprep.mubr.f32.mxu1 %v2911_v37  ;;  %v1369_v52 = vld [vmem:[%s4352_s3 + $0x420] sm:$0xff] }
 0x114   : > { %2796 = vmatpush3.msra.mxu0 %v1372_v36  ;;  %2882 = vmatpush3.msra.mxu1 %v1373_v25  ;;  %v2923_v25 = vld [vmem:[#allocation2 + $0x129] sm:$0xff] }
 0x115   : > { %2797 = vmatprep.subr.mxu0 %v1371_v42  ;;  %2867 = vmatprep.subr.mxu1 %v1372_v36 }
 0x116   : > { %1941 = vmatmul.mubr.f32.gmra.mxu0 %v2909_v22  ;;  %2166 = vmatmul.mubr.f32.gmra.mxu1 %v3526_v50  ;;  %v2913_v50 = vld [vmem:[#allocation2 + $0xb1] sm:$0xff] }
 0x117   : > { %1945 = vmatprep.mubr.f32.mxu0 %v3555_v62  ;;  %2170 = vmatprep.mubr.f32.mxu1 %v2912_v45  ;;  %v1368_v62 = vld [vmem:[%s4352_s3 + $0x418] sm:$0xff] }
 0x118   : > { %2798 = vmatpush3.msra.mxu0 %v1371_v42  ;;  %2883 = vmatpush3.msra.mxu1 %v1372_v36 }
 0x119   : > { %2799 = vmatprep.subr.mxu0 %v1370_v48  ;;  %2868 = vmatprep.subr.mxu1 %v1371_v42 }
 0x11a   : > { %1946 = vmatmul.mubr.f32.gmra.mxu0 %v2910_v31  ;;  %2171 = vmatmul.mubr.f32.gmra.mxu1 %v3542_v58  ;;  %v2914_v58 = vld [vmem:[#allocation2 + $0xc1] sm:$0xff] }
 0x11b   : > { %1950 = vmatprep.mubr.f32.mxu0 %v3571_v6  ;;  %2175 = vmatprep.mubr.f32.mxu1 %v2913_v50  ;;  %v1367_v6 = vld [vmem:[%s4352_s3 + $0x410] sm:$0xff] }
 0x11c   : > { %2800 = vmatpush3.msra.mxu0 %v1370_v48  ;;  %2884 = vmatpush3.msra.mxu1 %v1371_v42  ;;  %v2924_v42 = vld [vmem:[#allocation2 + $0x139] sm:$0xff] }
 0x11d   : > { %2801 = vmatprep.subr.mxu0 %v1369_v52  ;;  %2869 = vmatprep.subr.mxu1 %v1370_v48 }
 0x11e   : > { %1951 = vmatmul.mubr.f32.gmra.mxu0 %v2911_v37  ;;  %2176 = vmatmul.mubr.f32.gmra.mxu1 %v3558_v4  ;;  %v2915_v4 = vld [vmem:[#allocation2 + $0xc9] sm:$0xff] }
 0x11f   : > { %1955 = vmatprep.mubr.f32.mxu0 %v3587_v30  ;;  %2180 = vmatprep.mubr.f32.mxu1 %v2914_v58  ;;  %v1366_v30 = vld [vmem:[%s4352_s3 + $0x408] sm:$0xff] }
 0x120   : > { %2802 = vmatpush3.msra.mxu0 %v1369_v52  ;;  %2885 = vmatpush3.msra.mxu1 %v1370_v48 }
 0x121   : > { %2803 = vmatprep.subr.mxu0 %v1368_v62  ;;  %2870 = vmatprep.subr.mxu1 %v1369_v52 }
 0x122   : > { %1956 = vmatmul.mubr.f32.gmra.mxu0 %v2912_v45  ;;  %2181 = vmatmul.mubr.f32.gmra.mxu1 %v3574_v9  ;;  %v2916_v9 = vld [vmem:[#allocation2 + $0xd9] sm:$0xff] }
 0x123   : > { %1960 = vmatprep.mubr.f32.mxu0 %v3603_v18  ;;  %2185 = vmatprep.mubr.f32.mxu1 %v2915_v4  ;;  %v1365_v18 = vld [vmem:[%s4352_s3 + $0x400] sm:$0xff] }
 0x124   : > { %2804 = vmatpush3.msra.mxu0 %v1368_v62  ;;  %2886 = vmatpush3.msra.mxu1 %v1369_v52  ;;  %v2925_v52 = vld [vmem:[#allocation2 + $0x141] sm:$0xff] }
 0x125   : > { %2805 = vmatprep.subr.mxu0 %v1367_v6  ;;  %2871 = vmatprep.subr.mxu1 %v1368_v62 }
 0x126   : > { %1961 = vmatmul.mubr.f32.gmra.mxu0 %v2913_v50  ;;  %2186 = vmatmul.mubr.f32.gmra.mxu1 %v3590_v14  ;;  %v2917_v14 = vld [vmem:[#allocation2 + $0xe1] sm:$0xff] }
 0x127   : > { %1965 = vmatprep.mubr.f32.mxu0 %v3619_v35  ;;  %2190 = vmatprep.mubr.f32.mxu1 %v2916_v9  ;;  %v2918_v35 = vld [vmem:[#allocation2 + $0xf1] sm:$0xff] }
 0x128   : > { %2806 = vmatpush3.msra.mxu0 %v1367_v6  ;;  %2887 = vmatpush3.msra.mxu1 %v1368_v62 }
 0x129   : > { %2807 = vmatprep.subr.mxu0 %v1366_v30  ;;  %2872 = vmatprep.subr.mxu1 %v1367_v6 }
 0x12a   : > { %1966 = vmatmul.mubr.f32.gmra.mxu0 %v2914_v58  ;;  %2191 = vmatmul.mubr.f32.gmra.mxu1 %v3606_v34 }
 0x12b   : > { %1970 = vmatprep.mubr.f32.mxu0 %v3635_v41  ;;  %2195 = vmatprep.mubr.f32.mxu1 %v2917_v14 }
 0x12c   : > { %2808 = vmatpush3.msra.mxu0 %v1366_v30  ;;  %2888 = vmatpush3.msra.mxu1 %v1367_v6  ;;  %v2926_v6 = vld [vmem:[#allocation2 + $0x151] sm:$0xff] }
 0x12d   : > { %2809 = vmatprep.subr.mxu0 %v1365_v18  ;;  %2873 = vmatprep.subr.mxu1 %v1366_v30 }
 0x12e   : > { %1971 = vmatmul.mubr.f32.gmra.mxu0 %v2915_v4  ;;  %2196 = vmatmul.mubr.f32.gmra.mxu1 %v3622_v32 }
 0x12f   : > { %1975 = vmatprep.mubr.f32.mxu0 %v3651_v40  ;;  %2200 = vmatprep.mubr.f32.mxu1 %v2918_v35 }
 0x130   : > { %2810 = vmatpush3.msra.mxu0 %v1365_v18  ;;  %2889 = vmatpush3.msra.mxu1 %v1366_v30 }
 0x131   : > { %2874 = vmatprep.subr.mxu1 %v1365_v18 }
 0x132   : > { %v1447_v34 = vpop.f32.mrf.mxu0  ;;  %v1672_v27 = vpop.f32.mrf.mxu1  ;;  %1976 = vmatmul.mubr.f32.gmra.mxu0 %v2916_v9  ;;  %2201 = vmatmul.mubr.f32.gmra.mxu1 %v3638_v39 }
 0x133   : > { %v3955_v41 = vadd.f32 %v1672_v27, %v1447_v34  ;;  %1980 = vmatprep.mubr.f32.mxu0 %v3667_v59  ;;  %2205 = vmatprep.mubr.f32.mxu1 %v2919_v23  ;;  %v2928_v27 = vld [vmem:[#allocation2 + $0x169] sm:$0xff] }
 0x134   : > { %v1449_v54 = vpop.f32.mrf.mxu0  ;;  %v1674_v32 = vpop.f32.mrf.mxu1  ;;  %2890 = vmatpush3.msra.mxu1 %v1365_v18  ;;  %v2927_v18 = vld [vmem:[#allocation2 + $0x159] sm:$0xff] }
 0x136   : > { %v1452_v40 = vpop.f32.mrf.mxu0  ;;  %v1677_v16 = vpop.f32.mrf.mxu1  ;;  %1981 = vmatmul.mubr.f32.gmra.mxu0 %v2917_v14  ;;  %2206 = vmatmul.mubr.f32.gmra.mxu1 %v3654_v51 }
 0x137   : > { %v3959_v44 = vadd.f32 %v1677_v16, %v1452_v40  ;;  %1985 = vmatprep.mubr.f32.mxu0 %v3683_v53  ;;  %2210 = vmatprep.mubr.f32.mxu1 %v2920_v28  ;;  %v4365_v40 = vld [vmem:[#allocation4_spill] sm:$0xff] }
 0x138   : > { %v1454_v39 = vpop.f32.mrf.mxu0  ;;  %v1679_v63 = vpop.f32.mrf.mxu1  ;;  %v2929_v16 = vld [vmem:[#allocation2 + $0x171] sm:$0xff] }
 0x13a   : > { %v1457_v55 = vpop.f32.mrf.mxu0  ;;  %v1682_v59 = vpop.f32.mrf.mxu1  ;;  %1986 = vmatmul.mubr.f32.gmra.mxu0 %v2918_v35  ;;  %2211 = vmatmul.mubr.f32.gmra.mxu1 %v3670_v46 }
 0x13b   : > { %v3963_v5 = vadd.f32 %v1682_v59, %v1457_v55  ;;  %1990 = vmatprep.mubr.f32.mxu0 %v3699_v33  ;;  %2215 = vmatprep.mubr.f32.mxu1 %v2921_v7  ;;  %v2930_v55 = vld [vmem:[#allocation2 + $0x181] sm:$0xff] }
 0x13c   : > { %v1459_v51 = vpop.f32.mrf.mxu0  ;;  %v1684_v2 = vpop.f32.mrf.mxu1 }
 0x13d   : > { %v4366_v2 = vld [vmem:[#allocation5_spill] sm:$0xff] }
 0x13e   : > { %v1462_v11 = vpop.f32.mrf.mxu0  ;;  %v1687_v8 = vpop.f32.mrf.mxu1  ;;  %1991 = vmatmul.mubr.f32.gmra.mxu0 %v2919_v23  ;;  %2216 = vmatmul.mubr.f32.gmra.mxu1 %v3686_v29 }
 0x13f   : > { %v3967_v53 = vadd.f32 %v1687_v8, %v1462_v11  ;;  %1995 = vmatprep.mubr.f32.mxu0 %v3715_v60  ;;  %2220 = vmatprep.mubr.f32.mxu1 %v2922_v15  ;;  %v2931_v8 = vld [vmem:[#allocation2 + $0x189] sm:$0xff] }
 0x140   : > { %v1464_v46 = vpop.f32.mrf.mxu0  ;;  %v1689_v12 = vpop.f32.mrf.mxu1 }
 0x141   : > { %v4006_v46 = vld [vmem:[#allocation2 + $0x182] sm:$0xff] }
 0x142   : > { %v1467_v21 = vpop.f32.mrf.mxu0  ;;  %v1692_v17 = vpop.f32.mrf.mxu1  ;;  %1996 = vmatmul.mubr.f32.gmra.mxu0 %v2920_v28  ;;  %2221 = vmatmul.mubr.f32.gmra.mxu1 %v3702_v57 }
 0x143   : > { %v3971_v33 = vadd.f32 %v1692_v17, %v1467_v21  ;;  %2000 = vmatprep.mubr.f32.mxu0 %v3731_v47  ;;  %2225 = vmatprep.mubr.f32.mxu1 %v2923_v25  ;;  %v4367_v17 = vld [vmem:[#allocation6_spill] sm:$0xff] }
 0x144   : > { %v1469_v29 = vpop.f32.mrf.mxu0  ;;  %v1694_v22 = vpop.f32.mrf.mxu1 }
 0x145   : > { %v787_v29 = vld [vmem:[#allocation2 + $0x198] sm:$0xff] }
 0x146   : > { %v1472_v36 = vpop.f32.mrf.mxu0  ;;  %v1697_v31 = vpop.f32.mrf.mxu1  ;;  %2001 = vmatmul.mubr.f32.gmra.mxu0 %v2921_v7  ;;  %2226 = vmatmul.mubr.f32.gmra.mxu1 %v3718_v38 }
 0x147   : > { %v3975_v60 = vadd.f32 %v1697_v31, %v1472_v36  ;;  %2005 = vmatprep.mubr.f32.mxu0 %v3747_v1  ;;  %2230 = vmatprep.mubr.f32.mxu1 %v2924_v42  ;;  %v4012_v31 = vld [vmem:[#allocation2 + $0x18a] sm:$0xff] }
 0x148   : > { %v1474_v57 = vpop.f32.mrf.mxu0  ;;  %v1699_v37 = vpop.f32.mrf.mxu1 }
 0x14a   : > { %v1477_v48 = vpop.f32.mrf.mxu0  ;;  %v1702_v45 = vpop.f32.mrf.mxu1  ;;  %2006 = vmatmul.mubr.f32.gmra.mxu0 %v2922_v15  ;;  %2231 = vmatmul.mubr.f32.gmra.mxu1 %v3734_v0 }
 0x14b   : > { %v3979_v47 = vadd.f32 %v1702_v45, %v1477_v48  ;;  %2010 = vmatprep.mubr.f32.mxu0 %v3763_v56  ;;  %2235 = vmatprep.mubr.f32.mxu1 %v2925_v52  ;;  %v788_v45 = vld [vmem:[#allocation2 + $0x1a0] sm:$0xff] }
 0x14c   : > { %v1479_v38 = vpop.f32.mrf.mxu0  ;;  %v1704_v50 = vpop.f32.mrf.mxu1 }
 0x14d   : > { %v885_v50 = vld [vmem:[#allocation2 + $0x32] sm:$0xff] }
 0x14e   : > { %v1482_v62 = vpop.f32.mrf.mxu0  ;;  %v1707_v58 = vpop.f32.mrf.mxu1  ;;  %2011 = vmatmul.mubr.f32.gmra.mxu0 %v2923_v25  ;;  %2236 = vmatmul.mubr.f32.gmra.mxu1 %v3750_v26 }
 0x14f   : > { %v3983_v1 = vadd.f32 %v1707_v58, %v1482_v62  ;;  %2015 = vmatprep.mubr.f32.mxu0 %v3779_v13  ;;  %2240 = vmatprep.mubr.f32.mxu1 %v2926_v6  ;;  %v901_v62 = vld [vmem:[#allocation2 + $0xf2] sm:$0xff] }
 0x150   : > { %v1484_v0 = vpop.f32.mrf.mxu0  ;;  %v1709_v4 = vpop.f32.mrf.mxu1 }
 0x151   : > { %v886_v4 = vld [vmem:[#allocation2 + $0x3a] sm:$0xff] }
 0x152   : > { %v1487_v30 = vpop.f32.mrf.mxu0  ;;  %v1712_v9 = vpop.f32.mrf.mxu1  ;;  %2016 = vmatmul.mubr.f32.gmra.mxu0 %v2924_v42  ;;  %2241 = vmatmul.mubr.f32.gmra.mxu1 %v3766_v10  ;;  %v852_v42 = vld [vmem:[#allocation2 + $0x1a1] sm:$0xff] }
 0x153   : > { %v3987_v56 = vadd.f32 %v1712_v9, %v1487_v30  ;;  %2020 = vmatprep.mubr.f32.mxu0 %v3795_v43  ;;  %2245 = vmatprep.mubr.f32.mxu1 %v2927_v18  ;;  %v902_v30 = vld [vmem:[#allocation2 + $0xfa] sm:$0xff] }
 0x154   : > { %v1489_v26 = vpop.f32.mrf.mxu0  ;;  %v1714_v14 = vpop.f32.mrf.mxu1 }
 0x155   : > { %v887_v26 = vld [vmem:[#allocation2 + $0x4a] sm:$0xff] }
 0x156   : > { %v1492_v35 = vpop.f32.mrf.mxu0  ;;  %v1717_v34 = vpop.f32.mrf.mxu1  ;;  %2021 = vmatmul.mubr.f32.gmra.mxu0 %v2925_v52  ;;  %2246 = vmatmul.mubr.f32.gmra.mxu1 %v3782_v61  ;;  %v903_v14 = vld [vmem:[#allocation2 + $0x10a] sm:$0xff] }
 0x157   : > { %v3991_v13 = vadd.f32 %v1717_v34, %v1492_v35  ;;  %2025 = vmatprep.mubr.f32.mxu0 %v3811_v20  ;;  %2250 = vmatprep.mubr.f32.mxu1 %v2928_v27 }
 0x158   : > { %v1494_v10 = vpop.f32.mrf.mxu0  ;;  %v1719_v23 = vpop.f32.mrf.mxu1 }
 0x159   : > { %v888_v10 = vld [vmem:[#allocation2 + $0x52] sm:$0xff] }
 0x15a   : > { %v1497_v54 = vpop.f32.mrf.mxu0  ;;  %v1722_v32 = vpop.f32.mrf.mxu1  ;;  %2026 = vmatmul.mubr.f32.gmra.mxu0 %v2926_v6  ;;  %2251 = vmatmul.mubr.f32.gmra.mxu1 %v3798_v19  ;;  %v904_v23 = vld [vmem:[#allocation2 + $0x112] sm:$0xff] }
 0x15b   : > { %v3995_v43 = vadd.f32 %v1722_v32, %v1497_v54  ;;  %2030 = vmatprep.mubr.f32.mxu0 %v4365_v40  ;;  %2255 = vmatprep.mubr.f32.mxu1 %v2929_v16  ;;  %v889_v40 = vld [vmem:[#allocation2 + $0x62] sm:$0xff] }
 0x15c   : > { %v1499_v61 = vpop.f32.mrf.mxu0  ;;  %v1724_v28 = vpop.f32.mrf.mxu1 }
 0x15e   : > { %v1502_v39 = vpop.f32.mrf.mxu0  ;;  %v1727_v63 = vpop.f32.mrf.mxu1  ;;  %2031 = vmatmul.mubr.f32.gmra.mxu0 %v2927_v18  ;;  %2256 = vmatmul.mubr.f32.gmra.mxu1 %v3814_v24 }
 0x15f   : > { %v3999_v20 = vadd.f32 %v1727_v63, %v1502_v39  ;;  %2035 = vmatprep.mubr.f32.mxu0 %v3843_v3  ;;  %2260 = vmatprep.mubr.f32.mxu1 %v2930_v55  ;;  %v851_v3 = vld [vmem:[#allocation2 + $0x199] sm:$0xff]  ;;  %v890_v63 = vld [vmem:[#allocation2 + $0x6a] sm:$0xff] }
 0x160   : > { %v1504_v19 = vpop.f32.mrf.mxu0  ;;  %v1729_v59 = vpop.f32.mrf.mxu1 }
 0x162   : > { %v1507_v7 = vpop.f32.mrf.mxu0  ;;  %v1732_v51 = vpop.f32.mrf.mxu1  ;;  %2036 = vmatmul.mubr.f32.gmra.mxu0 %v2928_v27  ;;  %2261 = vmatmul.mubr.f32.gmra.mxu1 %v4366_v2 }
 0x163   : > { %v4003_v11 = vadd.f32 %v1732_v51, %v1507_v7  ;;  %2040 = vmatprep.mubr.f32.mxu0 %v3856_v49  ;;  %2265 = vmatprep.mubr.f32.mxu1 %v2931_v8  ;;  %v891_v7 = vld [vmem:[#allocation2 + $0x7a] sm:$0xff] }
 0x164   : > { %v1509_v24 = vpop.f32.mrf.mxu0  ;;  %v1734_v15 = vpop.f32.mrf.mxu1  ;;  %v907_v51 = vld [vmem:[#allocation2 + $0x13a] sm:$0xff] }
 0x165   : > { %v892_v15 = vld [vmem:[#allocation2 + $0x82] sm:$0xff] }
 0x166   : > { %v1512_v12 = vpop.f32.mrf.mxu0  ;;  %v1737_v21 = vpop.f32.mrf.mxu1  ;;  %2041 = vmatmul.mubr.f32.gmra.mxu0 %v2929_v16  ;;  %2266 = vmatmul.mubr.f32.gmra.mxu1 %v4367_v17  ;;  %v905_v16 = vld [vmem:[#allocation2 + $0x122] sm:$0xff]  ;;  %v893_v17 = vld [vmem:[#allocation2 + $0x92] sm:$0xff] }
 0x167   : > { %v4009_v25 = vadd.f32 %v1737_v21, %v1512_v12  ;;  %2045 = vmatprep.mubr.f32.mxu0 %v4006_v46  ;;  %2270 = vmatprep.mubr.f32.mxu1 %v851_v3  ;;  %v908_v3 = vld [vmem:[#allocation2 + $0x142] sm:$0xff] }
 0x168   : > { %v1514_v22 = vpop.f32.mrf.mxu0  ;;  %v1739_v36 = vpop.f32.mrf.mxu1 }
 0x16a   : > { %v1517_v57 = vpop.f32.mrf.mxu0  ;;  %v1742_v37 = vpop.f32.mrf.mxu1  ;;  %2046 = vmatmul.mubr.f32.gmra.mxu0 %v2930_v55  ;;  %2271 = vmatmul.mubr.f32.gmra.mxu1 %v787_v29  ;;  %v906_v55 = vld [vmem:[#allocation2 + $0x12a] sm:$0xff]  ;;  %v909_v29 = vld [vmem:[#allocation2 + $0x152] sm:$0xff] }
 0x16b   : > { %v4014_v48 = vadd.f32 %v1742_v37, %v1517_v57  ;;  %2050 = vmatprep.mubr.f32.mxu0 %v4012_v31  ;;  %2275 = vmatprep.mubr.f32.mxu1 %v852_v42  ;;  %v894_v57 = vld [vmem:[#allocation2 + $0x9a] sm:$0xff] }
 0x16c   : > { %v1519_v52 = vpop.f32.mrf.mxu0  ;;  %v1744_v38 = vpop.f32.mrf.mxu1  ;;  %v910_v37 = vld [vmem:[#allocation2 + $0x15a] sm:$0xff] }
 0x16d   : > { %v895_v38 = vld [vmem:[#allocation2 + $0xaa] sm:$0xff] }
 0x16e   : > { %v1522_v58 = vpop.f32.mrf.mxu0  ;;  %v1747_v6 = vpop.f32.mrf.mxu1  ;;  %2051 = vmatmul.mubr.f32.gmra.mxu0 %v2931_v8  ;;  %2276 = vmatmul.mubr.f32.gmra.mxu1 %v788_v45 }
 0x16f   : > { %v4017_v0 = vadd.f32 %v1747_v6, %v1522_v58  ;;  %2811 = vmatprep.mubr.f32.mxu0 %v885_v50  ;;  %2835 = vmatprep.mubr.f32.mxu1 %v901_v62  ;;  %v911_v50 = vld [vmem:[#allocation2 + $0x16a] sm:$0xff] }
 0x170   : > { %v1524_v9 = vpop.f32.mrf.mxu0  ;;  %v1749_v18 = vpop.f32.mrf.mxu1 }
 0x171   : > { %v897_v18 = vld [vmem:[#allocation2 + $0xc2] sm:$0xff] }
 0x172   : > { %v1527_v35 = vpop.f32.mrf.mxu0  ;;  %v1752_v34 = vpop.f32.mrf.mxu1  ;;  %2812 = vmatmul.mubr.f32.vlgmr.msra.gmra.mxu0 %v886_v4  ;;  %2836 = vmatmul.mubr.f32.vlgmr.msra.gmra.mxu1 %v902_v30  ;;  %v896_v4 = vld [vmem:[#allocation2 + $0xb2] sm:$0xff] }
 0x173   : > { %v4019_v27 = vadd.f32 %v1752_v34, %v1527_v35  ;;  %2814 = vmatprep.mubr.f32.mxu0 %v887_v26  ;;  %2838 = vmatprep.mubr.f32.mxu1 %v903_v14  ;;  %v898_v34 = vld [vmem:[#allocation2 + $0xca] sm:$0xff] }
 0x174   : > { %v1529_v54 = vpop.f32.mrf.mxu0  ;;  %v1754_v32 = vpop.f32.mrf.mxu1 }
 0x175   : > { %v899_v54 = vld [vmem:[#allocation2 + $0xda] sm:$0xff] }
 0x176   : > { %v1532_v61 = vpop.f32.mrf.mxu0  ;;  %v1757_v28 = vpop.f32.mrf.mxu1  ;;  %2815 = vmatmul.mubr.f32.gmra.mxu0 %v888_v10  ;;  %2839 = vmatmul.mubr.f32.gmra.mxu1 %v904_v23  ;;  %v915_v32 = vld [vmem:[#allocation2 + $0x19a] sm:$0xff] }
 0x177   : > { %v4021_v39 = vadd.f32 %v1757_v28, %v1532_v61  ;;  %2817 = vmatprep.mubr.f32.mxu0 %v889_v40  ;;  %2841 = vmatprep.mubr.f32.mxu1 %v905_v16  ;;  %v916_v28 = vld [vmem:[#allocation2 + $0x1a2] sm:$0xff] }
 0x178   : > { %v1534_v19 = vpop.f32.mrf.mxu0  ;;  %v1759_v59 = vpop.f32.mrf.mxu1 }
 0x17a   : > { %v1537_v2 = vpop.f32.mrf.mxu0  ;;  %v1762_v8 = vpop.f32.mrf.mxu1  ;;  %2818 = vmatmul.mubr.f32.gmra.mxu0 %v890_v63  ;;  %2842 = vmatmul.mubr.f32.gmra.mxu1 %v906_v55 }
 0x17b   : > { %v4023_v24 = vadd.f32 %v1762_v8, %v1537_v2  ;;  %2820 = vmatprep.mubr.f32.mxu0 %v891_v7  ;;  %2844 = vmatprep.mubr.f32.mxu1 %v907_v51 }
 0x17c   : > { %v1539_v12 = vpop.f32.mrf.mxu0  ;;  %v1764_v21 = vpop.f32.mrf.mxu1 }
 0x17e   : > { %v1542_v22 = vpop.f32.mrf.mxu0  ;;  %v1767_v36 = vpop.f32.mrf.mxu1  ;;  %2821 = vmatmul.mubr.f32.gmra.mxu0 %v892_v15  ;;  %2845 = vmatmul.mubr.f32.gmra.mxu1 %v908_v3 }
 0x17f   : > { %v4025_v42 = vadd.f32 %v1767_v36, %v1542_v22  ;;  %2823 = vmatprep.mubr.f32.mxu0 %v893_v17  ;;  %2847 = vmatprep.mubr.f32.mxu1 %v909_v29 }
 0x180   : > { %v1544_v45 = vpop.f32.mrf.mxu0  ;;  %v1769_v52 = vpop.f32.mrf.mxu1 }
 0x182   : > { %v1547_v62 = vpop.f32.mrf.mxu0  ;;  %v1772_v58 = vpop.f32.mrf.mxu1  ;;  %2824 = vmatmul.mubr.f32.gmra.mxu0 %v894_v57  ;;  %2848 = vmatmul.mubr.f32.gmra.mxu1 %v910_v37 }
 0x183   : > { %v4027_v6 = vadd.f32 %v1772_v58, %v1547_v62  ;;  %2826 = vmatprep.mubr.f32.mxu0 %v895_v38  ;;  %2850 = vmatprep.mubr.f32.mxu1 %v911_v50 }
 0x184   : > { %v1549_v30 = vpop.f32.mrf.mxu0  ;;  %v1774_v9 = vpop.f32.mrf.mxu1 }
 0x186   : > { %v1552_v26 = vpop.f32.mrf.mxu0  ;;  %v1777_v14 = vpop.f32.mrf.mxu1  ;;  %2827 = vmatmul.mubr.f32.gmra.mxu0 %v896_v4  ;;  %2851 = vmatmul.mubr.f32.gmra.mxu1 %v3856_v49  ;;  %v900_v49 = vld [vmem:[#allocation2 + $0xe2] sm:$0xff] }
 0x187   : > { %v4030_v35 = vadd.f32 %v1777_v14, %v1552_v26  ;;  %2829 = vmatprep.mubr.f32.mxu0 %v897_v18  ;;  %2853 = vmatprep.mubr.f32.mxu1 %v4006_v46 }
 0x188   : > { %v1554_v10 = vpop.f32.mrf.mxu0  ;;  %v1779_v23 = vpop.f32.mrf.mxu1 }
 0x18a   : > { %v1557_v40 = vpop.f32.mrf.mxu0  ;;  %v1782_v16 = vpop.f32.mrf.mxu1  ;;  %2830 = vmatmul.mubr.f32.gmra.mxu0 %v898_v34  ;;  %2854 = vmatmul.mubr.f32.gmra.mxu1 %v4012_v31 }
 0x18b   : > { %v4034_v61 = vadd.f32 %v1782_v16, %v1557_v40  ;;  %2832 = vmatprep.mubr.f32.mxu0 %v899_v54  ;;  %2856 = vmatprep.mubr.f32.mxu1 %v915_v32 }
 0x18c   : > { %v1559_v63 = vpop.f32.mrf.mxu0  ;;  %v1784_v55 = vpop.f32.mrf.mxu1 }
 0x18e   : > { %v1562_v19 = vpop.f32.mrf.mxu0  ;;  %v1787_v46 = vpop.f32.mrf.mxu1  ;;  %2833 = vmatmul.mubr.f32.gmra.mxu0 %v900_v49  ;;  %2857 = vmatmul.mubr.f32.gmra.mxu1 %v916_v28 }
 0x18f   : > { %v4036_v59 = vadd.f32 %v1787_v46, %v1562_v19 }
 0x190   : > { %v1564_v7 = vpop.f32.mrf.mxu0  ;;  %v1789_v51 = vpop.f32.mrf.mxu1 }
 0x192   : > { %v1567_v2 = vpop.f32.mrf.mxu0  ;;  %v1792_v8 = vpop.f32.mrf.mxu1 }
 0x193   : > { %v4038_v15 = vadd.f32 %v1792_v8, %v1567_v2 }
 0x194   : > { %v1569_v31 = vpop.f32.mrf.mxu0  ;;  %v1794_v3 = vpop.f32.mrf.mxu1 }
 0x196   : > { %v1572_v12 = vpop.f32.mrf.mxu0  ;;  %v1797_v21 = vpop.f32.mrf.mxu1 }
 0x197   : > { %v4040_v17 = vadd.f32 %v1797_v21, %v1572_v12 }
 0x198   : > { %v1574_v29 = vpop.f32.mrf.mxu0  ;;  %v1799_v22 = vpop.f32.mrf.mxu1 }
 0x19a   : > { %v1577_v36 = vpop.f32.mrf.mxu0  ;;  %v1802_v57 = vpop.f32.mrf.mxu1 }
 0x19b   : > { %v4042_v37 = vadd.f32 %v1802_v57, %v1577_v36 }
 0x19c   : > { %v1579_v45 = vpop.f32.mrf.mxu0  ;;  %v1804_v52 = vpop.f32.mrf.mxu1 }
 0x19e   : > { %v1582_v38 = vpop.f32.mrf.mxu0  ;;  %v1807_v50 = vpop.f32.mrf.mxu1 }
 0x19f   : > { %v4044_v62 = vadd.f32 %v1807_v50, %v1582_v38 }
 0x1a0   : > { %v1584_v58 = vpop.f32.mrf.mxu0  ;;  %v1809_v4 = vpop.f32.mrf.mxu1 }
 0x1a2   : > { %v1587_v30 = vpop.f32.mrf.mxu0  ;;  %v1812_v9 = vpop.f32.mrf.mxu1 }
 0x1a3   : > { %v4046_v18 = vadd.f32 %v1812_v9, %v1587_v30 }
 0x1a4   : > { %v1589_v26 = vpop.f32.mrf.mxu0  ;;  %v1814_v14 = vpop.f32.mrf.mxu1 }
 0x1a6   : > { %v1592_v34 = vpop.f32.mrf.mxu0  ;;  %v1817_v10 = vpop.f32.mrf.mxu1 }
 0x1a7   : > { %v4048_v23 = vadd.f32 %v1817_v10, %v1592_v34 }
 0x1a8   : > { %v1594_v54 = vpop.f32.mrf.mxu0  ;;  %v1819_v32 = vpop.f32.mrf.mxu1 }
 0x1aa   : > { %v1597_v40 = vpop.f32.mrf.mxu0  ;;  %v1822_v16 = vpop.f32.mrf.mxu1 }
 0x1ab   : > { %v4050_v49 = vadd.f32 %v1822_v16, %v1597_v40 }
 0x1ac   : > { %v1599_v28 = vpop.f32.mrf.mxu0  ;;  %v1824_v63 = vpop.f32.mrf.mxu1 }
 0x1ad   : > { %4368 = vst [vmem:[#allocation4_spill] sm:$0xff] %v4050_v49 }
 0x1ae   : > { %v1602_v55 = vpop.f32.mrf.mxu0  ;;  %v1827_v19 = vpop.f32.mrf.mxu1 }
 0x1af   : > { %v4052_v46 = vadd.f32 %v1827_v19, %v1602_v55 }
 0x1b0   : > { %v1604_v7 = vpop.f32.mrf.mxu0  ;;  %v1829_v51 = vpop.f32.mrf.mxu1 }
 0x1b2   : > { %v1897_v2 = vpop.f32.mrf.mxu0  ;;  %v2122_v8 = vpop.f32.mrf.mxu1 }
 0x1b3   : > { %v1898_v31 = vadd.f32 %v1897_v2, %v3955_v41 }
 0x1b4   : > { %v1899_v3 = vpop.f32.mrf.mxu0  ;;  %v2124_v12 = vpop.f32.mrf.mxu1 }
 0x1b5   : > { %v4055_v21 = vadd.f32 %v2122_v8, %v1898_v31 }
 0x1b6   : > { %v1902_v29 = vpop.f32.mrf.mxu0  ;;  %v2127_v22 = vpop.f32.mrf.mxu1 }
 0x1b7   : > { %v1903_v36 = vadd.f32 %v1902_v29, %v3959_v44 }
 0x1b8   : > { %v1904_v57 = vpop.f32.mrf.mxu0  ;;  %v2129_v45 = vpop.f32.mrf.mxu1 }
 0x1b9   : > { %v4058_v52 = vadd.f32 %v2127_v22, %v1903_v36 }
 0x1ba   : > { %v1907_v38 = vpop.f32.mrf.mxu0  ;;  %v2132_v50 = vpop.f32.mrf.mxu1 }
 0x1bb   : > { %v1908_v58 = vadd.f32 %v1907_v38, %v3963_v5 }
 0x1bc   : > { %v1909_v4 = vpop.f32.mrf.mxu0  ;;  %v2134_v30 = vpop.f32.mrf.mxu1 }
 0x1bd   : > { %v4061_v9 = vadd.f32 %v2132_v50, %v1908_v58 }
 0x1be   : > { %v1912_v41 = vpop.f32.mrf.mxu0  ;;  %v2137_v26 = vpop.f32.mrf.mxu1 }
 0x1bf   : > { %v1913_v14 = vadd.f32 %v1912_v41, %v3967_v53 }
 0x1c0   : > { %v1914_v34 = vpop.f32.mrf.mxu0  ;;  %v2139_v10 = vpop.f32.mrf.mxu1 }
 0x1c1   : > { %v4064_v54 = vadd.f32 %v2137_v26, %v1913_v14 }
 0x1c2   : > { %v1917_v44 = vpop.f32.mrf.mxu0  ;;  %v2142_v32 = vpop.f32.mrf.mxu1 }
 0x1c3   : > { %v1918_v40 = vadd.f32 %v1917_v44, %v3971_v33 }
 0x1c4   : > { %v1919_v16 = vpop.f32.mrf.mxu0  ;;  %v2144_v28 = vpop.f32.mrf.mxu1 }
 0x1c5   : > { %v4067_v63 = vadd.f32 %v2142_v32, %v1918_v40 }
 0x1c6   : > { %v1922_v5 = vpop.f32.mrf.mxu0  ;;  %v2147_v55 = vpop.f32.mrf.mxu1 }
 0x1c7   : > { %v1923_v19 = vadd.f32 %v1922_v5, %v3975_v60 }
 0x1c8   : > { %v1924_v7 = vpop.f32.mrf.mxu0  ;;  %v2149_v51 = vpop.f32.mrf.mxu1 }
 0x1c9   : > { %v4070_v2 = vadd.f32 %v2147_v55, %v1923_v19 }
 0x1ca   : > { %v1927_v53 = vpop.f32.mrf.mxu0  ;;  %v2152_v8 = vpop.f32.mrf.mxu1 }
 0x1cb   : > { %v1928_v31 = vadd.f32 %v1927_v53, %v3979_v47 }
 0x1cc   : > { %v1929_v3 = vpop.f32.mrf.mxu0  ;;  %v2154_v12 = vpop.f32.mrf.mxu1 }
 0x1cd   : > { %v4073_v29 = vadd.f32 %v2152_v8, %v1928_v31 }
 0x1ce   : > { %v1932_v33 = vpop.f32.mrf.mxu0  ;;  %v2157_v22 = vpop.f32.mrf.mxu1 }
 0x1cf   : > { %v1933_v36 = vadd.f32 %v1932_v33, %v3983_v1 }
 0x1d0   : > { %v1934_v57 = vpop.f32.mrf.mxu0  ;;  %v2159_v45 = vpop.f32.mrf.mxu1 }
 0x1d1   : > { %v4076_v38 = vadd.f32 %v2157_v22, %v1933_v36 }
 0x1d2   : > { %v1937_v60 = vpop.f32.mrf.mxu0  ;;  %v2162_v50 = vpop.f32.mrf.mxu1 }
 0x1d3   : > { %v1938_v58 = vadd.f32 %v1937_v60, %v3987_v56 }
 0x1d4   : > { %v1939_v4 = vpop.f32.mrf.mxu0  ;;  %v2164_v30 = vpop.f32.mrf.mxu1 }
 0x1d5   : > { %v4079_v41 = vadd.f32 %v2162_v50, %v1938_v58 }
 0x1d6   : > { %v1942_v47 = vpop.f32.mrf.mxu0  ;;  %v2167_v26 = vpop.f32.mrf.mxu1 }
 0x1d7   : > { %v1943_v14 = vadd.f32 %v1942_v47, %v3991_v13 }
 0x1d8   : > { %v1944_v34 = vpop.f32.mrf.mxu0  ;;  %v2169_v10 = vpop.f32.mrf.mxu1 }
 0x1d9   : > { %v4082_v44 = vadd.f32 %v2167_v26, %v1943_v14 }
 0x1da   : > { %v1947_v1 = vpop.f32.mrf.mxu0  ;;  %v2172_v32 = vpop.f32.mrf.mxu1 }
 0x1db   : > { %v1948_v40 = vadd.f32 %v1947_v1, %v3995_v43 }
 0x1dc   : > { %v1949_v16 = vpop.f32.mrf.mxu0  ;;  %v2174_v28 = vpop.f32.mrf.mxu1 }
 0x1dd   : > { %v4085_v5 = vadd.f32 %v2172_v32, %v1948_v40 }
 0x1de   : > { %v1952_v56 = vpop.f32.mrf.mxu0  ;;  %v2177_v55 = vpop.f32.mrf.mxu1 }
 0x1df   : > { %v1953_v19 = vadd.f32 %v1952_v56, %v3999_v20 }
 0x1e0   : > { %v1954_v7 = vpop.f32.mrf.mxu0  ;;  %v2179_v51 = vpop.f32.mrf.mxu1 }
 0x1e1   : > { %v4088_v53 = vadd.f32 %v2177_v55, %v1953_v19 }
 0x1e2   : > { %v1957_v13 = vpop.f32.mrf.mxu0  ;;  %v2182_v8 = vpop.f32.mrf.mxu1 }
 0x1e3   : > { %v1958_v31 = vadd.f32 %v1957_v13, %v4003_v11 }
 0x1e4   : > { %v1959_v3 = vpop.f32.mrf.mxu0  ;;  %v2184_v12 = vpop.f32.mrf.mxu1 }
 0x1e5   : > { %v4091_v33 = vadd.f32 %v2182_v8, %v1958_v31 }
 0x1e6   : > { %v1962_v43 = vpop.f32.mrf.mxu0  ;;  %v2187_v22 = vpop.f32.mrf.mxu1 }
 0x1e7   : > { %4369 = vst [vmem:[#allocation5_spill] sm:$0xff] %v4091_v33  ;;  %v1963_v36 = vadd.f32 %v1962_v43, %v4009_v25 }
 0x1e8   : > { %v1964_v57 = vpop.f32.mrf.mxu0  ;;  %v2189_v45 = vpop.f32.mrf.mxu1 }
 0x1e9   : > { %v4094_v60 = vadd.f32 %v2187_v22, %v1963_v36 }
 0x1ea   : > { %v1967_v20 = vpop.f32.mrf.mxu0  ;;  %v2192_v50 = vpop.f32.mrf.mxu1 }
 0x1eb   : > { %4370 = vst [vmem:[#allocation6_spill] sm:$0xff] %v4094_v60  ;;  %v1968_v58 = vadd.f32 %v1967_v20, %v4014_v48 }
 0x1ec   : > { %v1969_v4 = vpop.f32.mrf.mxu0  ;;  %v2194_v30 = vpop.f32.mrf.mxu1 }
 0x1ed   : > { %v4097_v47 = vadd.f32 %v2192_v50, %v1968_v58 }
 0x1ee   : > { %v1972_v11 = vpop.f32.mrf.mxu0  ;;  %v2197_v26 = vpop.f32.mrf.mxu1 }
 0x1ef   : > { %4371 = vst [vmem:[#allocation7_spill] sm:$0xff] %v4097_v47  ;;  %v1973_v14 = vadd.f32 %v1972_v11, %v4017_v0 }
 0x1f0   : > { %v1974_v34 = vpop.f32.mrf.mxu0  ;;  %v2199_v10 = vpop.f32.mrf.mxu1 }
 0x1f1   : > { %v4100_v1 = vadd.f32 %v2197_v26, %v1973_v14 }
 0x1f2   : > { %v1977_v25 = vpop.f32.mrf.mxu0  ;;  %v2202_v32 = vpop.f32.mrf.mxu1 }
 0x1f3   : > { %4372 = vst [vmem:[#allocation8_spill] sm:$0xff] %v4100_v1  ;;  %v1978_v40 = vadd.f32 %v1977_v25, %v4019_v27 }
 0x1f4   : > { %v1979_v16 = vpop.f32.mrf.mxu0  ;;  %v2204_v28 = vpop.f32.mrf.mxu1 }
 0x1f5   : > { %v4103_v56 = vadd.f32 %v2202_v32, %v1978_v40 }
 0x1f6   : > { %v1982_v48 = vpop.f32.mrf.mxu0  ;;  %v2207_v55 = vpop.f32.mrf.mxu1 }
 0x1f8   : > { %v1984_v19 = vpop.f32.mrf.mxu0  ;;  %v2209_v7 = vpop.f32.mrf.mxu1 }
 0x1fa   : > { %v1987_v51 = vpop.f32.mrf.mxu0  ;;  %v4105_v13 = vpop.f32.mrf.mxu1 }
 0x1fc   : > { %v1989_v0 = vpop.f32.mrf.mxu0  ;;  %v2214_v8 = vpop.f32.mrf.mxu1 }
 0x1fe   : > { %v1992_v31 = vpop.f32.mrf.mxu0  ;;  %v4107_v3 = vpop.f32.mrf.mxu1 }
 0x200   : > { %v1994_v12 = vpop.f32.mrf.mxu0  ;;  %v2219_v43 = vpop.f32.mrf.mxu1 }
 0x202   : > { %v4109_v22 = vpop.f32.mrf.mxu0  ;;  %v4111_v27 = vpop.f32.mrf.mxu1 }
 0x204   : > { %v1999_v36 = vpop.f32.mrf.mxu0  ;;  %v2224_v57 = vpop.f32.mrf.mxu1 }
 0x206   : > { %v2002_v45 = vpop.f32.mrf.mxu0  ;;  %v4113_v20 = vpop.f32.mrf.mxu1 }
 0x208   : > { %v2004_v50 = vpop.f32.mrf.mxu0  ;;  %v2229_v58 = vpop.f32.mrf.mxu1 }
 0x20a   : > { %v4115_v4 = vpop.f32.mrf.mxu0  ;;  %v4117_v30 = vpop.f32.mrf.mxu1 }
 0x20c   : > { %v2009_v11 = vpop.f32.mrf.mxu0  ;;  %v2234_v26 = vpop.f32.mrf.mxu1 }
 0x20e   : > { %v4119_v14 = vpop.f32.mrf.mxu0  ;;  %v4121_v34 = vpop.f32.mrf.mxu1 }
 0x210   : > { %v2014_v10 = vpop.f32.mrf.mxu0  ;;  %v2239_v25 = vpop.f32.mrf.mxu1 }
 0x212   : > { %v4123_v32 = vpop.f32.mrf.mxu0  ;;  %v4125_v40 = vpop.f32.mrf.mxu1 }
 0x214   : > { %v2019_v16 = vpop.f32.mrf.mxu0  ;;  %v2244_v28 = vpop.f32.mrf.mxu1 }
 0x216   : > { %v4127_v19 = vpop.f32.mrf.mxu0  ;;  %v4129_v7 = vpop.f32.mrf.mxu1 }
 0x218   : > { %v2024_v0 = vpop.f32.mrf.mxu0  ;;  %v2249_v8 = vpop.f32.mrf.mxu1 }
 0x21a   : > { %v4131_v12 = vpop.f32.mrf.mxu0  ;;  %v4133_v43 = vpop.f32.mrf.mxu1 }
 0x21c   : > { %v2029_v36 = vpop.f32.mrf.mxu0  ;;  %v2254_v57 = vpop.f32.mrf.mxu1 }
 0x21e   : > { %v4135_v50 = vpop.f32.mrf.mxu0  ;;  %v4137_v58 = vpop.f32.mrf.mxu1 }
 0x220   : > { %v2034_v11 = vpop.f32.mrf.mxu0  ;;  %v2259_v26 = vpop.f32.mrf.mxu1 }
 0x221   : > { %v1983_v26 = vadd.f32 %v1982_v48, %v4021_v39 }
 0x222   : > { %v4139_v10 = vpop.f32.mrf.mxu0  ;;  %v4141_v25 = vpop.f32.mrf.mxu1 }
 0x223   : > { %4373 = vst [vmem:[#allocation9_spill] sm:$0xff] %v4141_v25  ;;  %v2208_v60 = vadd.f32 %v2207_v55, %v1983_v26 }
 0x224   : > { %v2039_v16 = vpop.f32.mrf.mxu0  ;;  %v2264_v28 = vpop.f32.mrf.mxu1 }
 0x226   : > { %v4143_v0 = vpop.f32.mrf.mxu0  ;;  %v4145_v8 = vpop.f32.mrf.mxu1 }
 0x228   : > { %v2044_v47 = vpop.f32.mrf.mxu0  ;;  %v2269_v1 = vpop.f32.mrf.mxu1 }
 0x229   : > { %v1988_v47 = vadd.f32 %v1987_v51, %v4023_v24  ;;  %v1993_v1 = vadd.f32 %v1992_v31, %v4025_v42 }
 0x22a   : > { %v4147_v36 = vpop.f32.mrf.mxu0  ;;  %v4149_v57 = vpop.f32.mrf.mxu1 }
 0x22b   : > { %4374 = vst [vmem:[#allocation10_spill] sm:$0xff] %v4147_v36  ;;  %4375 = vst [vmem:[#allocation11_spill] sm:$0xff] %v4149_v57  ;;  %v2213_v24 = vadd.f32 %v4105_v13, %v1988_v47  ;;  %v2218_v42 = vadd.f32 %v4107_v3, %v1993_v1  ;;  %v2013_v1 = vadd.f32 %v4119_v14, %v4036_v59 }
 0x22c   : > { %v2049_v33 = vpop.f32.mrf.mxu0  ;;  %v2274_v11 = vpop.f32.mrf.mxu1 }
 0x22e   : > { %v4152_v49 = vpop.f32.mrf.mxu0  ;;  %v4154_v16 = vpop.f32.mrf.mxu1 }
 0x230   : > { %v2054_v28 = vpop.f32.mrf.mxu0  ;;  %v2279_v25 = vpop.f32.mrf.mxu1 }
 0x232   : > { %v2813_v36 = vpop.f32.mrf.mxu0  ;;  %v2837_v57 = vpop.f32.mrf.mxu1 }
 0x233   : > { %v2353_v33 = vadd.f32 %v2813_v36, %v4058_v52  ;;  %v4159_v11 = vadd.f32 %v2837_v57, %v2208_v60  ;;  %v2003_v52 = vadd.f32 %v2002_v45, %v4030_v35 }
 0x234   : > { %v2347_v39 = vpop.f32.mrf.mxu0  ;;  %v2427_v48 = vpop.f32.mrf.mxu1 }
 0x235   : > { %2507 = vst [vmem:[%s2993_s28 + $0x8] sm:$0xff] %v2353_v33  ;;  %2523 = vst [vmem:[%s2993_s28 + $0x88] sm:$0xff] %v4159_v11  ;;  %v2348_v25 = vadd.f32 %v2347_v39, %v4055_v21  ;;  %v4166_v55 = vadd.f32 %v2427_v48, %v4103_v56  ;;  %v2580_v31 = vmul.f32 %v2353_v33, %v2353_v33 }
 0x236   : > { %v2816_v60 = vpop.f32.mrf.mxu0  ;;  %v2840_v51 = vpop.f32.mrf.mxu1  ;;  %v1998_v56 = vadd.f32 %v4109_v22, %v4027_v6  ;;  %v2228_v47 = vadd.f32 %v4113_v20, %v2003_v52  ;;  %v2008_v20 = vadd.f32 %v4115_v4, %v4034_v61 }
 0x237   : > { %2506 = vst [vmem:[%s2993_s28] sm:$0xff] %v2348_v25  ;;  %v2539_v36 = vadd.f32 %v2353_v33, %v2348_v25  ;;  %v2579_v57 = vmul.f32 %v2348_v25, %v2348_v25  ;;  %2522 = vst [vmem:[%s2993_s28 + $0x80] sm:$0xff] %v4166_v55  ;;  %v2363_v21 = vadd.f32 %v2816_v60, %v4064_v54 }
 0x238   : > { %v4177_v13 = vadd.f32 %v2840_v51, %v2218_v42  ;;  %v2357_v3 = vpop.f32.mrf.mxu0  ;;  %v2437_v35 = vpop.f32.mrf.mxu1  ;;  %v2223_v39 = vadd.f32 %v4111_v27, %v1998_v56  ;;  %v2238_v60 = vadd.f32 %v4121_v34, %v2013_v1  ;;  %v2018_v34 = vadd.f32 %v4123_v32, %v4038_v15 }
 0x239   : > { %v2611_v45 = vadd.f32 %v2580_v31, %v2579_v57  ;;  %2509 = vst [vmem:[%s2993_s28 + $0x18] sm:$0xff] %v2363_v21  ;;  %v2358_v26 = vadd.f32 %v2357_v3, %v4061_v9  ;;  %v4181_v28 = vadd.f32 %v2437_v35, %v2213_v24  ;;  %v2582_v25 = vmul.f32 %v2363_v21, %v2363_v21 }
 0x23a   : > { %2525 = vst [vmem:[%s2993_s28 + $0x98] sm:$0xff] %v4177_v13  ;;  %v2819_v6 = vpop.f32.mrf.mxu0  ;;  %v2843_v54 = vpop.f32.mrf.mxu1  ;;  %v2233_v57 = vadd.f32 %v4117_v30, %v2008_v20  ;;  %v2033_v30 = vadd.f32 %v4135_v50, %v4044_v62 }
 0x23b   : > { %2508 = vst [vmem:[%s2993_s28 + $0x10] sm:$0xff] %v2358_v26  ;;  %v2540_v22 = vadd.f32 %v2539_v36, %v2358_v26  ;;  %v2581_v33 = vmul.f32 %v2358_v26, %v2358_v26  ;;  %2524 = vst [vmem:[%s2993_s28 + $0x90] sm:$0xff] %v4181_v28  ;;  %v2373_v9 = vadd.f32 %v2819_v6, %v4070_v2 }
 0x23c   : > { %v4195_v59 = vadd.f32 %v2843_v54, %v2228_v47  ;;  %v2367_v14 = vpop.f32.mrf.mxu0  ;;  %v2447_v48 = vpop.f32.mrf.mxu1  ;;  %v2023_v2 = vadd.f32 %v4127_v19, %v4040_v17  ;;  %v2243_v54 = vadd.f32 %v4125_v40, %v2018_v34  ;;  %v2043_v40 = vadd.f32 %v4143_v0, %v4048_v23  ;;  %v4377_v34 = vld [vmem:[#allocation9_spill] sm:$0xff] }
 0x23d   : > { %v2612_v24 = vadd.f32 %v2611_v45, %v2581_v33  ;;  %2511 = vst [vmem:[%s2993_s28 + $0x28] sm:$0xff] %v2373_v9  ;;  %v2368_v42 = vadd.f32 %v2367_v14, %v4067_v63  ;;  %v2541_v52 = vadd.f32 %v2540_v22, %v2363_v21  ;;  %v4204_v27 = vadd.f32 %v2447_v48, %v2223_v39 }
 0x23e   : > { %2527 = vst [vmem:[%s2993_s28 + $0xa8] sm:$0xff] %v4195_v59  ;;  %v2822_v61 = vpop.f32.mrf.mxu0  ;;  %v2846_v4 = vpop.f32.mrf.mxu1  ;;  %v2584_v56 = vmul.f32 %v2373_v9, %v2373_v9 }
 0x23f   : > { %2510 = vst [vmem:[%s2993_s28 + $0x20] sm:$0xff] %v2368_v42  ;;  %v2542_v51 = vadd.f32 %v2541_v52, %v2368_v42  ;;  %v2583_v31 = vmul.f32 %v2368_v42, %v2368_v42  ;;  %v2613_v36 = vadd.f32 %v2612_v24, %v2582_v25  ;;  %v2383_v63 = vadd.f32 %v2822_v61, %v4076_v38 }
 0x240   : > { %2526 = vst [vmem:[%s2993_s28 + $0xa0] sm:$0xff] %v4204_v27  ;;  %v4213_v17 = vadd.f32 %v2846_v4, %v2238_v60  ;;  %v2377_v19 = vpop.f32.mrf.mxu0  ;;  %v2457_v21 = vpop.f32.mrf.mxu1  ;;  %v2248_v38 = vadd.f32 %v4129_v7, %v2023_v2  ;;  %v2028_v7 = vadd.f32 %v4131_v12, %v4042_v37 }
 0x241   : > { %v2614_v3 = vadd.f32 %v2613_v36, %v2583_v31  ;;  %2513 = vst [vmem:[%s2993_s28 + $0x38] sm:$0xff] %v2383_v63  ;;  %v2378_v35 = vadd.f32 %v2377_v19, %v4073_v29  ;;  %v2543_v45 = vadd.f32 %v2542_v51, %v2373_v9  ;;  %v4222_v15 = vadd.f32 %v2457_v21, %v2233_v57  ;;  %v4376_v57 = vld [vmem:[#allocation6_spill] sm:$0xff] }
 0x242   : > { %2529 = vst [vmem:[%s2993_s28 + $0xb8] sm:$0xff] %v4213_v17  ;;  %v2825_v32 = vpop.f32.mrf.mxu0  ;;  %v2849_v26 = vpop.f32.mrf.mxu1  ;;  %v2586_v33 = vmul.f32 %v2383_v63, %v2383_v63  ;;  %v2253_v42 = vadd.f32 %v4133_v43, %v2028_v7  ;;  %v2053_v43 = vadd.f32 %v4152_v49, %v4052_v46  ;;  %v4379_v21 = vld [vmem:[#allocation10_spill] sm:$0xff] }
 0x243   : > { %2512 = vst [vmem:[%s2993_s28 + $0x30] sm:$0xff] %v2378_v35  ;;  %v2544_v47 = vadd.f32 %v2543_v45, %v2378_v35  ;;  %v2585_v1 = vmul.f32 %v2378_v35, %v2378_v35  ;;  %v2615_v6 = vadd.f32 %v2614_v3, %v2584_v56  ;;  %v2393_v29 = vadd.f32 %v2825_v32, %v4082_v44 }
 0x244   : > { %2528 = vst [vmem:[%s2993_s28 + $0xb0] sm:$0xff] %v4222_v15  ;;  %v4231_v62 = vadd.f32 %v2849_v26, %v2248_v38  ;;  %v2387_v50 = vpop.f32.mrf.mxu0  ;;  %v2467_v22 = vpop.f32.mrf.mxu1  ;;  %v2258_v44 = vadd.f32 %v4137_v58, %v2033_v30  ;;  %v2038_v58 = vadd.f32 %v4139_v10, %v4046_v18  ;;  %v4380_v38 = vld [vmem:[#allocation5_spill] sm:$0xff]  ;;  %v2278_v26 = vadd.f32 %v4154_v16, %v2053_v43 }
 0x245   : > { %v2616_v9 = vadd.f32 %v2615_v6, %v2585_v1  ;;  %2515 = vst [vmem:[%s2993_s28 + $0x48] sm:$0xff] %v2393_v29  ;;  %v2388_v39 = vadd.f32 %v2387_v50, %v4079_v41  ;;  %v2545_v20 = vadd.f32 %v2544_v47, %v2383_v63  ;;  %v4240_v37 = vadd.f32 %v2467_v22, %v2243_v54  ;;  %v4381_v50 = vld [vmem:[#allocation8_spill] sm:$0xff] }
 0x246   : > { %2531 = vst [vmem:[%s2993_s28 + $0xc8] sm:$0xff] %v4231_v62  ;;  %v2828_v12 = vpop.f32.mrf.mxu0  ;;  %v2852_v14 = vpop.f32.mrf.mxu1  ;;  %v2588_v60 = vmul.f32 %v2393_v29, %v2393_v29  ;;  %v2263_v19 = vadd.f32 %v4377_v34, %v2038_v58 }
 0x247   : > { %2514 = vst [vmem:[%s2993_s28 + $0x40] sm:$0xff] %v2388_v39  ;;  %v2546_v48 = vadd.f32 %v2545_v20, %v2388_v39  ;;  %v2587_v25 = vmul.f32 %v2388_v39, %v2388_v39  ;;  %v2617_v24 = vadd.f32 %v2616_v9, %v2586_v33  ;;  %v2403_v41 = vadd.f32 %v2828_v12, %v4088_v53  ;;  %v4382_v33 = vld [vmem:[#allocation11_spill] sm:$0xff] }
 0x248   : > { %2530 = vst [vmem:[%s2993_s28 + $0xc0] sm:$0xff] %v4240_v37  ;;  %v4249_v23 = vadd.f32 %v2852_v14, %v2258_v44  ;;  %v2397_v0 = vpop.f32.mrf.mxu0  ;;  %v2477_v52 = vpop.f32.mrf.mxu1  ;;  %v2268_v53 = vadd.f32 %v4145_v8, %v2043_v40  ;;  %v4378_v8 = vld [vmem:[#allocation4_spill] sm:$0xff]  ;;  %v4383_v12 = vld [vmem:[#allocation7_spill] sm:$0xff] }
 0x249   : > { %v2618_v2 = vadd.f32 %v2617_v24, %v2587_v25  ;;  %2517 = vst [vmem:[%s2993_s28 + $0x58] sm:$0xff] %v2403_v41  ;;  %v2398_v61 = vadd.f32 %v2397_v0, %v4085_v5  ;;  %v2547_v4 = vadd.f32 %v2546_v48, %v2393_v29  ;;  %v4258_v18 = vadd.f32 %v2477_v52, %v2253_v42 }
 0x24a   : > { %2533 = vst [vmem:[%s2993_s28 + $0xd8] sm:$0xff] %v4249_v23  ;;  %v2831_v10 = vpop.f32.mrf.mxu0  ;;  %v2855_v51 = vpop.f32.mrf.mxu1  ;;  %v2048_v49 = vadd.f32 %v4379_v21, %v4378_v8  ;;  %v2590_v35 = vmul.f32 %v2403_v41, %v2403_v41 }
 0x24b   : > { %2516 = vst [vmem:[%s2993_s28 + $0x50] sm:$0xff] %v2398_v61  ;;  %v2548_v31 = vadd.f32 %v2547_v4, %v2398_v61  ;;  %v2589_v36 = vmul.f32 %v2398_v61, %v2398_v61  ;;  %v2619_v63 = vadd.f32 %v2618_v2, %v2588_v60  ;;  %v2413_v5 = vadd.f32 %v2831_v10, %v4376_v57 }
 0x24c   : > { %2532 = vst [vmem:[%s2993_s28 + $0xd0] sm:$0xff] %v4258_v18  ;;  %v4267_v46 = vadd.f32 %v2855_v51, %v2268_v53  ;;  %v2407_v56 = vpop.f32.mrf.mxu0  ;;  %v2487_v3 = vpop.f32.mrf.mxu1  ;;  %v2273_v9 = vadd.f32 %v4382_v33, %v2048_v49  ;;  %v2595_v60 = vmul.f32 %v4166_v55, %v4166_v55  ;;  %v2596_v4 = vmul.f32 %v4159_v11, %v4159_v11 }
 0x24d   : > { %v2620_v45 = vadd.f32 %v2619_v63, %v2589_v36  ;;  %2519 = vst [vmem:[%s2993_s28 + $0x68] sm:$0xff] %v2413_v5  ;;  %v2408_v30 = vadd.f32 %v2407_v56, %v4380_v38  ;;  %v2549_v32 = vadd.f32 %v2548_v31, %v2403_v41  ;;  %v4274_v47 = vadd.f32 %v2487_v3, %v2263_v19 }
 0x24e   : > { %2535 = vst [vmem:[%s2993_s28 + $0xe8] sm:$0xff] %v4267_v46  ;;  %v2834_v1 = vpop.f32.mrf.mxu0  ;;  %v2858_v6 = vpop.f32.mrf.mxu1  ;;  %v2592_v44 = vmul.f32 %v2413_v5, %v2413_v5  ;;  %v2597_v10 = vmul.f32 %v4181_v28, %v4181_v28  ;;  %v2598_v36 = vmul.f32 %v4177_v13, %v4177_v13 }
 0x24f   : > { %2518 = vst [vmem:[%s2993_s28 + $0x60] sm:$0xff] %v2408_v30  ;;  %v2550_v29 = vadd.f32 %v2549_v32, %v2408_v30  ;;  %v2591_v54 = vmul.f32 %v2408_v30, %v2408_v30  ;;  %v2621_v7 = vadd.f32 %v2620_v45, %v2590_v35  ;;  %v2423_v22 = vadd.f32 %v2834_v1, %v4381_v50 }
 0x250   : > { %2534 = vst [vmem:[%s2993_s28 + $0xe0] sm:$0xff] %v4274_v47  ;;  %v4281_v16 = vadd.f32 %v2858_v6, %v2278_v26  ;;  %v2417_v39 = vpop.f32.mrf.mxu0  ;;  %v2497_v20 = vpop.f32.mrf.mxu1 }
 0x251   : > { %v2622_v40 = vadd.f32 %v2621_v7, %v2591_v54  ;;  %2521 = vst [vmem:[%s2993_s28 + $0x78] sm:$0xff] %v2423_v22  ;;  %v2418_v14 = vadd.f32 %v2417_v39, %v4383_v12  ;;  %v2551_v48 = vadd.f32 %v2550_v29, %v2413_v5  ;;  %v2498_v25 = vadd.f32 %v2497_v20, %v2273_v9 }
 0x252   : > { %2537 = vst [vmem:[%s2993_s28 + $0xf8] sm:$0xff] %v4281_v16  ;;  %v2594_v58 = vmul.f32 %v2423_v22, %v2423_v22  ;;  %v2610_v9 = vmul.f32 %v4281_v16, %v4281_v16 }
 0x253   : > { %2520 = vst [vmem:[%s2993_s28 + $0x70] sm:$0xff] %v2418_v14  ;;  %v2552_v24 = vadd.f32 %v2551_v48, %v2418_v14  ;;  %v2593_v41 = vmul.f32 %v2418_v14, %v2418_v14  ;;  %v2623_v42 = vadd.f32 %v2622_v40, %v2592_v44  ;;  %2536 = vst [vmem:[%s2993_s28 + $0xf0] sm:$0xff] %v2498_v25 }
 0x255   : > { %v2553_v0 = vadd.f32 %v2552_v24, %v2423_v22  ;;  %v2624_v52 = vadd.f32 %v2623_v42, %v2593_v41  ;;  %v2609_v22 = vmul.f32 %v2498_v25, %v2498_v25 }
 0x257   : > { %v2554_v2 = vadd.f32 %v2553_v0, %v4166_v55  ;;  %v2625_v61 = vadd.f32 %v2624_v52, %v2594_v58  ;;  %v2599_v55 = vmul.f32 %v4204_v27, %v4204_v27 }
 0x259   : > { %v2555_v53 = vadd.f32 %v2554_v2, %v4159_v11  ;;  %v2626_v43 = vadd.f32 %v2625_v61, %v2595_v60  ;;  %v2600_v11 = vmul.f32 %v4195_v59, %v4195_v59 }
 0x25b   : > { %v2556_v51 = vadd.f32 %v2555_v53, %v4181_v28  ;;  %v2627_v31 = vadd.f32 %v2626_v43, %v2596_v4  ;;  %v2601_v28 = vmul.f32 %v4222_v15, %v4222_v15 }
 0x25d   : > { %v2557_v63 = vadd.f32 %v2556_v51, %v4177_v13  ;;  %v2628_v57 = vadd.f32 %v2627_v31, %v2597_v10  ;;  %v2602_v13 = vmul.f32 %v4213_v17, %v4213_v17 }
 0x25f   : > { %v2558_v5 = vadd.f32 %v2557_v63, %v4204_v27  ;;  %v2629_v34 = vadd.f32 %v2628_v57, %v2598_v36  ;;  %v2603_v27 = vmul.f32 %v4240_v37, %v4240_v37 }
 0x261   : > { %v2559_v19 = vadd.f32 %v2558_v5, %v4195_v59  ;;  %v2630_v8 = vadd.f32 %v2629_v34, %v2599_v55  ;;  %v2604_v59 = vmul.f32 %v4231_v62, %v4231_v62 }
 0x263   : > { %v2631_v21 = vadd.f32 %v2630_v8, %v2600_v11  ;;  %v2560_v49 = vadd.f32 %v2559_v19, %v4222_v15  ;;  %v2605_v15 = vmul.f32 %v4258_v18, %v4258_v18 }
 0x265   : > { %v2561_v56 = vadd.f32 %v2560_v49, %v4213_v17  ;;  %v2632_v3 = vadd.f32 %v2631_v21, %v2601_v28  ;;  %v2606_v17 = vmul.f32 %v4249_v23, %v4249_v23 }
 0x267   : > { %v2562_v35 = vadd.f32 %v2561_v56, %v4240_v37  ;;  %v2633_v45 = vadd.f32 %v2632_v3, %v2602_v13  ;;  %v2607_v37 = vmul.f32 %v4274_v47, %v4274_v47 }
 0x269   : > { %v2563_v38 = vadd.f32 %v2562_v35, %v4231_v62  ;;  %v2634_v30 = vadd.f32 %v2633_v45, %v2603_v27  ;;  %v2608_v62 = vmul.f32 %v4267_v46, %v4267_v46 }
 0x26b   : > { %v2564_v32 = vadd.f32 %v2563_v38, %v4258_v18  ;;  %v2635_v26 = vadd.f32 %v2634_v30, %v2604_v59 }
 0x26d   : > { %v2565_v1 = vadd.f32 %v2564_v32, %v4249_v23  ;;  %v2636_v6 = vadd.f32 %v2635_v26, %v2605_v15 }
 0x26f   : > { %v2566_v29 = vadd.f32 %v2565_v1, %v4274_v47  ;;  %v2637_v54 = vadd.f32 %v2636_v6, %v2606_v17 }
 0x271   : > { %v2567_v7 = vadd.f32 %v2566_v29, %v4267_v46  ;;  %v2638_v50 = vadd.f32 %v2637_v54, %v2607_v37 }
 0x273   : > { %v2568_v18 = vadd.f32 %v2567_v7, %v2498_v25  ;;  %v2639_v33 = vadd.f32 %v2638_v50, %v2608_v62  ;;  %v2538_v25 = vld [vmem:[%s4354_s5] sm:$0x1] }
 0x275   : > { %v2569_v23 = vadd.f32 %v2568_v18, %v4281_v16  ;;  %v2640_v39 = vadd.f32 %v2639_v33, %v2609_v22  ;;  %v2578_v16 = vld [vmem:[%s4355_s6] sm:$0x1] }
 0x277   : > { %v2570_v20 = vrot.slane %v2569_v23, 4  ;;  %v2641_v44 = vadd.f32 %v2640_v39, %v2610_v9 }
 0x279   : > { %v2571_v40 = vadd.f32 %v2570_v20, %v2569_v23  ;;  %v2642_v47 = vrot.slane %v2641_v44, 4 }
 0x27b   : > { %v2572_v12 = vrot.slane %v2571_v40, 2  ;;  %v2643_v14 = vadd.f32 %v2642_v47, %v2641_v44 }
 0x27d   : > { %v2573_v48 = vadd.f32 %v2572_v12, %v2571_v40  ;;  %v2644_v24 = vrot.slane %v2643_v14, 2 }
 0x27f   : > { %v2574_v41 = vrot.slane %v2573_v48, 1  ;;  %v2645_v46 = vadd.f32 %v2644_v24, %v2643_v14 }
 0x281   : > { %v2575_v42 = vadd.f32 %v2574_v41, %v2573_v48  ;;  %v2646_v58 = vrot.slane %v2645_v46, 1 }
 0x283   : > { %v2576_v0 = vadd.f32 %v2575_v42, %v2538_v25  ;;  %v2647_v52 = vadd.f32 %v2646_v58, %v2645_v46 }
 0x285   : > { %2577 = vst [vmem:[%s4354_s5] sm:$0x1] %v2576_v0  ;;  %v2648_v60 = vadd.f32 %v2647_v52, %v2578_v16 }
 0x287   : > { %2649 = vst [vmem:[%s4355_s6] sm:$0x1] %v2648_v60 }
 0x288 PF: > { %s17_s21 = sadd.s32 1, %s2938_s21  }
 0x289   : > { %p14_p5 = scmp.ge.s32.totalorder %s17_s21, 4  }
 0x28b   :  { %16 = sbr.rel (!%p14_p5) target bundleno = 1 (0x1), region = 88 }

</bundles_post_ra>
